<compile_context>
chip_gen: v7x
topology: tpu7x:2x2x1
jax: 0.10.0
libtpu: 0.0.40
codegen_flags: <defaults>
</compile_context>

<pallas_src>
import random
from functools import partial

import jax
import jax.numpy as jnp
from jax import lax
from jax.experimental import pallas as pl
from jax.experimental.pallas import tpu as pltpu


_VMEM = pl.BlockSpec(memory_space=pltpu.MemorySpace.VMEM)
_SMEM = pl.BlockSpec(memory_space=pltpu.MemorySpace.SMEM)


# ------------------------------ Pallas kernel -------------------------------

def _lstm_step(gates, c, H):
    """PyTorch gate order: i, f, g, o."""
    i_g = jax.nn.sigmoid(gates[:, 0 * H:1 * H])
    f_g = jax.nn.sigmoid(gates[:, 1 * H:2 * H])
    g_g = jnp.tanh(gates[:, 2 * H:3 * H])
    o_g = jax.nn.sigmoid(gates[:, 3 * H:4 * H])
    c_new = f_g * c + i_g * g_g
    h_new = o_g * jnp.tanh(c_new)
    return h_new, c_new


def _seq2seq_kernel(use_ref,                       # SMEM (steps,) i32 teacher flags
                    xp_ref,                        # (src_len, B, 4H) f32  x@Wih+b (encoder)
                    tx_ref,                        # (steps,  B, 4H) f32  emb[tgt]@Wih (decoder)
                    enc_whh_ref, dec_whh_ref,      # (H, 4H) bf16
                    dec_b_ref,                     # (1, 4H) f32
                    wx_ref,                        # (VP, 4H) bf16  padded dec_emb@dec_wih
                    fcw_ref, fcb_ref,              # (H, VP) f32, (1, VP) f32 (-1e30 pad)
                    out_ref):                      # (steps, B, VP) f32 logits
    src_len = xp_ref.shape[0]
    steps, B, VP = out_ref.shape
    H = enc_whh_ref.shape[0]

    # ---------------- encoder recurrence: state carried in registers ----------------
    def enc_body(t, carry):
        h, c = carry
        gates = xp_ref[t] + jnp.dot(h.astype(jnp.bfloat16), enc_whh_ref[...],
                                    preferred_element_type=jnp.float32)
        return _lstm_step(gates, c, H)

    h0 = jnp.zeros((B, H), jnp.float32)
    c0 = jnp.zeros((B, H), jnp.float32)
    h, c = lax.fori_loop(0, src_len, enc_body, (h0, c0), unroll=True)

    # ---------------- decoder loop: LSTM + vocab proj + argmax feedback --------------
    lane = lax.broadcasted_iota(jnp.int32, (B, VP), 1).astype(jnp.float32)  # hoisted

    def dec_body(s, carry):
        h, c, prev_oh = carry
        u = use_ref[s].astype(jnp.float32)                     # 0.0 / 1.0 (SMEM scalar)

        # Input contribution to the gates: teacher-forced path is precomputed;
        # feedback path is a one-hot @ (padded Emb@Wih) matmul (one MXU pass).
        fb = jnp.dot(prev_oh.astype(jnp.bfloat16), wx_ref[...],
                     preferred_element_type=jnp.float32)
        x_part = u * tx_ref[s] + (1.0 - u) * fb

        gates = (x_part + dec_b_ref[...]
                 + jnp.dot(h.astype(jnp.bfloat16), dec_whh_ref[...],
                           preferred_element_type=jnp.float32))
        h_new, c_new = _lstm_step(gates, c, H)

        # Vocab projection in f32 (feeds greedy argmax feedback).
        logits = jnp.dot(h_new, fcw_ref[...],
                         preferred_element_type=jnp.float32) + fcb_ref[...]
        out_ref[s] = logits                                    # VMEM; one HBM writeback at end

        # First-occurrence argmax one-hot -> feedback token for next step.
        m = jnp.max(logits, axis=1, keepdims=True)
        masked = jnp.where(logits == m, lane, jnp.float32(VP))
        idx = jnp.min(masked, axis=1, keepdims=True)
        new_oh = (lane == idx).astype(jnp.float32)
        return h_new, c_new, new_oh

    prev0 = jnp.zeros((B, VP), jnp.float32)
    lax.fori_loop(0, steps, dec_body, (h, c, prev0), unroll=True)


# ------------------------------ model pieces --------------------------------

def init_params(key, src_vocab, tgt_vocab, emb_dim, hidden):
    ks = jax.random.split(key, 9)
    s = 0.1
    return {
        # encoder
        "enc_emb": jax.random.normal(ks[0], (src_vocab, emb_dim), jnp.float32) * s,
        "enc_wih": jax.random.normal(ks[1], (emb_dim, 4 * hidden), jnp.float32) * s,
        "enc_whh": jax.random.normal(ks[2], (hidden, 4 * hidden), jnp.float32) * s,
        "enc_b":   jax.random.normal(ks[3], (1, 4 * hidden), jnp.float32) * s,
        # decoder
        "dec_emb": jax.random.normal(ks[4], (tgt_vocab, emb_dim), jnp.float32) * s,
        "dec_wih": jax.random.normal(ks[5], (emb_dim, 4 * hidden), jnp.float32) * s,
        "dec_whh": jax.random.normal(ks[6], (hidden, 4 * hidden), jnp.float32) * s,
        "dec_b":   jax.random.normal(ks[7], (1, 4 * hidden), jnp.float32) * s,
        # decoder vocab projection
        "fc_w": jax.random.normal(ks[8], (hidden, tgt_vocab), jnp.float32) * s,
        "fc_b": jnp.zeros((1, tgt_vocab), jnp.float32),
    }


def prepare_params(params, tgt_vocab, hidden):
    """One-time weight preprocessing (hoisted out of the jitted forward):
    fold embedding into gate weight, pad vocab to 128 lanes, cast recurrent
    weights to bf16."""
    vp = ((tgt_vocab + 127) // 128) * 128
    w_x = jnp.dot(params["dec_emb"], params["dec_wih"],
                  preferred_element_type=jnp.float32)                     # (V, 4H)
    w_x_pad = (jnp.zeros((vp, 4 * hidden), jnp.float32)
               .at[:tgt_vocab].set(w_x).astype(jnp.bfloat16))             # (VP, 4H)
    fcw_pad = jnp.zeros((hidden, vp), jnp.float32).at[:, :tgt_vocab].set(params["fc_w"])
    fcb_pad = jnp.full((1, vp), -1e30, jnp.float32).at[:, :tgt_vocab].set(params["fc_b"])
    return {
        # used by the XLA-side embedding-gather + projection (fuses with gather)
        "enc_emb": params["enc_emb"], "enc_wih": params["enc_wih"], "enc_b": params["enc_b"],
        "dec_emb": params["dec_emb"], "dec_wih": params["dec_wih"], "dec_b": params["dec_b"],
        # kernel-resident weights
        "enc_whh_bf16": params["enc_whh"].astype(jnp.bfloat16),
        "dec_whh_bf16": params["dec_whh"].astype(jnp.bfloat16),
        "w_x_pad_bf16": w_x_pad,
        "fcw_pad": fcw_pad,        # f32: feeds the argmax feedback, keep precise
        "fcb_pad": fcb_pad,
    }


@partial(jax.jit, static_argnames=("tgt_vocab",))
def seq2seq_forward(prep, src, target, use_flags, *, tgt_vocab):
    """Mirrors Seq2Seq.forward: outputs[0] stays zero; outputs[1:] filled.
    use_flags[s] == 1 -> feed target token at decode step s (teacher forcing)."""
    vp = prep["fcw_pad"].shape[1]
    src_len, batch = src.shape
    tgt_len = target.shape[0]
    steps = tgt_len - 1

    # XLA glue: embedding gathers + hoisted input projections over all timesteps.
    enc_x = jnp.take(prep["enc_emb"], src, axis=0)                        # (T, B, E)
    xp = jnp.einsum("tbe,eg->tbg", enc_x, prep["enc_wih"],
                    preferred_element_type=jnp.float32) + prep["enc_b"]   # (T, B, 4H)
    dec_x = jnp.take(prep["dec_emb"], target[:steps], axis=0)             # (S, B, E)
    tx = jnp.einsum("sbe,eg->sbg", dec_x, prep["dec_wih"],
                    preferred_element_type=jnp.float32)                   # (S, B, 4H)

    logits_pad = pl.pallas_call(
        _seq2seq_kernel,
        out_shape=jax.ShapeDtypeStruct((steps, batch, vp), jnp.float32),
        in_specs=[_SMEM,                                  # teacher-forcing flags
                  _VMEM, _VMEM,                           # xp, tx
                  _VMEM, _VMEM, _VMEM,                    # enc_whh, dec_whh, dec_b
                  _VMEM, _VMEM, _VMEM],                   # w_x, fc_w, fc_b
        out_specs=_VMEM,
    )(use_flags, xp, tx,
      prep["enc_whh_bf16"], prep["dec_whh_bf16"], prep["dec_b"],
      prep["w_x_pad_bf16"], prep["fcw_pad"], prep["fcb_pad"])

    logits = logits_pad[:, :, :tgt_vocab]
    return jnp.concatenate(
        [jnp.zeros((1, batch, tgt_vocab), jnp.float32), logits], axis=0)


# ---------------------------------- main ------------------------------------

if __name__ == "__main__":
    SRC_VOCAB = 20
    TGT_VOCAB = 16
    EMB_DIM = 16
    HIDDEN = 32
    SRC_LEN = 10
    TGT_LEN = 8
    BATCH = 2
    TEACHER_FORCE_RATIO = 0.5

    key = jax.random.PRNGKey(0)
    k_par, k_src, k_tgt = jax.random.split(key, 3)

    params = init_params(k_par, SRC_VOCAB, TGT_VOCAB, EMB_DIM, HIDDEN)
    prep = prepare_params(params, TGT_VOCAB, HIDDEN)      # one-time, outside the forward
    prep = jax.tree_util.tree_map(jax.block_until_ready, prep)

    src = jax.random.randint(k_src, (SRC_LEN, BATCH), 0, SRC_VOCAB, jnp.int32)
    target = jax.random.randint(k_tgt, (TGT_LEN, BATCH), 0, TGT_VOCAB, jnp.int32)

    # TODO(synk): the reference flips random.random() coins at Python level inside
    # forward(); reproduced deterministically (random.seed(0)) and precomputed into
    # an int32 mask so the whole forward is a single jitted program.
    random.seed(0)
    draws = [random.random() < TEACHER_FORCE_RATIO for _ in range(1, TGT_LEN)]
    # Decode step s==0 always consumes target[0]; step s>=1 uses the coin drawn
    # after producing the previous output (draws[s-1]), exactly as in the reference.
    use = [1] + [int(draws[s - 1]) for s in range(1, TGT_LEN - 1)]
    use_flags = jnp.asarray(use, dtype=jnp.int32)          # (TGT_LEN - 1,)

    outputs = seq2seq_forward(prep, src, target, use_flags, tgt_vocab=TGT_VOCAB)
    outputs = jax.block_until_ready(outputs)

    assert outputs.shape == (TGT_LEN, BATCH, TGT_VOCAB)
    assert bool(jnp.all(outputs[0] == 0.0))
    assert bool(jnp.all(jnp.isfinite(outputs)))
    print("KERNEL_OK")
</pallas_src>

<mosaic_0001>
module attributes {stable_mosaic.version = 11 : i64} {
  func.func @_seq2seq_kernel(%arg0: memref<7xi32, #tpu.memory_space<smem>>, %arg1: memref<10x2x128xf32, #tpu.memory_space<vmem>>, %arg2: memref<7x2x128xf32, #tpu.memory_space<vmem>>, %arg3: memref<32x128xbf16, #tpu.memory_space<vmem>>, %arg4: memref<32x128xbf16, #tpu.memory_space<vmem>>, %arg5: memref<1x128xf32, #tpu.memory_space<vmem>>, %arg6: memref<128x128xbf16, #tpu.memory_space<vmem>>, %arg7: memref<32x128xf32, #tpu.memory_space<vmem>>, %arg8: memref<1x128xf32, #tpu.memory_space<vmem>>, %arg9: memref<7x2x128xf32, #tpu.memory_space<vmem>>) attributes {dimension_semantics = [], scalar_prefetch = 0 : i64, scratch_operands = 0 : i64, tpu.core_type = #tpu.core_type<tc>} {
    %cst = arith.constant 0.000000e+00 : f32
    %0 = vector.broadcast %cst : f32 to vector<2x32xf32>
    %cst_0 = arith.constant 0.000000e+00 : f32
    %1 = vector.broadcast %cst_0 : f32 to vector<2x32xf32>
    %c0_i32 = arith.constant 0 : i32
    %2 = arith.index_cast %c0_i32 : i32 to index
    %c0 = arith.constant 0 : index
    %c0_1 = arith.constant 0 : index
    %3 = vector.load %arg1[%2, %c0, %c0_1] : memref<10x2x128xf32, #tpu.memory_space<vmem>>, vector<1x2x128xf32>
    %4 = vector.shape_cast %3 : vector<1x2x128xf32> to vector<2x128xf32>
    %5 = arith.truncf %0 : vector<2x32xf32> to vector<2x32xbf16>
    %c0_2 = arith.constant 0 : index
    %c0_3 = arith.constant 0 : index
    %6 = vector.load %arg3[%c0_2, %c0_3] : memref<32x128xbf16, #tpu.memory_space<vmem>>, vector<32x128xbf16>
    %cst_4 = arith.constant dense<0.000000e+00> : vector<2x128xf32>
    %7 = tpu.matmul %5, %6, %cst_4 {dimension_numbers = #tpu.dot_dimension_numbers<[1], [0], [0], [1], [0, 0, 1, 1], [], []>} : vector<2x32xbf16>, vector<32x128xbf16>, vector<2x128xf32> -> vector<2x128xf32>
    %8 = arith.addf %4, %7 : vector<2x128xf32>
    %9 = vector.extract_strided_slice %8 {offsets = [0, 0], sizes = [2, 32], strides = [1, 1]} : vector<2x128xf32> to vector<2x32xf32>
    %10 = arith.negf %9 : vector<2x32xf32>
    %11 = math.exp %10 : vector<2x32xf32>
    %cst_5 = arith.constant 1.000000e+00 : f32
    %12 = vector.broadcast %cst_5 : f32 to vector<2x32xf32>
    %13 = arith.addf %12, %11 : vector<2x32xf32>
    %14 = arith.divf %12, %13 : vector<2x32xf32>
    %15 = vector.extract_strided_slice %8 {offsets = [0, 32], sizes = [2, 32], strides = [1, 1]} : vector<2x128xf32> to vector<2x32xf32>
    %16 = arith.negf %15 : vector<2x32xf32>
    %17 = math.exp %16 : vector<2x32xf32>
    %cst_6 = arith.constant 1.000000e+00 : f32
    %18 = vector.broadcast %cst_6 : f32 to vector<2x32xf32>
    %19 = arith.addf %18, %17 : vector<2x32xf32>
    %20 = arith.divf %18, %19 : vector<2x32xf32>
    %21 = vector.extract_strided_slice %8 {offsets = [0, 64], sizes = [2, 32], strides = [1, 1]} : vector<2x128xf32> to vector<2x32xf32>
    %22 = math.tanh %21 : vector<2x32xf32>
    %23 = vector.extract_strided_slice %8 {offsets = [0, 96], sizes = [2, 32], strides = [1, 1]} : vector<2x128xf32> to vector<2x32xf32>
    %24 = arith.negf %23 : vector<2x32xf32>
    %25 = math.exp %24 : vector<2x32xf32>
    %cst_7 = arith.constant 1.000000e+00 : f32
    %26 = vector.broadcast %cst_7 : f32 to vector<2x32xf32>
    %27 = arith.addf %26, %25 : vector<2x32xf32>
    %28 = arith.divf %26, %27 : vector<2x32xf32>
    %29 = arith.mulf %20, %1 : vector<2x32xf32>
    %30 = arith.mulf %14, %22 : vector<2x32xf32>
    %31 = arith.addf %29, %30 : vector<2x32xf32>
    %32 = math.tanh %31 : vector<2x32xf32>
    %33 = arith.mulf %28, %32 : vector<2x32xf32>
    %c1_i32 = arith.constant 1 : i32
    %34 = arith.index_cast %c1_i32 : i32 to index
    %c0_8 = arith.constant 0 : index
    %c0_9 = arith.constant 0 : index
    %35 = vector.load %arg1[%34, %c0_8, %c0_9] : memref<10x2x128xf32, #tpu.memory_space<vmem>>, vector<1x2x128xf32>
    %36 = vector.shape_cast %35 : vector<1x2x128xf32> to vector<2x128xf32>
    %37 = arith.truncf %33 : vector<2x32xf32> to vector<2x32xbf16>
    %c0_10 = arith.constant 0 : index
    %c0_11 = arith.constant 0 : index
    %38 = vector.load %arg3[%c0_10, %c0_11] : memref<32x128xbf16, #tpu.memory_space<vmem>>, vector<32x128xbf16>
    %cst_12 = arith.constant dense<0.000000e+00> : vector<2x128xf32>
    %39 = tpu.matmul %37, %38, %cst_12 {dimension_numbers = #tpu.dot_dimension_numbers<[1], [0], [0], [1], [0, 0, 1, 1], [], []>} : vector<2x32xbf16>, vector<32x128xbf16>, vector<2x128xf32> -> vector<2x128xf32>
    %40 = arith.addf %36, %39 : vector<2x128xf32>
    %41 = vector.extract_strided_slice %40 {offsets = [0, 0], sizes = [2, 32], strides = [1, 1]} : vector<2x128xf32> to vector<2x32xf32>
    %42 = arith.negf %41 : vector<2x32xf32>
    %43 = math.exp %42 : vector<2x32xf32>
    %cst_13 = arith.constant 1.000000e+00 : f32
    %44 = vector.broadcast %cst_13 : f32 to vector<2x32xf32>
    %45 = arith.addf %44, %43 : vector<2x32xf32>
    %46 = arith.divf %44, %45 : vector<2x32xf32>
    %47 = vector.extract_strided_slice %40 {offsets = [0, 32], sizes = [2, 32], strides = [1, 1]} : vector<2x128xf32> to vector<2x32xf32>
    %48 = arith.negf %47 : vector<2x32xf32>
    %49 = math.exp %48 : vector<2x32xf32>
    %cst_14 = arith.constant 1.000000e+00 : f32
    %50 = vector.broadcast %cst_14 : f32 to vector<2x32xf32>
    %51 = arith.addf %50, %49 : vector<2x32xf32>
    %52 = arith.divf %50, %51 : vector<2x32xf32>
    %53 = vector.extract_strided_slice %40 {offsets = [0, 64], sizes = [2, 32], strides = [1, 1]} : vector<2x128xf32> to vector<2x32xf32>
    %54 = math.tanh %53 : vector<2x32xf32>
    %55 = vector.extract_strided_slice %40 {offsets = [0, 96], sizes = [2, 32], strides = [1, 1]} : vector<2x128xf32> to vector<2x32xf32>
    %56 = arith.negf %55 : vector<2x32xf32>
    %57 = math.exp %56 : vector<2x32xf32>
    %cst_15 = arith.constant 1.000000e+00 : f32
    %58 = vector.broadcast %cst_15 : f32 to vector<2x32xf32>
    %59 = arith.addf %58, %57 : vector<2x32xf32>
    %60 = arith.divf %58, %59 : vector<2x32xf32>
    %61 = arith.mulf %52, %31 : vector<2x32xf32>
    %62 = arith.mulf %46, %54 : vector<2x32xf32>
    %63 = arith.addf %61, %62 : vector<2x32xf32>
    %64 = math.tanh %63 : vector<2x32xf32>
    %65 = arith.mulf %60, %64 : vector<2x32xf32>
    %c2_i32 = arith.constant 2 : i32
    %66 = arith.index_cast %c2_i32 : i32 to index
    %c0_16 = arith.constant 0 : index
    %c0_17 = arith.constant 0 : index
    %67 = vector.load %arg1[%66, %c0_16, %c0_17] : memref<10x2x128xf32, #tpu.memory_space<vmem>>, vector<1x2x128xf32>
    %68 = vector.shape_cast %67 : vector<1x2x128xf32> to vector<2x128xf32>
    %69 = arith.truncf %65 : vector<2x32xf32> to vector<2x32xbf16>
    %c0_18 = arith.constant 0 : index
    %c0_19 = arith.constant 0 : index
    %70 = vector.load %arg3[%c0_18, %c0_19] : memref<32x128xbf16, #tpu.memory_space<vmem>>, vector<32x128xbf16>
    %cst_20 = arith.constant dense<0.000000e+00> : vector<2x128xf32>
    %71 = tpu.matmul %69, %70, %cst_20 {dimension_numbers = #tpu.dot_dimension_numbers<[1], [0], [0], [1], [0, 0, 1, 1], [], []>} : vector<2x32xbf16>, vector<32x128xbf16>, vector<2x128xf32> -> vector<2x128xf32>
    %72 = arith.addf %68, %71 : vector<2x128xf32>
    %73 = vector.extract_strided_slice %72 {offsets = [0, 0], sizes = [2, 32], strides = [1, 1]} : vector<2x128xf32> to vector<2x32xf32>
    %74 = arith.negf %73 : vector<2x32xf32>
    %75 = math.exp %74 : vector<2x32xf32>
    %cst_21 = arith.constant 1.000000e+00 : f32
    %76 = vector.broadcast %cst_21 : f32 to vector<2x32xf32>
    %77 = arith.addf %76, %75 : vector<2x32xf32>
    %78 = arith.divf %76, %77 : vector<2x32xf32>
    %79 = vector.extract_strided_slice %72 {offsets = [0, 32], sizes = [2, 32], strides = [1, 1]} : vector<2x128xf32> to vector<2x32xf32>
    %80 = arith.negf %79 : vector<2x32xf32>
    %81 = math.exp %80 : vector<2x32xf32>
    %cst_22 = arith.constant 1.000000e+00 : f32
    %82 = vector.broadcast %cst_22 : f32 to vector<2x32xf32>
    %83 = arith.addf %82, %81 : vector<2x32xf32>
    %84 = arith.divf %82, %83 : vector<2x32xf32>
    %85 = vector.extract_strided_slice %72 {offsets = [0, 64], sizes = [2, 32], strides = [1, 1]} : vector<2x128xf32> to vector<2x32xf32>
    %86 = math.tanh %85 : vector<2x32xf32>
    %87 = vector.extract_strided_slice %72 {offsets = [0, 96], sizes = [2, 32], strides = [1, 1]} : vector<2x128xf32> to vector<2x32xf32>
    %88 = arith.negf %87 : vector<2x32xf32>
    %89 = math.exp %88 : vector<2x32xf32>
    %cst_23 = arith.constant 1.000000e+00 : f32
    %90 = vector.broadcast %cst_23 : f32 to vector<2x32xf32>
    %91 = arith.addf %90, %89 : vector<2x32xf32>
    %92 = arith.divf %90, %91 : vector<2x32xf32>
    %93 = arith.mulf %84, %63 : vector<2x32xf32>
    %94 = arith.mulf %78, %86 : vector<2x32xf32>
    %95 = arith.addf %93, %94 : vector<2x32xf32>
    %96 = math.tanh %95 : vector<2x32xf32>
    %97 = arith.mulf %92, %96 : vector<2x32xf32>
    %c3_i32 = arith.constant 3 : i32
    %98 = arith.index_cast %c3_i32 : i32 to index
    %c0_24 = arith.constant 0 : index
    %c0_25 = arith.constant 0 : index
    %99 = vector.load %arg1[%98, %c0_24, %c0_25] : memref<10x2x128xf32, #tpu.memory_space<vmem>>, vector<1x2x128xf32>
    %100 = vector.shape_cast %99 : vector<1x2x128xf32> to vector<2x128xf32>
    %101 = arith.truncf %97 : vector<2x32xf32> to vector<2x32xbf16>
    %c0_26 = arith.constant 0 : index
    %c0_27 = arith.constant 0 : index
    %102 = vector.load %arg3[%c0_26, %c0_27] : memref<32x128xbf16, #tpu.memory_space<vmem>>, vector<32x128xbf16>
    %cst_28 = arith.constant dense<0.000000e+00> : vector<2x128xf32>
    %103 = tpu.matmul %101, %102, %cst_28 {dimension_numbers = #tpu.dot_dimension_numbers<[1], [0], [0], [1], [0, 0, 1, 1], [], []>} : vector<2x32xbf16>, vector<32x128xbf16>, vector<2x128xf32> -> vector<2x128xf32>
    %104 = arith.addf %100, %103 : vector<2x128xf32>
    %105 = vector.extract_strided_slice %104 {offsets = [0, 0], sizes = [2, 32], strides = [1, 1]} : vector<2x128xf32> to vector<2x32xf32>
    %106 = arith.negf %105 : vector<2x32xf32>
    %107 = math.exp %106 : vector<2x32xf32>
    %cst_29 = arith.constant 1.000000e+00 : f32
    %108 = vector.broadcast %cst_29 : f32 to vector<2x32xf32>
    %109 = arith.addf %108, %107 : vector<2x32xf32>
    %110 = arith.divf %108, %109 : vector<2x32xf32>
    %111 = vector.extract_strided_slice %104 {offsets = [0, 32], sizes = [2, 32], strides = [1, 1]} : vector<2x128xf32> to vector<2x32xf32>
    %112 = arith.negf %111 : vector<2x32xf32>
    %113 = math.exp %112 : vector<2x32xf32>
    %cst_30 = arith.constant 1.000000e+00 : f32
    %114 = vector.broadcast %cst_30 : f32 to vector<2x32xf32>
    %115 = arith.addf %114, %113 : vector<2x32xf32>
    %116 = arith.divf %114, %115 : vector<2x32xf32>
    %117 = vector.extract_strided_slice %104 {offsets = [0, 64], sizes = [2, 32], strides = [1, 1]} : vector<2x128xf32> to vector<2x32xf32>
    %118 = math.tanh %117 : vector<2x32xf32>
    %119 = vector.extract_strided_slice %104 {offsets = [0, 96], sizes = [2, 32], strides = [1, 1]} : vector<2x128xf32> to vector<2x32xf32>
    %120 = arith.negf %119 : vector<2x32xf32>
    %121 = math.exp %120 : vector<2x32xf32>
    %cst_31 = arith.constant 1.000000e+00 : f32
    %122 = vector.broadcast %cst_31 : f32 to vector<2x32xf32>
    %123 = arith.addf %122, %121 : vector<2x32xf32>
    %124 = arith.divf %122, %123 : vector<2x32xf32>
    %125 = arith.mulf %116, %95 : vector<2x32xf32>
    %126 = arith.mulf %110, %118 : vector<2x32xf32>
    %127 = arith.addf %125, %126 : vector<2x32xf32>
    %128 = math.tanh %127 : vector<2x32xf32>
    %129 = arith.mulf %124, %128 : vector<2x32xf32>
    %c4_i32 = arith.constant 4 : i32
    %130 = arith.index_cast %c4_i32 : i32 to index
    %c0_32 = arith.constant 0 : index
    %c0_33 = arith.constant 0 : index
    %131 = vector.load %arg1[%130, %c0_32, %c0_33] : memref<10x2x128xf32, #tpu.memory_space<vmem>>, vector<1x2x128xf32>
    %132 = vector.shape_cast %131 : vector<1x2x128xf32> to vector<2x128xf32>
    %133 = arith.truncf %129 : vector<2x32xf32> to vector<2x32xbf16>
    %c0_34 = arith.constant 0 : index
    %c0_35 = arith.constant 0 : index
    %134 = vector.load %arg3[%c0_34, %c0_35] : memref<32x128xbf16, #tpu.memory_space<vmem>>, vector<32x128xbf16>
    %cst_36 = arith.constant dense<0.000000e+00> : vector<2x128xf32>
    %135 = tpu.matmul %133, %134, %cst_36 {dimension_numbers = #tpu.dot_dimension_numbers<[1], [0], [0], [1], [0, 0, 1, 1], [], []>} : vector<2x32xbf16>, vector<32x128xbf16>, vector<2x128xf32> -> vector<2x128xf32>
    %136 = arith.addf %132, %135 : vector<2x128xf32>
    %137 = vector.extract_strided_slice %136 {offsets = [0, 0], sizes = [2, 32], strides = [1, 1]} : vector<2x128xf32> to vector<2x32xf32>
    %138 = arith.negf %137 : vector<2x32xf32>
    %139 = math.exp %138 : vector<2x32xf32>
    %cst_37 = arith.constant 1.000000e+00 : f32
    %140 = vector.broadcast %cst_37 : f32 to vector<2x32xf32>
    %141 = arith.addf %140, %139 : vector<2x32xf32>
    %142 = arith.divf %140, %141 : vector<2x32xf32>
    %143 = vector.extract_strided_slice %136 {offsets = [0, 32], sizes = [2, 32], strides = [1, 1]} : vector<2x128xf32> to vector<2x32xf32>
    %144 = arith.negf %143 : vector<2x32xf32>
    %145 = math.exp %144 : vector<2x32xf32>
    %cst_38 = arith.constant 1.000000e+00 : f32
    %146 = vector.broadcast %cst_38 : f32 to vector<2x32xf32>
    %147 = arith.addf %146, %145 : vector<2x32xf32>
    %148 = arith.divf %146, %147 : vector<2x32xf32>
    %149 = vector.extract_strided_slice %136 {offsets = [0, 64], sizes = [2, 32], strides = [1, 1]} : vector<2x128xf32> to vector<2x32xf32>
    %150 = math.tanh %149 : vector<2x32xf32>
    %151 = vector.extract_strided_slice %136 {offsets = [0, 96], sizes = [2, 32], strides = [1, 1]} : vector<2x128xf32> to vector<2x32xf32>
    %152 = arith.negf %151 : vector<2x32xf32>
    %153 = math.exp %152 : vector<2x32xf32>
    %cst_39 = arith.constant 1.000000e+00 : f32
    %154 = vector.broadcast %cst_39 : f32 to vector<2x32xf32>
    %155 = arith.addf %154, %153 : vector<2x32xf32>
    %156 = arith.divf %154, %155 : vector<2x32xf32>
    %157 = arith.mulf %148, %127 : vector<2x32xf32>
    %158 = arith.mulf %142, %150 : vector<2x32xf32>
    %159 = arith.addf %157, %158 : vector<2x32xf32>
    %160 = math.tanh %159 : vector<2x32xf32>
    %161 = arith.mulf %156, %160 : vector<2x32xf32>
    %c5_i32 = arith.constant 5 : i32
    %162 = arith.index_cast %c5_i32 : i32 to index
    %c0_40 = arith.constant 0 : index
    %c0_41 = arith.constant 0 : index
    %163 = vector.load %arg1[%162, %c0_40, %c0_41] : memref<10x2x128xf32, #tpu.memory_space<vmem>>, vector<1x2x128xf32>
    %164 = vector.shape_cast %163 : vector<1x2x128xf32> to vector<2x128xf32>
    %165 = arith.truncf %161 : vector<2x32xf32> to vector<2x32xbf16>
    %c0_42 = arith.constant 0 : index
    %c0_43 = arith.constant 0 : index
    %166 = vector.load %arg3[%c0_42, %c0_43] : memref<32x128xbf16, #tpu.memory_space<vmem>>, vector<32x128xbf16>
    %cst_44 = arith.constant dense<0.000000e+00> : vector<2x128xf32>
    %167 = tpu.matmul %165, %166, %cst_44 {dimension_numbers = #tpu.dot_dimension_numbers<[1], [0], [0], [1], [0, 0, 1, 1], [], []>} : vector<2x32xbf16>, vector<32x128xbf16>, vector<2x128xf32> -> vector<2x128xf32>
    %168 = arith.addf %164, %167 : vector<2x128xf32>
    %169 = vector.extract_strided_slice %168 {offsets = [0, 0], sizes = [2, 32], strides = [1, 1]} : vector<2x128xf32> to vector<2x32xf32>
    %170 = arith.negf %169 : vector<2x32xf32>
    %171 = math.exp %170 : vector<2x32xf32>
    %cst_45 = arith.constant 1.000000e+00 : f32
    %172 = vector.broadcast %cst_45 : f32 to vector<2x32xf32>
    %173 = arith.addf %172, %171 : vector<2x32xf32>
    %174 = arith.divf %172, %173 : vector<2x32xf32>
    %175 = vector.extract_strided_slice %168 {offsets = [0, 32], sizes = [2, 32], strides = [1, 1]} : vector<2x128xf32> to vector<2x32xf32>
    %176 = arith.negf %175 : vector<2x32xf32>
    %177 = math.exp %176 : vector<2x32xf32>
    %cst_46 = arith.constant 1.000000e+00 : f32
    %178 = vector.broadcast %cst_46 : f32 to vector<2x32xf32>
    %179 = arith.addf %178, %177 : vector<2x32xf32>
    %180 = arith.divf %178, %179 : vector<2x32xf32>
    %181 = vector.extract_strided_slice %168 {offsets = [0, 64], sizes = [2, 32], strides = [1, 1]} : vector<2x128xf32> to vector<2x32xf32>
    %182 = math.tanh %181 : vector<2x32xf32>
    %183 = vector.extract_strided_slice %168 {offsets = [0, 96], sizes = [2, 32], strides = [1, 1]} : vector<2x128xf32> to vector<2x32xf32>
    %184 = arith.negf %183 : vector<2x32xf32>
    %185 = math.exp %184 : vector<2x32xf32>
    %cst_47 = arith.constant 1.000000e+00 : f32
    %186 = vector.broadcast %cst_47 : f32 to vector<2x32xf32>
    %187 = arith.addf %186, %185 : vector<2x32xf32>
    %188 = arith.divf %186, %187 : vector<2x32xf32>
    %189 = arith.mulf %180, %159 : vector<2x32xf32>
    %190 = arith.mulf %174, %182 : vector<2x32xf32>
    %191 = arith.addf %189, %190 : vector<2x32xf32>
    %192 = math.tanh %191 : vector<2x32xf32>
    %193 = arith.mulf %188, %192 : vector<2x32xf32>
    %c6_i32 = arith.constant 6 : i32
    %194 = arith.index_cast %c6_i32 : i32 to index
    %c0_48 = arith.constant 0 : index
    %c0_49 = arith.constant 0 : index
    %195 = vector.load %arg1[%194, %c0_48, %c0_49] : memref<10x2x128xf32, #tpu.memory_space<vmem>>, vector<1x2x128xf32>
    %196 = vector.shape_cast %195 : vector<1x2x128xf32> to vector<2x128xf32>
    %197 = arith.truncf %193 : vector<2x32xf32> to vector<2x32xbf16>
    %c0_50 = arith.constant 0 : index
    %c0_51 = arith.constant 0 : index
    %198 = vector.load %arg3[%c0_50, %c0_51] : memref<32x128xbf16, #tpu.memory_space<vmem>>, vector<32x128xbf16>
    %cst_52 = arith.constant dense<0.000000e+00> : vector<2x128xf32>
    %199 = tpu.matmul %197, %198, %cst_52 {dimension_numbers = #tpu.dot_dimension_numbers<[1], [0], [0], [1], [0, 0, 1, 1], [], []>} : vector<2x32xbf16>, vector<32x128xbf16>, vector<2x128xf32> -> vector<2x128xf32>
    %200 = arith.addf %196, %199 : vector<2x128xf32>
    %201 = vector.extract_strided_slice %200 {offsets = [0, 0], sizes = [2, 32], strides = [1, 1]} : vector<2x128xf32> to vector<2x32xf32>
    %202 = arith.negf %201 : vector<2x32xf32>
    %203 = math.exp %202 : vector<2x32xf32>
    %cst_53 = arith.constant 1.000000e+00 : f32
    %204 = vector.broadcast %cst_53 : f32 to vector<2x32xf32>
    %205 = arith.addf %204, %203 : vector<2x32xf32>
    %206 = arith.divf %204, %205 : vector<2x32xf32>
    %207 = vector.extract_strided_slice %200 {offsets = [0, 32], sizes = [2, 32], strides = [1, 1]} : vector<2x128xf32> to vector<2x32xf32>
    %208 = arith.negf %207 : vector<2x32xf32>
    %209 = math.exp %208 : vector<2x32xf32>
    %cst_54 = arith.constant 1.000000e+00 : f32
    %210 = vector.broadcast %cst_54 : f32 to vector<2x32xf32>
    %211 = arith.addf %210, %209 : vector<2x32xf32>
    %212 = arith.divf %210, %211 : vector<2x32xf32>
    %213 = vector.extract_strided_slice %200 {offsets = [0, 64], sizes = [2, 32], strides = [1, 1]} : vector<2x128xf32> to vector<2x32xf32>
    %214 = math.tanh %213 : vector<2x32xf32>
    %215 = vector.extract_strided_slice %200 {offsets = [0, 96], sizes = [2, 32], strides = [1, 1]} : vector<2x128xf32> to vector<2x32xf32>
    %216 = arith.negf %215 : vector<2x32xf32>
    %217 = math.exp %216 : vector<2x32xf32>
    %cst_55 = arith.constant 1.000000e+00 : f32
    %218 = vector.broadcast %cst_55 : f32 to vector<2x32xf32>
    %219 = arith.addf %218, %217 : vector<2x32xf32>
    %220 = arith.divf %218, %219 : vector<2x32xf32>
    %221 = arith.mulf %212, %191 : vector<2x32xf32>
    %222 = arith.mulf %206, %214 : vector<2x32xf32>
    %223 = arith.addf %221, %222 : vector<2x32xf32>
    %224 = math.tanh %223 : vector<2x32xf32>
    %225 = arith.mulf %220, %224 : vector<2x32xf32>
    %c7_i32 = arith.constant 7 : i32
    %226 = arith.index_cast %c7_i32 : i32 to index
    %c0_56 = arith.constant 0 : index
    %c0_57 = arith.constant 0 : index
    %227 = vector.load %arg1[%226, %c0_56, %c0_57] : memref<10x2x128xf32, #tpu.memory_space<vmem>>, vector<1x2x128xf32>
    %228 = vector.shape_cast %227 : vector<1x2x128xf32> to vector<2x128xf32>
    %229 = arith.truncf %225 : vector<2x32xf32> to vector<2x32xbf16>
    %c0_58 = arith.constant 0 : index
    %c0_59 = arith.constant 0 : index
    %230 = vector.load %arg3[%c0_58, %c0_59] : memref<32x128xbf16, #tpu.memory_space<vmem>>, vector<32x128xbf16>
    %cst_60 = arith.constant dense<0.000000e+00> : vector<2x128xf32>
    %231 = tpu.matmul %229, %230, %cst_60 {dimension_numbers = #tpu.dot_dimension_numbers<[1], [0], [0], [1], [0, 0, 1, 1], [], []>} : vector<2x32xbf16>, vector<32x128xbf16>, vector<2x128xf32> -> vector<2x128xf32>
    %232 = arith.addf %228, %231 : vector<2x128xf32>
    %233 = vector.extract_strided_slice %232 {offsets = [0, 0], sizes = [2, 32], strides = [1, 1]} : vector<2x128xf32> to vector<2x32xf32>
    %234 = arith.negf %233 : vector<2x32xf32>
    %235 = math.exp %234 : vector<2x32xf32>
    %cst_61 = arith.constant 1.000000e+00 : f32
    %236 = vector.broadcast %cst_61 : f32 to vector<2x32xf32>
    %237 = arith.addf %236, %235 : vector<2x32xf32>
    %238 = arith.divf %236, %237 : vector<2x32xf32>
    %239 = vector.extract_strided_slice %232 {offsets = [0, 32], sizes = [2, 32], strides = [1, 1]} : vector<2x128xf32> to vector<2x32xf32>
    %240 = arith.negf %239 : vector<2x32xf32>
    %241 = math.exp %240 : vector<2x32xf32>
    %cst_62 = arith.constant 1.000000e+00 : f32
    %242 = vector.broadcast %cst_62 : f32 to vector<2x32xf32>
    %243 = arith.addf %242, %241 : vector<2x32xf32>
    %244 = arith.divf %242, %243 : vector<2x32xf32>
    %245 = vector.extract_strided_slice %232 {offsets = [0, 64], sizes = [2, 32], strides = [1, 1]} : vector<2x128xf32> to vector<2x32xf32>
    %246 = math.tanh %245 : vector<2x32xf32>
    %247 = vector.extract_strided_slice %232 {offsets = [0, 96], sizes = [2, 32], strides = [1, 1]} : vector<2x128xf32> to vector<2x32xf32>
    %248 = arith.negf %247 : vector<2x32xf32>
    %249 = math.exp %248 : vector<2x32xf32>
    %cst_63 = arith.constant 1.000000e+00 : f32
    %250 = vector.broadcast %cst_63 : f32 to vector<2x32xf32>
    %251 = arith.addf %250, %249 : vector<2x32xf32>
    %252 = arith.divf %250, %251 : vector<2x32xf32>
    %253 = arith.mulf %244, %223 : vector<2x32xf32>
    %254 = arith.mulf %238, %246 : vector<2x32xf32>
    %255 = arith.addf %253, %254 : vector<2x32xf32>
    %256 = math.tanh %255 : vector<2x32xf32>
    %257 = arith.mulf %252, %256 : vector<2x32xf32>
    %c8_i32 = arith.constant 8 : i32
    %258 = arith.index_cast %c8_i32 : i32 to index
    %c0_64 = arith.constant 0 : index
    %c0_65 = arith.constant 0 : index
    %259 = vector.load %arg1[%258, %c0_64, %c0_65] : memref<10x2x128xf32, #tpu.memory_space<vmem>>, vector<1x2x128xf32>
    %260 = vector.shape_cast %259 : vector<1x2x128xf32> to vector<2x128xf32>
    %261 = arith.truncf %257 : vector<2x32xf32> to vector<2x32xbf16>
    %c0_66 = arith.constant 0 : index
    %c0_67 = arith.constant 0 : index
    %262 = vector.load %arg3[%c0_66, %c0_67] : memref<32x128xbf16, #tpu.memory_space<vmem>>, vector<32x128xbf16>
    %cst_68 = arith.constant dense<0.000000e+00> : vector<2x128xf32>
    %263 = tpu.matmul %261, %262, %cst_68 {dimension_numbers = #tpu.dot_dimension_numbers<[1], [0], [0], [1], [0, 0, 1, 1], [], []>} : vector<2x32xbf16>, vector<32x128xbf16>, vector<2x128xf32> -> vector<2x128xf32>
    %264 = arith.addf %260, %263 : vector<2x128xf32>
    %265 = vector.extract_strided_slice %264 {offsets = [0, 0], sizes = [2, 32], strides = [1, 1]} : vector<2x128xf32> to vector<2x32xf32>
    %266 = arith.negf %265 : vector<2x32xf32>
    %267 = math.exp %266 : vector<2x32xf32>
    %cst_69 = arith.constant 1.000000e+00 : f32
    %268 = vector.broadcast %cst_69 : f32 to vector<2x32xf32>
    %269 = arith.addf %268, %267 : vector<2x32xf32>
    %270 = arith.divf %268, %269 : vector<2x32xf32>
    %271 = vector.extract_strided_slice %264 {offsets = [0, 32], sizes = [2, 32], strides = [1, 1]} : vector<2x128xf32> to vector<2x32xf32>
    %272 = arith.negf %271 : vector<2x32xf32>
    %273 = math.exp %272 : vector<2x32xf32>
    %cst_70 = arith.constant 1.000000e+00 : f32
    %274 = vector.broadcast %cst_70 : f32 to vector<2x32xf32>
    %275 = arith.addf %274, %273 : vector<2x32xf32>
    %276 = arith.divf %274, %275 : vector<2x32xf32>
    %277 = vector.extract_strided_slice %264 {offsets = [0, 64], sizes = [2, 32], strides = [1, 1]} : vector<2x128xf32> to vector<2x32xf32>
    %278 = math.tanh %277 : vector<2x32xf32>
    %279 = vector.extract_strided_slice %264 {offsets = [0, 96], sizes = [2, 32], strides = [1, 1]} : vector<2x128xf32> to vector<2x32xf32>
    %280 = arith.negf %279 : vector<2x32xf32>
    %281 = math.exp %280 : vector<2x32xf32>
    %cst_71 = arith.constant 1.000000e+00 : f32
    %282 = vector.broadcast %cst_71 : f32 to vector<2x32xf32>
    %283 = arith.addf %282, %281 : vector<2x32xf32>
    %284 = arith.divf %282, %283 : vector<2x32xf32>
    %285 = arith.mulf %276, %255 : vector<2x32xf32>
    %286 = arith.mulf %270, %278 : vector<2x32xf32>
    %287 = arith.addf %285, %286 : vector<2x32xf32>
    %288 = math.tanh %287 : vector<2x32xf32>
    %289 = arith.mulf %284, %288 : vector<2x32xf32>
    %c9_i32 = arith.constant 9 : i32
    %290 = arith.index_cast %c9_i32 : i32 to index
    %c0_72 = arith.constant 0 : index
    %c0_73 = arith.constant 0 : index
    %291 = vector.load %arg1[%290, %c0_72, %c0_73] : memref<10x2x128xf32, #tpu.memory_space<vmem>>, vector<1x2x128xf32>
    %292 = vector.shape_cast %291 : vector<1x2x128xf32> to vector<2x128xf32>
    %293 = arith.truncf %289 : vector<2x32xf32> to vector<2x32xbf16>
    %c0_74 = arith.constant 0 : index
    %c0_75 = arith.constant 0 : index
    %294 = vector.load %arg3[%c0_74, %c0_75] : memref<32x128xbf16, #tpu.memory_space<vmem>>, vector<32x128xbf16>
    %cst_76 = arith.constant dense<0.000000e+00> : vector<2x128xf32>
    %295 = tpu.matmul %293, %294, %cst_76 {dimension_numbers = #tpu.dot_dimension_numbers<[1], [0], [0], [1], [0, 0, 1, 1], [], []>} : vector<2x32xbf16>, vector<32x128xbf16>, vector<2x128xf32> -> vector<2x128xf32>
    %296 = arith.addf %292, %295 : vector<2x128xf32>
    %297 = vector.extract_strided_slice %296 {offsets = [0, 0], sizes = [2, 32], strides = [1, 1]} : vector<2x128xf32> to vector<2x32xf32>
    %298 = arith.negf %297 : vector<2x32xf32>
    %299 = math.exp %298 : vector<2x32xf32>
    %cst_77 = arith.constant 1.000000e+00 : f32
    %300 = vector.broadcast %cst_77 : f32 to vector<2x32xf32>
    %301 = arith.addf %300, %299 : vector<2x32xf32>
    %302 = arith.divf %300, %301 : vector<2x32xf32>
    %303 = vector.extract_strided_slice %296 {offsets = [0, 32], sizes = [2, 32], strides = [1, 1]} : vector<2x128xf32> to vector<2x32xf32>
    %304 = arith.negf %303 : vector<2x32xf32>
    %305 = math.exp %304 : vector<2x32xf32>
    %cst_78 = arith.constant 1.000000e+00 : f32
    %306 = vector.broadcast %cst_78 : f32 to vector<2x32xf32>
    %307 = arith.addf %306, %305 : vector<2x32xf32>
    %308 = arith.divf %306, %307 : vector<2x32xf32>
    %309 = vector.extract_strided_slice %296 {offsets = [0, 64], sizes = [2, 32], strides = [1, 1]} : vector<2x128xf32> to vector<2x32xf32>
    %310 = math.tanh %309 : vector<2x32xf32>
    %311 = vector.extract_strided_slice %296 {offsets = [0, 96], sizes = [2, 32], strides = [1, 1]} : vector<2x128xf32> to vector<2x32xf32>
    %312 = arith.negf %311 : vector<2x32xf32>
    %313 = math.exp %312 : vector<2x32xf32>
    %cst_79 = arith.constant 1.000000e+00 : f32
    %314 = vector.broadcast %cst_79 : f32 to vector<2x32xf32>
    %315 = arith.addf %314, %313 : vector<2x32xf32>
    %316 = arith.divf %314, %315 : vector<2x32xf32>
    %317 = arith.mulf %308, %287 : vector<2x32xf32>
    %318 = arith.mulf %302, %310 : vector<2x32xf32>
    %319 = arith.addf %317, %318 : vector<2x32xf32>
    %320 = math.tanh %319 : vector<2x32xf32>
    %321 = arith.mulf %316, %320 : vector<2x32xf32>
    %c10_i32 = arith.constant 10 : i32
    %322 = tpu.iota {dimensions = array<i32: 1>} : vector<2x128xi32>
    %323 = arith.sitofp %322 : vector<2x128xi32> to vector<2x128xf32>
    %cst_80 = arith.constant 0.000000e+00 : f32
    %324 = vector.broadcast %cst_80 : f32 to vector<2x128xf32>
    %c0_i32_81 = arith.constant 0 : i32
    %325 = arith.index_cast %c0_i32_81 : i32 to index
    %326 = memref.load %arg0[%325] : memref<7xi32, #tpu.memory_space<smem>>
    %327 = arith.sitofp %326 : i32 to f32
    %328 = arith.truncf %324 : vector<2x128xf32> to vector<2x128xbf16>
    %c0_82 = arith.constant 0 : index
    %c0_83 = arith.constant 0 : index
    %329 = vector.load %arg6[%c0_82, %c0_83] : memref<128x128xbf16, #tpu.memory_space<vmem>>, vector<128x128xbf16>
    %cst_84 = arith.constant dense<0.000000e+00> : vector<2x128xf32>
    %330 = tpu.matmul %328, %329, %cst_84 {dimension_numbers = #tpu.dot_dimension_numbers<[1], [0], [0], [1], [0, 0, 1, 1], [], []>} : vector<2x128xbf16>, vector<128x128xbf16>, vector<2x128xf32> -> vector<2x128xf32>
    %331 = arith.index_cast %c0_i32_81 : i32 to index
    %c0_85 = arith.constant 0 : index
    %c0_86 = arith.constant 0 : index
    %332 = vector.load %arg2[%331, %c0_85, %c0_86] : memref<7x2x128xf32, #tpu.memory_space<vmem>>, vector<1x2x128xf32>
    %333 = vector.shape_cast %332 : vector<1x2x128xf32> to vector<2x128xf32>
    %334 = vector.broadcast %327 : f32 to vector<2x128xf32>
    %335 = arith.mulf %334, %333 : vector<2x128xf32>
    %cst_87 = arith.constant 1.000000e+00 : f32
    %336 = arith.subf %cst_87, %327 : f32
    %337 = vector.broadcast %336 : f32 to vector<2x128xf32>
    %338 = arith.mulf %337, %330 : vector<2x128xf32>
    %339 = arith.addf %335, %338 : vector<2x128xf32>
    %c0_88 = arith.constant 0 : index
    %c0_89 = arith.constant 0 : index
    %340 = vector.load %arg5[%c0_88, %c0_89] : memref<1x128xf32, #tpu.memory_space<vmem>>, vector<1x128xf32>
    %341 = vector.broadcast %340 : vector<1x128xf32> to vector<2x128xf32>
    %342 = arith.addf %339, %341 : vector<2x128xf32>
    %343 = arith.truncf %321 : vector<2x32xf32> to vector<2x32xbf16>
    %c0_90 = arith.constant 0 : index
    %c0_91 = arith.constant 0 : index
    %344 = vector.load %arg4[%c0_90, %c0_91] : memref<32x128xbf16, #tpu.memory_space<vmem>>, vector<32x128xbf16>
    %cst_92 = arith.constant dense<0.000000e+00> : vector<2x128xf32>
    %345 = tpu.matmul %343, %344, %cst_92 {dimension_numbers = #tpu.dot_dimension_numbers<[1], [0], [0], [1], [0, 0, 1, 1], [], []>} : vector<2x32xbf16>, vector<32x128xbf16>, vector<2x128xf32> -> vector<2x128xf32>
    %346 = arith.addf %342, %345 : vector<2x128xf32>
    %347 = vector.extract_strided_slice %346 {offsets = [0, 0], sizes = [2, 32], strides = [1, 1]} : vector<2x128xf32> to vector<2x32xf32>
    %348 = arith.negf %347 : vector<2x32xf32>
    %349 = math.exp %348 : vector<2x32xf32>
    %cst_93 = arith.constant 1.000000e+00 : f32
    %350 = vector.broadcast %cst_93 : f32 to vector<2x32xf32>
    %351 = arith.addf %350, %349 : vector<2x32xf32>
    %352 = arith.divf %350, %351 : vector<2x32xf32>
    %353 = vector.extract_strided_slice %346 {offsets = [0, 32], sizes = [2, 32], strides = [1, 1]} : vector<2x128xf32> to vector<2x32xf32>
    %354 = arith.negf %353 : vector<2x32xf32>
    %355 = math.exp %354 : vector<2x32xf32>
    %cst_94 = arith.constant 1.000000e+00 : f32
    %356 = vector.broadcast %cst_94 : f32 to vector<2x32xf32>
    %357 = arith.addf %356, %355 : vector<2x32xf32>
    %358 = arith.divf %356, %357 : vector<2x32xf32>
    %359 = vector.extract_strided_slice %346 {offsets = [0, 64], sizes = [2, 32], strides = [1, 1]} : vector<2x128xf32> to vector<2x32xf32>
    %360 = math.tanh %359 : vector<2x32xf32>
    %361 = vector.extract_strided_slice %346 {offsets = [0, 96], sizes = [2, 32], strides = [1, 1]} : vector<2x128xf32> to vector<2x32xf32>
    %362 = arith.negf %361 : vector<2x32xf32>
    %363 = math.exp %362 : vector<2x32xf32>
    %cst_95 = arith.constant 1.000000e+00 : f32
    %364 = vector.broadcast %cst_95 : f32 to vector<2x32xf32>
    %365 = arith.addf %364, %363 : vector<2x32xf32>
    %366 = arith.divf %364, %365 : vector<2x32xf32>
    %367 = arith.mulf %358, %319 : vector<2x32xf32>
    %368 = arith.mulf %352, %360 : vector<2x32xf32>
    %369 = arith.addf %367, %368 : vector<2x32xf32>
    %370 = math.tanh %369 : vector<2x32xf32>
    %371 = arith.mulf %366, %370 : vector<2x32xf32>
    %c0_96 = arith.constant 0 : index
    %c0_97 = arith.constant 0 : index
    %372 = vector.load %arg7[%c0_96, %c0_97] : memref<32x128xf32, #tpu.memory_space<vmem>>, vector<32x128xf32>
    %cst_98 = arith.constant dense<0.000000e+00> : vector<2x128xf32>
    %373 = tpu.matmul %371, %372, %cst_98 {dimension_numbers = #tpu.dot_dimension_numbers<[1], [0], [0], [1], [0, 0, 1, 1], [], []>} : vector<2x32xf32>, vector<32x128xf32>, vector<2x128xf32> -> vector<2x128xf32>
    %c0_99 = arith.constant 0 : index
    %c0_100 = arith.constant 0 : index
    %374 = vector.load %arg8[%c0_99, %c0_100] : memref<1x128xf32, #tpu.memory_space<vmem>>, vector<1x128xf32>
    %375 = vector.broadcast %374 : vector<1x128xf32> to vector<2x128xf32>
    %376 = arith.addf %373, %375 : vector<2x128xf32>
    %377 = arith.index_cast %c0_i32_81 : i32 to index
    %c0_101 = arith.constant 0 : index
    %c0_102 = arith.constant 0 : index
    %378 = vector.load %arg9[%377, %c0_101, %c0_102] : memref<7x2x128xf32, #tpu.memory_space<vmem>>, vector<1x2x128xf32>
    %379 = vector.shape_cast %378 : vector<1x2x128xf32> to vector<2x128xf32>
    %380 = vector.shape_cast %376 : vector<2x128xf32> to vector<1x2x128xf32>
    tpu.vector_store %arg9[%377, %c0_101, %c0_102], %380 {strides = array<i32>} : memref<7x2x128xf32, #tpu.memory_space<vmem>>, vector<1x2x128xf32>,
    %cst_103 = arith.constant dense<0xFF800000> : vector<2xf32>
    %381 = vector.multi_reduction <maximumf>, %376, %cst_103 [1] : vector<2x128xf32> to vector<2xf32>
    %382 = vector.shape_cast %381 : vector<2xf32> to vector<2x1xf32>
    %383 = vector.broadcast %382 : vector<2x1xf32> to vector<2x128xf32>
    %384 = arith.cmpf oeq, %376, %383 : vector<2x128xf32>
    %cst_104 = arith.constant 1.280000e+02 : f32
    %385 = vector.broadcast %cst_104 : f32 to vector<2x128xf32>
    %386 = arith.select %384, %323, %385 : vector<2x128xi1>, vector<2x128xf32>
    %cst_105 = arith.constant dense<0x7F800000> : vector<2xf32>
    %387 = vector.multi_reduction <minimumf>, %386, %cst_105 [1] : vector<2x128xf32> to vector<2xf32>
    %388 = vector.shape_cast %387 : vector<2xf32> to vector<2x1xf32>
    %389 = vector.broadcast %388 : vector<2x1xf32> to vector<2x128xf32>
    %390 = arith.cmpf oeq, %323, %389 : vector<2x128xf32>
    %391 = arith.extui %390 : vector<2x128xi1> to vector<2x128xi32>
    %392 = arith.sitofp %391 : vector<2x128xi32> to vector<2x128xf32>
    %c1_i32_106 = arith.constant 1 : i32
    %393 = arith.index_cast %c1_i32_106 : i32 to index
    %394 = memref.load %arg0[%393] : memref<7xi32, #tpu.memory_space<smem>>
    %395 = arith.sitofp %394 : i32 to f32
    %396 = arith.truncf %392 : vector<2x128xf32> to vector<2x128xbf16>
    %c0_107 = arith.constant 0 : index
    %c0_108 = arith.constant 0 : index
    %397 = vector.load %arg6[%c0_107, %c0_108] : memref<128x128xbf16, #tpu.memory_space<vmem>>, vector<128x128xbf16>
    %cst_109 = arith.constant dense<0.000000e+00> : vector<2x128xf32>
    %398 = tpu.matmul %396, %397, %cst_109 {dimension_numbers = #tpu.dot_dimension_numbers<[1], [0], [0], [1], [0, 0, 1, 1], [], []>} : vector<2x128xbf16>, vector<128x128xbf16>, vector<2x128xf32> -> vector<2x128xf32>
    %399 = arith.index_cast %c1_i32_106 : i32 to index
    %c0_110 = arith.constant 0 : index
    %c0_111 = arith.constant 0 : index
    %400 = vector.load %arg2[%399, %c0_110, %c0_111] : memref<7x2x128xf32, #tpu.memory_space<vmem>>, vector<1x2x128xf32>
    %401 = vector.shape_cast %400 : vector<1x2x128xf32> to vector<2x128xf32>
    %402 = vector.broadcast %395 : f32 to vector<2x128xf32>
    %403 = arith.mulf %402, %401 : vector<2x128xf32>
    %cst_112 = arith.constant 1.000000e+00 : f32
    %404 = arith.subf %cst_112, %395 : f32
    %405 = vector.broadcast %404 : f32 to vector<2x128xf32>
    %406 = arith.mulf %405, %398 : vector<2x128xf32>
    %407 = arith.addf %403, %406 : vector<2x128xf32>
    %c0_113 = arith.constant 0 : index
    %c0_114 = arith.constant 0 : index
    %408 = vector.load %arg5[%c0_113, %c0_114] : memref<1x128xf32, #tpu.memory_space<vmem>>, vector<1x128xf32>
    %409 = vector.broadcast %408 : vector<1x128xf32> to vector<2x128xf32>
    %410 = arith.addf %407, %409 : vector<2x128xf32>
    %411 = arith.truncf %371 : vector<2x32xf32> to vector<2x32xbf16>
    %c0_115 = arith.constant 0 : index
    %c0_116 = arith.constant 0 : index
    %412 = vector.load %arg4[%c0_115, %c0_116] : memref<32x128xbf16, #tpu.memory_space<vmem>>, vector<32x128xbf16>
    %cst_117 = arith.constant dense<0.000000e+00> : vector<2x128xf32>
    %413 = tpu.matmul %411, %412, %cst_117 {dimension_numbers = #tpu.dot_dimension_numbers<[1], [0], [0], [1], [0, 0, 1, 1], [], []>} : vector<2x32xbf16>, vector<32x128xbf16>, vector<2x128xf32> -> vector<2x128xf32>
    %414 = arith.addf %410, %413 : vector<2x128xf32>
    %415 = vector.extract_strided_slice %414 {offsets = [0, 0], sizes = [2, 32], strides = [1, 1]} : vector<2x128xf32> to vector<2x32xf32>
    %416 = arith.negf %415 : vector<2x32xf32>
    %417 = math.exp %416 : vector<2x32xf32>
    %cst_118 = arith.constant 1.000000e+00 : f32
    %418 = vector.broadcast %cst_118 : f32 to vector<2x32xf32>
    %419 = arith.addf %418, %417 : vector<2x32xf32>
    %420 = arith.divf %418, %419 : vector<2x32xf32>
    %421 = vector.extract_strided_slice %414 {offsets = [0, 32], sizes = [2, 32], strides = [1, 1]} : vector<2x128xf32> to vector<2x32xf32>
    %422 = arith.negf %421 : vector<2x32xf32>
    %423 = math.exp %422 : vector<2x32xf32>
    %cst_119 = arith.constant 1.000000e+00 : f32
    %424 = vector.broadcast %cst_119 : f32 to vector<2x32xf32>
    %425 = arith.addf %424, %423 : vector<2x32xf32>
    %426 = arith.divf %424, %425 : vector<2x32xf32>
    %427 = vector.extract_strided_slice %414 {offsets = [0, 64], sizes = [2, 32], strides = [1, 1]} : vector<2x128xf32> to vector<2x32xf32>
    %428 = math.tanh %427 : vector<2x32xf32>
    %429 = vector.extract_strided_slice %414 {offsets = [0, 96], sizes = [2, 32], strides = [1, 1]} : vector<2x128xf32> to vector<2x32xf32>
    %430 = arith.negf %429 : vector<2x32xf32>
    %431 = math.exp %430 : vector<2x32xf32>
    %cst_120 = arith.constant 1.000000e+00 : f32
    %432 = vector.broadcast %cst_120 : f32 to vector<2x32xf32>
    %433 = arith.addf %432, %431 : vector<2x32xf32>
    %434 = arith.divf %432, %433 : vector<2x32xf32>
    %435 = arith.mulf %426, %369 : vector<2x32xf32>
    %436 = arith.mulf %420, %428 : vector<2x32xf32>
    %437 = arith.addf %435, %436 : vector<2x32xf32>
    %438 = math.tanh %437 : vector<2x32xf32>
    %439 = arith.mulf %434, %438 : vector<2x32xf32>
    %c0_121 = arith.constant 0 : index
    %c0_122 = arith.constant 0 : index
    %440 = vector.load %arg7[%c0_121, %c0_122] : memref<32x128xf32, #tpu.memory_space<vmem>>, vector<32x128xf32>
    %cst_123 = arith.constant dense<0.000000e+00> : vector<2x128xf32>
    %441 = tpu.matmul %439, %440, %cst_123 {dimension_numbers = #tpu.dot_dimension_numbers<[1], [0], [0], [1], [0, 0, 1, 1], [], []>} : vector<2x32xf32>, vector<32x128xf32>, vector<2x128xf32> -> vector<2x128xf32>
    %c0_124 = arith.constant 0 : index
    %c0_125 = arith.constant 0 : index
    %442 = vector.load %arg8[%c0_124, %c0_125] : memref<1x128xf32, #tpu.memory_space<vmem>>, vector<1x128xf32>
    %443 = vector.broadcast %442 : vector<1x128xf32> to vector<2x128xf32>
    %444 = arith.addf %441, %443 : vector<2x128xf32>
    %445 = arith.index_cast %c1_i32_106 : i32 to index
    %c0_126 = arith.constant 0 : index
    %c0_127 = arith.constant 0 : index
    %446 = vector.load %arg9[%445, %c0_126, %c0_127] : memref<7x2x128xf32, #tpu.memory_space<vmem>>, vector<1x2x128xf32>
    %447 = vector.shape_cast %446 : vector<1x2x128xf32> to vector<2x128xf32>
    %448 = vector.shape_cast %444 : vector<2x128xf32> to vector<1x2x128xf32>
    tpu.vector_store %arg9[%445, %c0_126, %c0_127], %448 {strides = array<i32>} : memref<7x2x128xf32, #tpu.memory_space<vmem>>, vector<1x2x128xf32>,
    %cst_128 = arith.constant dense<0xFF800000> : vector<2xf32>
    %449 = vector.multi_reduction <maximumf>, %444, %cst_128 [1] : vector<2x128xf32> to vector<2xf32>
    %450 = vector.shape_cast %449 : vector<2xf32> to vector<2x1xf32>
    %451 = vector.broadcast %450 : vector<2x1xf32> to vector<2x128xf32>
    %452 = arith.cmpf oeq, %444, %451 : vector<2x128xf32>
    %cst_129 = arith.constant 1.280000e+02 : f32
    %453 = vector.broadcast %cst_129 : f32 to vector<2x128xf32>
    %454 = arith.select %452, %323, %453 : vector<2x128xi1>, vector<2x128xf32>
    %cst_130 = arith.constant dense<0x7F800000> : vector<2xf32>
    %455 = vector.multi_reduction <minimumf>, %454, %cst_130 [1] : vector<2x128xf32> to vector<2xf32>
    %456 = vector.shape_cast %455 : vector<2xf32> to vector<2x1xf32>
    %457 = vector.broadcast %456 : vector<2x1xf32> to vector<2x128xf32>
    %458 = arith.cmpf oeq, %323, %457 : vector<2x128xf32>
    %459 = arith.extui %458 : vector<2x128xi1> to vector<2x128xi32>
    %460 = arith.sitofp %459 : vector<2x128xi32> to vector<2x128xf32>
    %c2_i32_131 = arith.constant 2 : i32
    %461 = arith.index_cast %c2_i32_131 : i32 to index
    %462 = memref.load %arg0[%461] : memref<7xi32, #tpu.memory_space<smem>>
    %463 = arith.sitofp %462 : i32 to f32
    %464 = arith.truncf %460 : vector<2x128xf32> to vector<2x128xbf16>
    %c0_132 = arith.constant 0 : index
    %c0_133 = arith.constant 0 : index
    %465 = vector.load %arg6[%c0_132, %c0_133] : memref<128x128xbf16, #tpu.memory_space<vmem>>, vector<128x128xbf16>
    %cst_134 = arith.constant dense<0.000000e+00> : vector<2x128xf32>
    %466 = tpu.matmul %464, %465, %cst_134 {dimension_numbers = #tpu.dot_dimension_numbers<[1], [0], [0], [1], [0, 0, 1, 1], [], []>} : vector<2x128xbf16>, vector<128x128xbf16>, vector<2x128xf32> -> vector<2x128xf32>
    %467 = arith.index_cast %c2_i32_131 : i32 to index
    %c0_135 = arith.constant 0 : index
    %c0_136 = arith.constant 0 : index
    %468 = vector.load %arg2[%467, %c0_135, %c0_136] : memref<7x2x128xf32, #tpu.memory_space<vmem>>, vector<1x2x128xf32>
    %469 = vector.shape_cast %468 : vector<1x2x128xf32> to vector<2x128xf32>
    %470 = vector.broadcast %463 : f32 to vector<2x128xf32>
    %471 = arith.mulf %470, %469 : vector<2x128xf32>
    %cst_137 = arith.constant 1.000000e+00 : f32
    %472 = arith.subf %cst_137, %463 : f32
    %473 = vector.broadcast %472 : f32 to vector<2x128xf32>
    %474 = arith.mulf %473, %466 : vector<2x128xf32>
    %475 = arith.addf %471, %474 : vector<2x128xf32>
    %c0_138 = arith.constant 0 : index
    %c0_139 = arith.constant 0 : index
    %476 = vector.load %arg5[%c0_138, %c0_139] : memref<1x128xf32, #tpu.memory_space<vmem>>, vector<1x128xf32>
    %477 = vector.broadcast %476 : vector<1x128xf32> to vector<2x128xf32>
    %478 = arith.addf %475, %477 : vector<2x128xf32>
    %479 = arith.truncf %439 : vector<2x32xf32> to vector<2x32xbf16>
    %c0_140 = arith.constant 0 : index
    %c0_141 = arith.constant 0 : index
    %480 = vector.load %arg4[%c0_140, %c0_141] : memref<32x128xbf16, #tpu.memory_space<vmem>>, vector<32x128xbf16>
    %cst_142 = arith.constant dense<0.000000e+00> : vector<2x128xf32>
    %481 = tpu.matmul %479, %480, %cst_142 {dimension_numbers = #tpu.dot_dimension_numbers<[1], [0], [0], [1], [0, 0, 1, 1], [], []>} : vector<2x32xbf16>, vector<32x128xbf16>, vector<2x128xf32> -> vector<2x128xf32>
    %482 = arith.addf %478, %481 : vector<2x128xf32>
    %483 = vector.extract_strided_slice %482 {offsets = [0, 0], sizes = [2, 32], strides = [1, 1]} : vector<2x128xf32> to vector<2x32xf32>
    %484 = arith.negf %483 : vector<2x32xf32>
    %485 = math.exp %484 : vector<2x32xf32>
    %cst_143 = arith.constant 1.000000e+00 : f32
    %486 = vector.broadcast %cst_143 : f32 to vector<2x32xf32>
    %487 = arith.addf %486, %485 : vector<2x32xf32>
    %488 = arith.divf %486, %487 : vector<2x32xf32>
    %489 = vector.extract_strided_slice %482 {offsets = [0, 32], sizes = [2, 32], strides = [1, 1]} : vector<2x128xf32> to vector<2x32xf32>
    %490 = arith.negf %489 : vector<2x32xf32>
    %491 = math.exp %490 : vector<2x32xf32>
    %cst_144 = arith.constant 1.000000e+00 : f32
    %492 = vector.broadcast %cst_144 : f32 to vector<2x32xf32>
    %493 = arith.addf %492, %491 : vector<2x32xf32>
    %494 = arith.divf %492, %493 : vector<2x32xf32>
    %495 = vector.extract_strided_slice %482 {offsets = [0, 64], sizes = [2, 32], strides = [1, 1]} : vector<2x128xf32> to vector<2x32xf32>
    %496 = math.tanh %495 : vector<2x32xf32>
    %497 = vector.extract_strided_slice %482 {offsets = [0, 96], sizes = [2, 32], strides = [1, 1]} : vector<2x128xf32> to vector<2x32xf32>
    %498 = arith.negf %497 : vector<2x32xf32>
    %499 = math.exp %498 : vector<2x32xf32>
    %cst_145 = arith.constant 1.000000e+00 : f32
    %500 = vector.broadcast %cst_145 : f32 to vector<2x32xf32>
    %501 = arith.addf %500, %499 : vector<2x32xf32>
    %502 = arith.divf %500, %501 : vector<2x32xf32>
    %503 = arith.mulf %494, %437 : vector<2x32xf32>
    %504 = arith.mulf %488, %496 : vector<2x32xf32>
    %505 = arith.addf %503, %504 : vector<2x32xf32>
    %506 = math.tanh %505 : vector<2x32xf32>
    %507 = arith.mulf %502, %506 : vector<2x32xf32>
    %c0_146 = arith.constant 0 : index
    %c0_147 = arith.constant 0 : index
    %508 = vector.load %arg7[%c0_146, %c0_147] : memref<32x128xf32, #tpu.memory_space<vmem>>, vector<32x128xf32>
    %cst_148 = arith.constant dense<0.000000e+00> : vector<2x128xf32>
    %509 = tpu.matmul %507, %508, %cst_148 {dimension_numbers = #tpu.dot_dimension_numbers<[1], [0], [0], [1], [0, 0, 1, 1], [], []>} : vector<2x32xf32>, vector<32x128xf32>, vector<2x128xf32> -> vector<2x128xf32>
    %c0_149 = arith.constant 0 : index
    %c0_150 = arith.constant 0 : index
    %510 = vector.load %arg8[%c0_149, %c0_150] : memref<1x128xf32, #tpu.memory_space<vmem>>, vector<1x128xf32>
    %511 = vector.broadcast %510 : vector<1x128xf32> to vector<2x128xf32>
    %512 = arith.addf %509, %511 : vector<2x128xf32>
    %513 = arith.index_cast %c2_i32_131 : i32 to index
    %c0_151 = arith.constant 0 : index
    %c0_152 = arith.constant 0 : index
    %514 = vector.load %arg9[%513, %c0_151, %c0_152] : memref<7x2x128xf32, #tpu.memory_space<vmem>>, vector<1x2x128xf32>
    %515 = vector.shape_cast %514 : vector<1x2x128xf32> to vector<2x128xf32>
    %516 = vector.shape_cast %512 : vector<2x128xf32> to vector<1x2x128xf32>
    tpu.vector_store %arg9[%513, %c0_151, %c0_152], %516 {strides = array<i32>} : memref<7x2x128xf32, #tpu.memory_space<vmem>>, vector<1x2x128xf32>,
    %cst_153 = arith.constant dense<0xFF800000> : vector<2xf32>
    %517 = vector.multi_reduction <maximumf>, %512, %cst_153 [1] : vector<2x128xf32> to vector<2xf32>
    %518 = vector.shape_cast %517 : vector<2xf32> to vector<2x1xf32>
    %519 = vector.broadcast %518 : vector<2x1xf32> to vector<2x128xf32>
    %520 = arith.cmpf oeq, %512, %519 : vector<2x128xf32>
    %cst_154 = arith.constant 1.280000e+02 : f32
    %521 = vector.broadcast %cst_154 : f32 to vector<2x128xf32>
    %522 = arith.select %520, %323, %521 : vector<2x128xi1>, vector<2x128xf32>
    %cst_155 = arith.constant dense<0x7F800000> : vector<2xf32>
    %523 = vector.multi_reduction <minimumf>, %522, %cst_155 [1] : vector<2x128xf32> to vector<2xf32>
    %524 = vector.shape_cast %523 : vector<2xf32> to vector<2x1xf32>
    %525 = vector.broadcast %524 : vector<2x1xf32> to vector<2x128xf32>
    %526 = arith.cmpf oeq, %323, %525 : vector<2x128xf32>
    %527 = arith.extui %526 : vector<2x128xi1> to vector<2x128xi32>
    %528 = arith.sitofp %527 : vector<2x128xi32> to vector<2x128xf32>
    %c3_i32_156 = arith.constant 3 : i32
    %529 = arith.index_cast %c3_i32_156 : i32 to index
    %530 = memref.load %arg0[%529] : memref<7xi32, #tpu.memory_space<smem>>
    %531 = arith.sitofp %530 : i32 to f32
    %532 = arith.truncf %528 : vector<2x128xf32> to vector<2x128xbf16>
    %c0_157 = arith.constant 0 : index
    %c0_158 = arith.constant 0 : index
    %533 = vector.load %arg6[%c0_157, %c0_158] : memref<128x128xbf16, #tpu.memory_space<vmem>>, vector<128x128xbf16>
    %cst_159 = arith.constant dense<0.000000e+00> : vector<2x128xf32>
    %534 = tpu.matmul %532, %533, %cst_159 {dimension_numbers = #tpu.dot_dimension_numbers<[1], [0], [0], [1], [0, 0, 1, 1], [], []>} : vector<2x128xbf16>, vector<128x128xbf16>, vector<2x128xf32> -> vector<2x128xf32>
    %535 = arith.index_cast %c3_i32_156 : i32 to index
    %c0_160 = arith.constant 0 : index
    %c0_161 = arith.constant 0 : index
    %536 = vector.load %arg2[%535, %c0_160, %c0_161] : memref<7x2x128xf32, #tpu.memory_space<vmem>>, vector<1x2x128xf32>
    %537 = vector.shape_cast %536 : vector<1x2x128xf32> to vector<2x128xf32>
    %538 = vector.broadcast %531 : f32 to vector<2x128xf32>
    %539 = arith.mulf %538, %537 : vector<2x128xf32>
    %cst_162 = arith.constant 1.000000e+00 : f32
    %540 = arith.subf %cst_162, %531 : f32
    %541 = vector.broadcast %540 : f32 to vector<2x128xf32>
    %542 = arith.mulf %541, %534 : vector<2x128xf32>
    %543 = arith.addf %539, %542 : vector<2x128xf32>
    %c0_163 = arith.constant 0 : index
    %c0_164 = arith.constant 0 : index
    %544 = vector.load %arg5[%c0_163, %c0_164] : memref<1x128xf32, #tpu.memory_space<vmem>>, vector<1x128xf32>
    %545 = vector.broadcast %544 : vector<1x128xf32> to vector<2x128xf32>
    %546 = arith.addf %543, %545 : vector<2x128xf32>
    %547 = arith.truncf %507 : vector<2x32xf32> to vector<2x32xbf16>
    %c0_165 = arith.constant 0 : index
    %c0_166 = arith.constant 0 : index
    %548 = vector.load %arg4[%c0_165, %c0_166] : memref<32x128xbf16, #tpu.memory_space<vmem>>, vector<32x128xbf16>
    %cst_167 = arith.constant dense<0.000000e+00> : vector<2x128xf32>
    %549 = tpu.matmul %547, %548, %cst_167 {dimension_numbers = #tpu.dot_dimension_numbers<[1], [0], [0], [1], [0, 0, 1, 1], [], []>} : vector<2x32xbf16>, vector<32x128xbf16>, vector<2x128xf32> -> vector<2x128xf32>
    %550 = arith.addf %546, %549 : vector<2x128xf32>
    %551 = vector.extract_strided_slice %550 {offsets = [0, 0], sizes = [2, 32], strides = [1, 1]} : vector<2x128xf32> to vector<2x32xf32>
    %552 = arith.negf %551 : vector<2x32xf32>
    %553 = math.exp %552 : vector<2x32xf32>
    %cst_168 = arith.constant 1.000000e+00 : f32
    %554 = vector.broadcast %cst_168 : f32 to vector<2x32xf32>
    %555 = arith.addf %554, %553 : vector<2x32xf32>
    %556 = arith.divf %554, %555 : vector<2x32xf32>
    %557 = vector.extract_strided_slice %550 {offsets = [0, 32], sizes = [2, 32], strides = [1, 1]} : vector<2x128xf32> to vector<2x32xf32>
    %558 = arith.negf %557 : vector<2x32xf32>
    %559 = math.exp %558 : vector<2x32xf32>
    %cst_169 = arith.constant 1.000000e+00 : f32
    %560 = vector.broadcast %cst_169 : f32 to vector<2x32xf32>
    %561 = arith.addf %560, %559 : vector<2x32xf32>
    %562 = arith.divf %560, %561 : vector<2x32xf32>
    %563 = vector.extract_strided_slice %550 {offsets = [0, 64], sizes = [2, 32], strides = [1, 1]} : vector<2x128xf32> to vector<2x32xf32>
    %564 = math.tanh %563 : vector<2x32xf32>
    %565 = vector.extract_strided_slice %550 {offsets = [0, 96], sizes = [2, 32], strides = [1, 1]} : vector<2x128xf32> to vector<2x32xf32>
    %566 = arith.negf %565 : vector<2x32xf32>
    %567 = math.exp %566 : vector<2x32xf32>
    %cst_170 = arith.constant 1.000000e+00 : f32
    %568 = vector.broadcast %cst_170 : f32 to vector<2x32xf32>
    %569 = arith.addf %568, %567 : vector<2x32xf32>
    %570 = arith.divf %568, %569 : vector<2x32xf32>
    %571 = arith.mulf %562, %505 : vector<2x32xf32>
    %572 = arith.mulf %556, %564 : vector<2x32xf32>
    %573 = arith.addf %571, %572 : vector<2x32xf32>
    %574 = math.tanh %573 : vector<2x32xf32>
    %575 = arith.mulf %570, %574 : vector<2x32xf32>
    %c0_171 = arith.constant 0 : index
    %c0_172 = arith.constant 0 : index
    %576 = vector.load %arg7[%c0_171, %c0_172] : memref<32x128xf32, #tpu.memory_space<vmem>>, vector<32x128xf32>
    %cst_173 = arith.constant dense<0.000000e+00> : vector<2x128xf32>
    %577 = tpu.matmul %575, %576, %cst_173 {dimension_numbers = #tpu.dot_dimension_numbers<[1], [0], [0], [1], [0, 0, 1, 1], [], []>} : vector<2x32xf32>, vector<32x128xf32>, vector<2x128xf32> -> vector<2x128xf32>
    %c0_174 = arith.constant 0 : index
    %c0_175 = arith.constant 0 : index
    %578 = vector.load %arg8[%c0_174, %c0_175] : memref<1x128xf32, #tpu.memory_space<vmem>>, vector<1x128xf32>
    %579 = vector.broadcast %578 : vector<1x128xf32> to vector<2x128xf32>
    %580 = arith.addf %577, %579 : vector<2x128xf32>
    %581 = arith.index_cast %c3_i32_156 : i32 to index
    %c0_176 = arith.constant 0 : index
    %c0_177 = arith.constant 0 : index
    %582 = vector.load %arg9[%581, %c0_176, %c0_177] : memref<7x2x128xf32, #tpu.memory_space<vmem>>, vector<1x2x128xf32>
    %583 = vector.shape_cast %582 : vector<1x2x128xf32> to vector<2x128xf32>
    %584 = vector.shape_cast %580 : vector<2x128xf32> to vector<1x2x128xf32>
    tpu.vector_store %arg9[%581, %c0_176, %c0_177], %584 {strides = array<i32>} : memref<7x2x128xf32, #tpu.memory_space<vmem>>, vector<1x2x128xf32>,
    %cst_178 = arith.constant dense<0xFF800000> : vector<2xf32>
    %585 = vector.multi_reduction <maximumf>, %580, %cst_178 [1] : vector<2x128xf32> to vector<2xf32>
    %586 = vector.shape_cast %585 : vector<2xf32> to vector<2x1xf32>
    %587 = vector.broadcast %586 : vector<2x1xf32> to vector<2x128xf32>
    %588 = arith.cmpf oeq, %580, %587 : vector<2x128xf32>
    %cst_179 = arith.constant 1.280000e+02 : f32
    %589 = vector.broadcast %cst_179 : f32 to vector<2x128xf32>
    %590 = arith.select %588, %323, %589 : vector<2x128xi1>, vector<2x128xf32>
    %cst_180 = arith.constant dense<0x7F800000> : vector<2xf32>
    %591 = vector.multi_reduction <minimumf>, %590, %cst_180 [1] : vector<2x128xf32> to vector<2xf32>
    %592 = vector.shape_cast %591 : vector<2xf32> to vector<2x1xf32>
    %593 = vector.broadcast %592 : vector<2x1xf32> to vector<2x128xf32>
    %594 = arith.cmpf oeq, %323, %593 : vector<2x128xf32>
    %595 = arith.extui %594 : vector<2x128xi1> to vector<2x128xi32>
    %596 = arith.sitofp %595 : vector<2x128xi32> to vector<2x128xf32>
    %c4_i32_181 = arith.constant 4 : i32
    %597 = arith.index_cast %c4_i32_181 : i32 to index
    %598 = memref.load %arg0[%597] : memref<7xi32, #tpu.memory_space<smem>>
    %599 = arith.sitofp %598 : i32 to f32
    %600 = arith.truncf %596 : vector<2x128xf32> to vector<2x128xbf16>
    %c0_182 = arith.constant 0 : index
    %c0_183 = arith.constant 0 : index
    %601 = vector.load %arg6[%c0_182, %c0_183] : memref<128x128xbf16, #tpu.memory_space<vmem>>, vector<128x128xbf16>
    %cst_184 = arith.constant dense<0.000000e+00> : vector<2x128xf32>
    %602 = tpu.matmul %600, %601, %cst_184 {dimension_numbers = #tpu.dot_dimension_numbers<[1], [0], [0], [1], [0, 0, 1, 1], [], []>} : vector<2x128xbf16>, vector<128x128xbf16>, vector<2x128xf32> -> vector<2x128xf32>
    %603 = arith.index_cast %c4_i32_181 : i32 to index
    %c0_185 = arith.constant 0 : index
    %c0_186 = arith.constant 0 : index
    %604 = vector.load %arg2[%603, %c0_185, %c0_186] : memref<7x2x128xf32, #tpu.memory_space<vmem>>, vector<1x2x128xf32>
    %605 = vector.shape_cast %604 : vector<1x2x128xf32> to vector<2x128xf32>
    %606 = vector.broadcast %599 : f32 to vector<2x128xf32>
    %607 = arith.mulf %606, %605 : vector<2x128xf32>
    %cst_187 = arith.constant 1.000000e+00 : f32
    %608 = arith.subf %cst_187, %599 : f32
    %609 = vector.broadcast %608 : f32 to vector<2x128xf32>
    %610 = arith.mulf %609, %602 : vector<2x128xf32>
    %611 = arith.addf %607, %610 : vector<2x128xf32>
    %c0_188 = arith.constant 0 : index
    %c0_189 = arith.constant 0 : index
    %612 = vector.load %arg5[%c0_188, %c0_189] : memref<1x128xf32, #tpu.memory_space<vmem>>, vector<1x128xf32>
    %613 = vector.broadcast %612 : vector<1x128xf32> to vector<2x128xf32>
    %614 = arith.addf %611, %613 : vector<2x128xf32>
    %615 = arith.truncf %575 : vector<2x32xf32> to vector<2x32xbf16>
    %c0_190 = arith.constant 0 : index
    %c0_191 = arith.constant 0 : index
    %616 = vector.load %arg4[%c0_190, %c0_191] : memref<32x128xbf16, #tpu.memory_space<vmem>>, vector<32x128xbf16>
    %cst_192 = arith.constant dense<0.000000e+00> : vector<2x128xf32>
    %617 = tpu.matmul %615, %616, %cst_192 {dimension_numbers = #tpu.dot_dimension_numbers<[1], [0], [0], [1], [0, 0, 1, 1], [], []>} : vector<2x32xbf16>, vector<32x128xbf16>, vector<2x128xf32> -> vector<2x128xf32>
    %618 = arith.addf %614, %617 : vector<2x128xf32>
    %619 = vector.extract_strided_slice %618 {offsets = [0, 0], sizes = [2, 32], strides = [1, 1]} : vector<2x128xf32> to vector<2x32xf32>
    %620 = arith.negf %619 : vector<2x32xf32>
    %621 = math.exp %620 : vector<2x32xf32>
    %cst_193 = arith.constant 1.000000e+00 : f32
    %622 = vector.broadcast %cst_193 : f32 to vector<2x32xf32>
    %623 = arith.addf %622, %621 : vector<2x32xf32>
    %624 = arith.divf %622, %623 : vector<2x32xf32>
    %625 = vector.extract_strided_slice %618 {offsets = [0, 32], sizes = [2, 32], strides = [1, 1]} : vector<2x128xf32> to vector<2x32xf32>
    %626 = arith.negf %625 : vector<2x32xf32>
    %627 = math.exp %626 : vector<2x32xf32>
    %cst_194 = arith.constant 1.000000e+00 : f32
    %628 = vector.broadcast %cst_194 : f32 to vector<2x32xf32>
    %629 = arith.addf %628, %627 : vector<2x32xf32>
    %630 = arith.divf %628, %629 : vector<2x32xf32>
    %631 = vector.extract_strided_slice %618 {offsets = [0, 64], sizes = [2, 32], strides = [1, 1]} : vector<2x128xf32> to vector<2x32xf32>
    %632 = math.tanh %631 : vector<2x32xf32>
    %633 = vector.extract_strided_slice %618 {offsets = [0, 96], sizes = [2, 32], strides = [1, 1]} : vector<2x128xf32> to vector<2x32xf32>
    %634 = arith.negf %633 : vector<2x32xf32>
    %635 = math.exp %634 : vector<2x32xf32>
    %cst_195 = arith.constant 1.000000e+00 : f32
    %636 = vector.broadcast %cst_195 : f32 to vector<2x32xf32>
    %637 = arith.addf %636, %635 : vector<2x32xf32>
    %638 = arith.divf %636, %637 : vector<2x32xf32>
    %639 = arith.mulf %630, %573 : vector<2x32xf32>
    %640 = arith.mulf %624, %632 : vector<2x32xf32>
    %641 = arith.addf %639, %640 : vector<2x32xf32>
    %642 = math.tanh %641 : vector<2x32xf32>
    %643 = arith.mulf %638, %642 : vector<2x32xf32>
    %c0_196 = arith.constant 0 : index
    %c0_197 = arith.constant 0 : index
    %644 = vector.load %arg7[%c0_196, %c0_197] : memref<32x128xf32, #tpu.memory_space<vmem>>, vector<32x128xf32>
    %cst_198 = arith.constant dense<0.000000e+00> : vector<2x128xf32>
    %645 = tpu.matmul %643, %644, %cst_198 {dimension_numbers = #tpu.dot_dimension_numbers<[1], [0], [0], [1], [0, 0, 1, 1], [], []>} : vector<2x32xf32>, vector<32x128xf32>, vector<2x128xf32> -> vector<2x128xf32>
    %c0_199 = arith.constant 0 : index
    %c0_200 = arith.constant 0 : index
    %646 = vector.load %arg8[%c0_199, %c0_200] : memref<1x128xf32, #tpu.memory_space<vmem>>, vector<1x128xf32>
    %647 = vector.broadcast %646 : vector<1x128xf32> to vector<2x128xf32>
    %648 = arith.addf %645, %647 : vector<2x128xf32>
    %649 = arith.index_cast %c4_i32_181 : i32 to index
    %c0_201 = arith.constant 0 : index
    %c0_202 = arith.constant 0 : index
    %650 = vector.load %arg9[%649, %c0_201, %c0_202] : memref<7x2x128xf32, #tpu.memory_space<vmem>>, vector<1x2x128xf32>
    %651 = vector.shape_cast %650 : vector<1x2x128xf32> to vector<2x128xf32>
    %652 = vector.shape_cast %648 : vector<2x128xf32> to vector<1x2x128xf32>
    tpu.vector_store %arg9[%649, %c0_201, %c0_202], %652 {strides = array<i32>} : memref<7x2x128xf32, #tpu.memory_space<vmem>>, vector<1x2x128xf32>,
    %cst_203 = arith.constant dense<0xFF800000> : vector<2xf32>
    %653 = vector.multi_reduction <maximumf>, %648, %cst_203 [1] : vector<2x128xf32> to vector<2xf32>
    %654 = vector.shape_cast %653 : vector<2xf32> to vector<2x1xf32>
    %655 = vector.broadcast %654 : vector<2x1xf32> to vector<2x128xf32>
    %656 = arith.cmpf oeq, %648, %655 : vector<2x128xf32>
    %cst_204 = arith.constant 1.280000e+02 : f32
    %657 = vector.broadcast %cst_204 : f32 to vector<2x128xf32>
    %658 = arith.select %656, %323, %657 : vector<2x128xi1>, vector<2x128xf32>
    %cst_205 = arith.constant dense<0x7F800000> : vector<2xf32>
    %659 = vector.multi_reduction <minimumf>, %658, %cst_205 [1] : vector<2x128xf32> to vector<2xf32>
    %660 = vector.shape_cast %659 : vector<2xf32> to vector<2x1xf32>
    %661 = vector.broadcast %660 : vector<2x1xf32> to vector<2x128xf32>
    %662 = arith.cmpf oeq, %323, %661 : vector<2x128xf32>
    %663 = arith.extui %662 : vector<2x128xi1> to vector<2x128xi32>
    %664 = arith.sitofp %663 : vector<2x128xi32> to vector<2x128xf32>
    %c5_i32_206 = arith.constant 5 : i32
    %665 = arith.index_cast %c5_i32_206 : i32 to index
    %666 = memref.load %arg0[%665] : memref<7xi32, #tpu.memory_space<smem>>
    %667 = arith.sitofp %666 : i32 to f32
    %668 = arith.truncf %664 : vector<2x128xf32> to vector<2x128xbf16>
    %c0_207 = arith.constant 0 : index
    %c0_208 = arith.constant 0 : index
    %669 = vector.load %arg6[%c0_207, %c0_208] : memref<128x128xbf16, #tpu.memory_space<vmem>>, vector<128x128xbf16>
    %cst_209 = arith.constant dense<0.000000e+00> : vector<2x128xf32>
    %670 = tpu.matmul %668, %669, %cst_209 {dimension_numbers = #tpu.dot_dimension_numbers<[1], [0], [0], [1], [0, 0, 1, 1], [], []>} : vector<2x128xbf16>, vector<128x128xbf16>, vector<2x128xf32> -> vector<2x128xf32>
    %671 = arith.index_cast %c5_i32_206 : i32 to index
    %c0_210 = arith.constant 0 : index
    %c0_211 = arith.constant 0 : index
    %672 = vector.load %arg2[%671, %c0_210, %c0_211] : memref<7x2x128xf32, #tpu.memory_space<vmem>>, vector<1x2x128xf32>
    %673 = vector.shape_cast %672 : vector<1x2x128xf32> to vector<2x128xf32>
    %674 = vector.broadcast %667 : f32 to vector<2x128xf32>
    %675 = arith.mulf %674, %673 : vector<2x128xf32>
    %cst_212 = arith.constant 1.000000e+00 : f32
    %676 = arith.subf %cst_212, %667 : f32
    %677 = vector.broadcast %676 : f32 to vector<2x128xf32>
    %678 = arith.mulf %677, %670 : vector<2x128xf32>
    %679 = arith.addf %675, %678 : vector<2x128xf32>
    %c0_213 = arith.constant 0 : index
    %c0_214 = arith.constant 0 : index
    %680 = vector.load %arg5[%c0_213, %c0_214] : memref<1x128xf32, #tpu.memory_space<vmem>>, vector<1x128xf32>
    %681 = vector.broadcast %680 : vector<1x128xf32> to vector<2x128xf32>
    %682 = arith.addf %679, %681 : vector<2x128xf32>
    %683 = arith.truncf %643 : vector<2x32xf32> to vector<2x32xbf16>
    %c0_215 = arith.constant 0 : index
    %c0_216 = arith.constant 0 : index
    %684 = vector.load %arg4[%c0_215, %c0_216] : memref<32x128xbf16, #tpu.memory_space<vmem>>, vector<32x128xbf16>
    %cst_217 = arith.constant dense<0.000000e+00> : vector<2x128xf32>
    %685 = tpu.matmul %683, %684, %cst_217 {dimension_numbers = #tpu.dot_dimension_numbers<[1], [0], [0], [1], [0, 0, 1, 1], [], []>} : vector<2x32xbf16>, vector<32x128xbf16>, vector<2x128xf32> -> vector<2x128xf32>
    %686 = arith.addf %682, %685 : vector<2x128xf32>
    %687 = vector.extract_strided_slice %686 {offsets = [0, 0], sizes = [2, 32], strides = [1, 1]} : vector<2x128xf32> to vector<2x32xf32>
    %688 = arith.negf %687 : vector<2x32xf32>
    %689 = math.exp %688 : vector<2x32xf32>
    %cst_218 = arith.constant 1.000000e+00 : f32
    %690 = vector.broadcast %cst_218 : f32 to vector<2x32xf32>
    %691 = arith.addf %690, %689 : vector<2x32xf32>
    %692 = arith.divf %690, %691 : vector<2x32xf32>
    %693 = vector.extract_strided_slice %686 {offsets = [0, 32], sizes = [2, 32], strides = [1, 1]} : vector<2x128xf32> to vector<2x32xf32>
    %694 = arith.negf %693 : vector<2x32xf32>
    %695 = math.exp %694 : vector<2x32xf32>
    %cst_219 = arith.constant 1.000000e+00 : f32
    %696 = vector.broadcast %cst_219 : f32 to vector<2x32xf32>
    %697 = arith.addf %696, %695 : vector<2x32xf32>
    %698 = arith.divf %696, %697 : vector<2x32xf32>
    %699 = vector.extract_strided_slice %686 {offsets = [0, 64], sizes = [2, 32], strides = [1, 1]} : vector<2x128xf32> to vector<2x32xf32>
    %700 = math.tanh %699 : vector<2x32xf32>
    %701 = vector.extract_strided_slice %686 {offsets = [0, 96], sizes = [2, 32], strides = [1, 1]} : vector<2x128xf32> to vector<2x32xf32>
    %702 = arith.negf %701 : vector<2x32xf32>
    %703 = math.exp %702 : vector<2x32xf32>
    %cst_220 = arith.constant 1.000000e+00 : f32
    %704 = vector.broadcast %cst_220 : f32 to vector<2x32xf32>
    %705 = arith.addf %704, %703 : vector<2x32xf32>
    %706 = arith.divf %704, %705 : vector<2x32xf32>
    %707 = arith.mulf %698, %641 : vector<2x32xf32>
    %708 = arith.mulf %692, %700 : vector<2x32xf32>
    %709 = arith.addf %707, %708 : vector<2x32xf32>
    %710 = math.tanh %709 : vector<2x32xf32>
    %711 = arith.mulf %706, %710 : vector<2x32xf32>
    %c0_221 = arith.constant 0 : index
    %c0_222 = arith.constant 0 : index
    %712 = vector.load %arg7[%c0_221, %c0_222] : memref<32x128xf32, #tpu.memory_space<vmem>>, vector<32x128xf32>
    %cst_223 = arith.constant dense<0.000000e+00> : vector<2x128xf32>
    %713 = tpu.matmul %711, %712, %cst_223 {dimension_numbers = #tpu.dot_dimension_numbers<[1], [0], [0], [1], [0, 0, 1, 1], [], []>} : vector<2x32xf32>, vector<32x128xf32>, vector<2x128xf32> -> vector<2x128xf32>
    %c0_224 = arith.constant 0 : index
    %c0_225 = arith.constant 0 : index
    %714 = vector.load %arg8[%c0_224, %c0_225] : memref<1x128xf32, #tpu.memory_space<vmem>>, vector<1x128xf32>
    %715 = vector.broadcast %714 : vector<1x128xf32> to vector<2x128xf32>
    %716 = arith.addf %713, %715 : vector<2x128xf32>
    %717 = arith.index_cast %c5_i32_206 : i32 to index
    %c0_226 = arith.constant 0 : index
    %c0_227 = arith.constant 0 : index
    %718 = vector.load %arg9[%717, %c0_226, %c0_227] : memref<7x2x128xf32, #tpu.memory_space<vmem>>, vector<1x2x128xf32>
    %719 = vector.shape_cast %718 : vector<1x2x128xf32> to vector<2x128xf32>
    %720 = vector.shape_cast %716 : vector<2x128xf32> to vector<1x2x128xf32>
    tpu.vector_store %arg9[%717, %c0_226, %c0_227], %720 {strides = array<i32>} : memref<7x2x128xf32, #tpu.memory_space<vmem>>, vector<1x2x128xf32>,
    %cst_228 = arith.constant dense<0xFF800000> : vector<2xf32>
    %721 = vector.multi_reduction <maximumf>, %716, %cst_228 [1] : vector<2x128xf32> to vector<2xf32>
    %722 = vector.shape_cast %721 : vector<2xf32> to vector<2x1xf32>
    %723 = vector.broadcast %722 : vector<2x1xf32> to vector<2x128xf32>
    %724 = arith.cmpf oeq, %716, %723 : vector<2x128xf32>
    %cst_229 = arith.constant 1.280000e+02 : f32
    %725 = vector.broadcast %cst_229 : f32 to vector<2x128xf32>
    %726 = arith.select %724, %323, %725 : vector<2x128xi1>, vector<2x128xf32>
    %cst_230 = arith.constant dense<0x7F800000> : vector<2xf32>
    %727 = vector.multi_reduction <minimumf>, %726, %cst_230 [1] : vector<2x128xf32> to vector<2xf32>
    %728 = vector.shape_cast %727 : vector<2xf32> to vector<2x1xf32>
    %729 = vector.broadcast %728 : vector<2x1xf32> to vector<2x128xf32>
    %730 = arith.cmpf oeq, %323, %729 : vector<2x128xf32>
    %731 = arith.extui %730 : vector<2x128xi1> to vector<2x128xi32>
    %732 = arith.sitofp %731 : vector<2x128xi32> to vector<2x128xf32>
    %c6_i32_231 = arith.constant 6 : i32
    %733 = arith.index_cast %c6_i32_231 : i32 to index
    %734 = memref.load %arg0[%733] : memref<7xi32, #tpu.memory_space<smem>>
    %735 = arith.sitofp %734 : i32 to f32
    %736 = arith.truncf %732 : vector<2x128xf32> to vector<2x128xbf16>
    %c0_232 = arith.constant 0 : index
    %c0_233 = arith.constant 0 : index
    %737 = vector.load %arg6[%c0_232, %c0_233] : memref<128x128xbf16, #tpu.memory_space<vmem>>, vector<128x128xbf16>
    %cst_234 = arith.constant dense<0.000000e+00> : vector<2x128xf32>
    %738 = tpu.matmul %736, %737, %cst_234 {dimension_numbers = #tpu.dot_dimension_numbers<[1], [0], [0], [1], [0, 0, 1, 1], [], []>} : vector<2x128xbf16>, vector<128x128xbf16>, vector<2x128xf32> -> vector<2x128xf32>
    %739 = arith.index_cast %c6_i32_231 : i32 to index
    %c0_235 = arith.constant 0 : index
    %c0_236 = arith.constant 0 : index
    %740 = vector.load %arg2[%739, %c0_235, %c0_236] : memref<7x2x128xf32, #tpu.memory_space<vmem>>, vector<1x2x128xf32>
    %741 = vector.shape_cast %740 : vector<1x2x128xf32> to vector<2x128xf32>
    %742 = vector.broadcast %735 : f32 to vector<2x128xf32>
    %743 = arith.mulf %742, %741 : vector<2x128xf32>
    %cst_237 = arith.constant 1.000000e+00 : f32
    %744 = arith.subf %cst_237, %735 : f32
    %745 = vector.broadcast %744 : f32 to vector<2x128xf32>
    %746 = arith.mulf %745, %738 : vector<2x128xf32>
    %747 = arith.addf %743, %746 : vector<2x128xf32>
    %c0_238 = arith.constant 0 : index
    %c0_239 = arith.constant 0 : index
    %748 = vector.load %arg5[%c0_238, %c0_239] : memref<1x128xf32, #tpu.memory_space<vmem>>, vector<1x128xf32>
    %749 = vector.broadcast %748 : vector<1x128xf32> to vector<2x128xf32>
    %750 = arith.addf %747, %749 : vector<2x128xf32>
    %751 = arith.truncf %711 : vector<2x32xf32> to vector<2x32xbf16>
    %c0_240 = arith.constant 0 : index
    %c0_241 = arith.constant 0 : index
    %752 = vector.load %arg4[%c0_240, %c0_241] : memref<32x128xbf16, #tpu.memory_space<vmem>>, vector<32x128xbf16>
    %cst_242 = arith.constant dense<0.000000e+00> : vector<2x128xf32>
    %753 = tpu.matmul %751, %752, %cst_242 {dimension_numbers = #tpu.dot_dimension_numbers<[1], [0], [0], [1], [0, 0, 1, 1], [], []>} : vector<2x32xbf16>, vector<32x128xbf16>, vector<2x128xf32> -> vector<2x128xf32>
    %754 = arith.addf %750, %753 : vector<2x128xf32>
    %755 = vector.extract_strided_slice %754 {offsets = [0, 0], sizes = [2, 32], strides = [1, 1]} : vector<2x128xf32> to vector<2x32xf32>
    %756 = arith.negf %755 : vector<2x32xf32>
    %757 = math.exp %756 : vector<2x32xf32>
    %cst_243 = arith.constant 1.000000e+00 : f32
    %758 = vector.broadcast %cst_243 : f32 to vector<2x32xf32>
    %759 = arith.addf %758, %757 : vector<2x32xf32>
    %760 = arith.divf %758, %759 : vector<2x32xf32>
    %761 = vector.extract_strided_slice %754 {offsets = [0, 32], sizes = [2, 32], strides = [1, 1]} : vector<2x128xf32> to vector<2x32xf32>
    %762 = arith.negf %761 : vector<2x32xf32>
    %763 = math.exp %762 : vector<2x32xf32>
    %cst_244 = arith.constant 1.000000e+00 : f32
    %764 = vector.broadcast %cst_244 : f32 to vector<2x32xf32>
    %765 = arith.addf %764, %763 : vector<2x32xf32>
    %766 = arith.divf %764, %765 : vector<2x32xf32>
    %767 = vector.extract_strided_slice %754 {offsets = [0, 64], sizes = [2, 32], strides = [1, 1]} : vector<2x128xf32> to vector<2x32xf32>
    %768 = math.tanh %767 : vector<2x32xf32>
    %769 = vector.extract_strided_slice %754 {offsets = [0, 96], sizes = [2, 32], strides = [1, 1]} : vector<2x128xf32> to vector<2x32xf32>
    %770 = arith.negf %769 : vector<2x32xf32>
    %771 = math.exp %770 : vector<2x32xf32>
    %cst_245 = arith.constant 1.000000e+00 : f32
    %772 = vector.broadcast %cst_245 : f32 to vector<2x32xf32>
    %773 = arith.addf %772, %771 : vector<2x32xf32>
    %774 = arith.divf %772, %773 : vector<2x32xf32>
    %775 = arith.mulf %766, %709 : vector<2x32xf32>
    %776 = arith.mulf %760, %768 : vector<2x32xf32>
    %777 = arith.addf %775, %776 : vector<2x32xf32>
    %778 = math.tanh %777 : vector<2x32xf32>
    %779 = arith.mulf %774, %778 : vector<2x32xf32>
    %c0_246 = arith.constant 0 : index
    %c0_247 = arith.constant 0 : index
    %780 = vector.load %arg7[%c0_246, %c0_247] : memref<32x128xf32, #tpu.memory_space<vmem>>, vector<32x128xf32>
    %cst_248 = arith.constant dense<0.000000e+00> : vector<2x128xf32>
    %781 = tpu.matmul %779, %780, %cst_248 {dimension_numbers = #tpu.dot_dimension_numbers<[1], [0], [0], [1], [0, 0, 1, 1], [], []>} : vector<2x32xf32>, vector<32x128xf32>, vector<2x128xf32> -> vector<2x128xf32>
    %c0_249 = arith.constant 0 : index
    %c0_250 = arith.constant 0 : index
    %782 = vector.load %arg8[%c0_249, %c0_250] : memref<1x128xf32, #tpu.memory_space<vmem>>, vector<1x128xf32>
    %783 = vector.broadcast %782 : vector<1x128xf32> to vector<2x128xf32>
    %784 = arith.addf %781, %783 : vector<2x128xf32>
    %785 = arith.index_cast %c6_i32_231 : i32 to index
    %c0_251 = arith.constant 0 : index
    %c0_252 = arith.constant 0 : index
    %786 = vector.load %arg9[%785, %c0_251, %c0_252] : memref<7x2x128xf32, #tpu.memory_space<vmem>>, vector<1x2x128xf32>
    %787 = vector.shape_cast %786 : vector<1x2x128xf32> to vector<2x128xf32>
    %788 = vector.shape_cast %784 : vector<2x128xf32> to vector<1x2x128xf32>
    tpu.vector_store %arg9[%785, %c0_251, %c0_252], %788 {strides = array<i32>} : memref<7x2x128xf32, #tpu.memory_space<vmem>>, vector<1x2x128xf32>,
    %cst_253 = arith.constant dense<0xFF800000> : vector<2xf32>
    %789 = vector.multi_reduction <maximumf>, %784, %cst_253 [1] : vector<2x128xf32> to vector<2xf32>
    %790 = vector.shape_cast %789 : vector<2xf32> to vector<2x1xf32>
    %791 = vector.broadcast %790 : vector<2x1xf32> to vector<2x128xf32>
    %792 = arith.cmpf oeq, %784, %791 : vector<2x128xf32>
    %cst_254 = arith.constant 1.280000e+02 : f32
    %793 = vector.broadcast %cst_254 : f32 to vector<2x128xf32>
    %794 = arith.select %792, %323, %793 : vector<2x128xi1>, vector<2x128xf32>
    %cst_255 = arith.constant dense<0x7F800000> : vector<2xf32>
    %795 = vector.multi_reduction <minimumf>, %794, %cst_255 [1] : vector<2x128xf32> to vector<2xf32>
    %796 = vector.shape_cast %795 : vector<2xf32> to vector<2x1xf32>
    %797 = vector.broadcast %796 : vector<2x1xf32> to vector<2x128xf32>
    %798 = arith.cmpf oeq, %323, %797 : vector<2x128xf32>
    %799 = arith.extui %798 : vector<2x128xi1> to vector<2x128xi32>
    %800 = arith.sitofp %799 : vector<2x128xi32> to vector<2x128xf32>
    %c7_i32_256 = arith.constant 7 : i32
    return
  }
}

</mosaic_0001>

<bundles_post_ra>
// kernel: seq2seq_forward.1
= control target key start
LH: loop header
LB: loop body
LE: loop exit
PB: predicated region body
PF: predicated region fallthrough
CT: control target
= control target key end

     0   :  { %14 = vsyncpa [#allocation3], 0  ;;  %s4686_s0 = inlined_call_operand.vmem [shape: s32[7], index: 0, kind: input, shape index: {}]   ;;  %s4687_s1 = inlined_call_operand.vmem [shape: f32[10,2,128], index: 1, kind: input, shape index: {}]   ;;  %s4688_s2 = inlined_call_operand.vmem [shape: f32[7,2,128], index: 2, kind: input, shape index: {}]   ;;  %s4689_s3 = inlined_call_operand.vmem [shape: bf16[32,128], index: 3, kind: input, shape index: {}]   ;;  %s4690_s4 = inlined_call_operand.vmem [shape: bf16[32,128], index: 4, kind: input, shape index: {}]   ;;  %s4691_s5 = inlined_call_operand.vmem [shape: f32[1,128], index: 5, kind: input, shape index: {}]   ;;  %s4692_s6 = inlined_call_operand.vmem [shape: bf16[128,128], index: 6, kind: input, shape index: {}]   ;;  %s4693_s7 = inlined_call_operand.vmem [shape: f32[32,128], index: 7, kind: input, shape index: {}]   ;;  %s4694_s8 = inlined_call_operand.vmem [shape: f32[1,128], index: 8, kind: input, shape index: {}]   ;;  %s4695_s9 = inlined_call_operand.vmem [shape: f32[7,2,128], index: 9, kind: output, shape index: {}]  }
   0x1   :  { %s21_s11 = sshll.u32 %s4686_s0, 4  ;;  %s22_s11 = int_to_ptr.vmem [resolvable:$true] %s21_s11 }
   0x2   :  { %s3894_s12 = scalar_lea.vmem %s22_s11, 16  ;;  %p3899_p1 = scmp.lt.s32.totalorder %s22_s11, %s22_s11 }
   0x3   :  { %p3895_p0 = scmp.ne.s32.totalorder %s22_s11, %s3894_s12  ;;  %p3900_p2 = scmp.lt.s32.totalorder %s3894_s12, %s3894_s12 }
   0x5   :  { %p3901_p3 = por %p3900_p2, %p3899_p1 }
   0x7   :  { %p3902_p4 = pnand %p3901_p3, %p3895_p0 }
   0x9   :  { %3905 = shalt.err (!%p3902_p4)
}
   0xa   :  { %s3908_s13 = smov [#allocation2]  }
   0xb   :  { %24 = dma.vmem_to_smem %s22_s11, 16, %s3908_s13, [#allocation3]  }
   0xc   :  { %3906 = dma.done.wait [#allocation3], 16  }
   0xd   :  { %3907 = vsyncadd [#allocation3], 4294967280 }
   0xe   :  { %44 = sfence }
   0xf   :  { %v3972_v0 = vld [vmem:[%s4689_s3] sm:$0xff]   ;;  %v3909_v1 = vmov 0.0   ;;  %v3980_v2 = vld [vmem:[%s4689_s3 + $0x8] sm:$0xff]   ;;  %vm3910_vm0 = vmmov 0   ;;  %v3911_v3 = vmov 0   ;;  %s3912_s18 = smov 64  }
  0x10   :  { %3283 = vmatprep.subr.bf16.mxu1 %v3909_v1  ;;  %3299 = vmatprep.subr.bf16.mxu0 %v3909_v1  ;;  %v46_v4 = vld [vmem:[%s4687_s1] sm:$0x3]  ;;  %s3913_s19 = smov 32   ;;  %vm63_vm1 = vcmask 261120   ;;  %v2966_v25 = vld [vmem:[%s4687_s1 + $0x2] sm:$0x3] }
  0x11   :  { %3284 = vmatpush3.bf16.msra.mxu1 %v3972_v0  ;;  %3287 = vmatprep.mubr.msk.bf16.mxu1 %vm3910_vm0, %v3909_v1  ;;  %v2969_v46 = vld [vmem:[%s4687_s1 + $0x4] sm:$0x3]  ;;  %s801_s15 = sld [smem:[#allocation2]]  ;;  %vm1097_vm2 = vcmask 1041408   ;;  %s3008_s10 = sld [smem:[#allocation2 + $0x1]] }
  0x12   :  { %3285 = vmatprep.subr.bf16.mxu1 %v3909_v1  ;;  %3300 = vmatpush3.bf16.msra.mxu0 %v3972_v0  ;;  %s3050_s17 = sld [smem:[#allocation2 + $0x3]]  ;;  %s3071_s24 = sld [smem:[#allocation2 + $0x4]] }
  0x13   :  { %3301 = vmatprep.subr.bf16.mxu0 %v3909_v1  ;;  %3303 = vmatprep.mubr.msk.bf16.mxu0 %vm3910_vm0, %v3909_v1  ;;  %s3092_s29 = sld [smem:[#allocation2 + $0x5]] }
  0x15   :  { %3286 = vmatpush3.bf16.msra.mxu1 %v3980_v2 }
  0x16   :  { %3291 = vmatprep.subr.bf16.mxu1 %v3909_v1  ;;  %3302 = vmatpush3.bf16.msra.mxu0 %v3980_v2 }
  0x17   :  { %3315 = vmatprep.subr.bf16.mxu0 %v3909_v1  ;;  %s802_s0 = scvt.s32.f32 %s801_s15  ;;  %s1108_s11 = scvt.s32.f32 %s3008_s10 }
  0x18   :  { %3288 = vmatmul.mubr.bf16.vlgmr.msra.gmra.mrb[0].mxu1 %v3911_v3  ;;  %s3029_s15 = sld [smem:[#allocation2 + $0x2]]  ;;  %s1728_s20 = scvt.s32.f32 %s3050_s17 }
  0x19   :  { %3292 = vmatpush3.bf16.msra.mxu1 %v3972_v0  ;;  %3295 = vmatprep.mubr.msk.bf16.mxu1 %vm3910_vm0, %v3909_v1  ;;  %s1220_s12 = ssub.f32 1.0, %s1108_s11  ;;  %s2038_s25 = scvt.s32.f32 %s3071_s24 }
  0x1a   :  { %3293 = vmatprep.subr.bf16.mxu1 %v3909_v1  ;;  %s1840_s21 = ssub.f32 1.0, %s1728_s20  ;;  %s2348_s30 = scvt.s32.f32 %s3092_s29 }
  0x1b   :  { %s2150_s26 = ssub.f32 1.0, %s2038_s25 }
  0x1c   :  { %s2460_s10 = ssub.f32 1.0, %s2348_s30 }
  0x1d   :  { %3294 = vmatpush3.bf16.msra.mxu1 %v3980_v2 }
  0x1e   :  { %3307 = vmatprep.subr.bf16.mxu1 %v3909_v1 }
  0xeb   :  { %v101_v5 = vpop.f32.mrb[0].mxu1 }
  0xec   :  { %v107_v6 = vadd.f32 %v101_v5, %v46_v4  ;;  %v3289_v7 = vpop.f32.mrb[1].mxu1 }
  0xed   :  { %v104_v8 = vpop.f32.mrb[2].mxu1  ;;  %v2972_v7 = vld [vmem:[%s4687_s1 + $0x6] sm:$0x3] }
  0xee   :  { %3758 = vtanh.f32 %v107_v6  ;;  %v3290_v9 = vpop.f32.mrb[3].mxu1  ;;  %v2965_v11 = vmul.f32 -1.442695, %v107_v6 }
  0xf0   :  { %3760 = vpow2.f32 %v2965_v11 }
  0xf8   :  { %v3759_v10 = vpop.eup %3758 }
  0xf9   :  { %117 = vrot.lane.b32.xlu0 %v3759_v10, %s3912_s18 }
  0xfa   :  { %v3761_v12 = vpop.eup %3760 }
  0xfb   :  { %v111_v13 = vadd.f32 1.0, %v3761_v12 }
  0xfd   :  { %3762 = vrcp.f32 %v111_v13 }
 0x107   :  { %v3763_v14 = vpop.eup %3762 }
 0x108   :  { %v115_v17 = vmul.f32 0.0, %v3763_v14 }
 0x16b   :  { %v118_v15 = vpop.permute.xlu0 %117 }
 0x16c   :  { %v120_v16 = vmul.f32 %v3763_v14, %v118_v15 }
 0x16e   :  { %122 = vrot.lane.b32.xlu0 %v120_v16, %s3913_s19 }
 0x1e0   :  { %v123_v18 = vpop.permute.xlu0 %122 }
 0x1e1   :  { %v125_v19 = vadd.f32 %v123_v18, %v115_v17 }
 0x1e3   :  { %3764 = vtanh.f32 %v125_v19 }
 0x1ed   :  { %v3765_v20 = vpop.eup %3764 }
 0x1ee   :  { %128 = vrot.lane.b32.xlu1 %v3765_v20, %s3912_s18 }
 0x260   :  { %v129_v21 = vpop.permute.xlu1 %128 }
 0x261   :  { %v131_v22 = vmul.f32 %v3763_v14, %v129_v21 }
 0x263   :  { %v134_v23 = vpack.c.bf16 %v131_v22, %v131_v22 }
 0x265   :  { %136 = vrot.lane.b32.xlu1 %v134_v23, %s3913_s19 }
 0x2d7   :  { %v137_v24 = vpop.permute.xlu1 %136 }
 0x2d8   :  { %3296 = vmatmul.mubr.msk.bf16.vlgmr.msra.gmra.mrb[4].mxu1 %vm63_vm1, %v137_v24 }
 0x2d9   :  { %3308 = vmatpush3.bf16.msra.mxu1 %v3972_v0  ;;  %3311 = vmatprep.mubr.msk.bf16.mxu1 %vm3910_vm0, %v3909_v1 }
 0x2da   :  { %3309 = vmatprep.subr.bf16.mxu1 %v3909_v1 }
 0x2dd   :  { %3310 = vmatpush3.bf16.msra.mxu1 %v3980_v2 }
 0x2de   :  { %3323 = vmatprep.subr.bf16.mxu1 %v3909_v1 }
 0x3ab   :  { %v175_v26 = vpop.f32.mrb[4].mxu1 }
 0x3ac   :  { %v181_v27 = vadd.f32 %v2966_v25, %v175_v26  ;;  %v3297_v28 = vpop.f32.mrb[5].mxu1 }
 0x3ad   :  { %v178_v29 = vpop.f32.mrb[6].mxu1  ;;  %v2975_v28 = vld [vmem:[%s4687_s1 + $0x8] sm:$0x3] }
 0x3ae   :  { %3766 = vtanh.f32 %v181_v27  ;;  %v3298_v30 = vpop.f32.mrb[7].mxu1  ;;  %v2968_v32 = vmul.f32 -1.442695, %v181_v27 }
 0x3b0   :  { %3768 = vpow2.f32 %v2968_v32 }
 0x3b8   :  { %v3767_v31 = vpop.eup %3766 }
 0x3b9   :  { %191 = vrot.lane.b32.xlu0 %v3767_v31, %s3912_s18 }
 0x3ba   :  { %v3769_v33 = vpop.eup %3768 }
 0x3bb   :  { %v185_v34 = vadd.f32 1.0, %v3769_v33 }
 0x3bd   :  { %3770 = vrcp.f32 %v185_v34 }
 0x3c7   :  { %v3771_v35 = vpop.eup %3770 }
 0x3c8   :  { %v189_v38 = vmul.f32 %v3771_v35, %v125_v19 }
 0x42b   :  { %v192_v36 = vpop.permute.xlu0 %191 }
 0x42c   :  { %v194_v37 = vmul.f32 %v3771_v35, %v192_v36 }
 0x42e   :  { %196 = vrot.lane.b32.xlu1 %v194_v37, %s3913_s19 }
 0x4a0   :  { %v197_v39 = vpop.permute.xlu1 %196 }
 0x4a1   :  { %v199_v40 = vadd.f32 %v197_v39, %v189_v38 }
 0x4a3   :  { %3772 = vtanh.f32 %v199_v40 }
 0x4ad   :  { %v3773_v41 = vpop.eup %3772 }
 0x4ae   :  { %202 = vrot.lane.b32.xlu0 %v3773_v41, %s3912_s18 }
 0x520   :  { %v203_v42 = vpop.permute.xlu0 %202 }
 0x521   :  { %v205_v43 = vmul.f32 %v3771_v35, %v203_v42 }
 0x523   :  { %v208_v44 = vpack.c.bf16 %v205_v43, %v205_v43 }
 0x525   :  { %210 = vrot.lane.b32.xlu1 %v208_v44, %s3913_s19 }
 0x597   :  { %v211_v45 = vpop.permute.xlu1 %210 }
 0x598   :  { %3304 = vmatmul.mubr.msk.bf16.vlgmr.msra.gmra.mrb[0].mxu0 %vm63_vm1, %v211_v45 }
 0x599   :  { %3316 = vmatpush3.bf16.msra.mxu0 %v3972_v0  ;;  %3319 = vmatprep.mubr.msk.bf16.mxu0 %vm3910_vm0, %v3909_v1 }
 0x59a   :  { %3317 = vmatprep.subr.bf16.mxu0 %v3909_v1 }
 0x59d   :  { %3318 = vmatpush3.bf16.msra.mxu0 %v3980_v2 }
 0x59e   :  { %3331 = vmatprep.subr.bf16.mxu0 %v3909_v1 }
 0x66b   :  { %v249_v47 = vpop.f32.mrb[0].mxu0 }
 0x66c   :  { %v255_v48 = vadd.f32 %v2969_v46, %v249_v47  ;;  %v3305_v49 = vpop.f32.mrb[1].mxu0 }
 0x66d   :  { %v252_v50 = vpop.f32.mrb[2].mxu0  ;;  %v2978_v49 = vld [vmem:[%s4687_s1 + $0xa] sm:$0x3] }
 0x66e   :  { %3774 = vtanh.f32 %v255_v48  ;;  %v3306_v51 = vpop.f32.mrb[3].mxu0  ;;  %v2971_v53 = vmul.f32 -1.442695, %v255_v48 }
 0x670   :  { %3776 = vpow2.f32 %v2971_v53 }
 0x678   :  { %v3775_v52 = vpop.eup %3774 }
 0x679   :  { %265 = vrot.lane.b32.xlu0 %v3775_v52, %s3912_s18 }
 0x67a   :  { %v3777_v54 = vpop.eup %3776 }
 0x67b   :  { %v259_v55 = vadd.f32 1.0, %v3777_v54 }
 0x67d   :  { %3778 = vrcp.f32 %v259_v55 }
 0x687   :  { %v3779_v56 = vpop.eup %3778 }
 0x688   :  { %v263_v59 = vmul.f32 %v3779_v56, %v199_v40 }
 0x6eb   :  { %v266_v57 = vpop.permute.xlu0 %265 }
 0x6ec   :  { %v268_v58 = vmul.f32 %v3779_v56, %v266_v57 }
 0x6ee   :  { %270 = vrot.lane.b32.xlu1 %v268_v58, %s3913_s19 }
 0x760   :  { %v271_v60 = vpop.permute.xlu1 %270 }
 0x761   :  { %v273_v61 = vadd.f32 %v271_v60, %v263_v59 }
 0x763   :  { %3780 = vtanh.f32 %v273_v61 }
 0x76d   :  { %v3781_v62 = vpop.eup %3780 }
 0x76e   :  { %276 = vrot.lane.b32.xlu0 %v3781_v62, %s3912_s18 }
 0x7e0   :  { %v277_v63 = vpop.permute.xlu0 %276 }
 0x7e1   :  { %v279_v4 = vmul.f32 %v3779_v56, %v277_v63 }
 0x7e3   :  { %v282_v5 = vpack.c.bf16 %v279_v4, %v279_v4 }
 0x7e5   :  { %284 = vrot.lane.b32.xlu1 %v282_v5, %s3913_s19 }
 0x857   :  { %v285_v6 = vpop.permute.xlu1 %284 }
 0x858   :  { %3312 = vmatmul.mubr.msk.bf16.vlgmr.msra.gmra.mrb[8].mxu1 %vm63_vm1, %v285_v6 }
 0x859   :  { %3324 = vmatpush3.bf16.msra.mxu1 %v3972_v0  ;;  %3327 = vmatprep.mubr.msk.bf16.mxu1 %vm3910_vm0, %v3909_v1 }
 0x85a   :  { %3325 = vmatprep.subr.bf16.mxu1 %v3909_v1 }
 0x85d   :  { %3326 = vmatpush3.bf16.msra.mxu1 %v3980_v2 }
 0x85e   :  { %3339 = vmatprep.subr.bf16.mxu1 %v3909_v1 }
 0x92b   :  { %v323_v8 = vpop.f32.mrb[8].mxu1 }
 0x92c   :  { %v329_v9 = vadd.f32 %v2972_v7, %v323_v8  ;;  %v3313_v10 = vpop.f32.mrb[9].mxu1 }
 0x92d   :  { %v326_v11 = vpop.f32.mrb[10].mxu1  ;;  %v2981_v10 = vld [vmem:[%s4687_s1 + $0xc] sm:$0x3] }
 0x92e   :  { %3782 = vtanh.f32 %v329_v9  ;;  %v3314_v12 = vpop.f32.mrb[11].mxu1  ;;  %v2974_v14 = vmul.f32 -1.442695, %v329_v9 }
 0x930   :  { %3784 = vpow2.f32 %v2974_v14 }
 0x938   :  { %v3783_v13 = vpop.eup %3782 }
 0x939   :  { %339 = vrot.lane.b32.xlu0 %v3783_v13, %s3912_s18 }
 0x93a   :  { %v3785_v15 = vpop.eup %3784 }
 0x93b   :  { %v333_v16 = vadd.f32 1.0, %v3785_v15 }
 0x93d   :  { %3786 = vrcp.f32 %v333_v16 }
 0x947   :  { %v3787_v17 = vpop.eup %3786 }
 0x948   :  { %v337_v20 = vmul.f32 %v3787_v17, %v273_v61 }
 0x9ab   :  { %v340_v18 = vpop.permute.xlu0 %339 }
 0x9ac   :  { %v342_v19 = vmul.f32 %v3787_v17, %v340_v18 }
 0x9ae   :  { %344 = vrot.lane.b32.xlu1 %v342_v19, %s3913_s19 }
 0xa20   :  { %v345_v21 = vpop.permute.xlu1 %344 }
 0xa21   :  { %v347_v22 = vadd.f32 %v345_v21, %v337_v20 }
 0xa23   :  { %3788 = vtanh.f32 %v347_v22 }
 0xa2d   :  { %v3789_v23 = vpop.eup %3788 }
 0xa2e   :  { %350 = vrot.lane.b32.xlu0 %v3789_v23, %s3912_s18 }
 0xaa0   :  { %v351_v24 = vpop.permute.xlu0 %350 }
 0xaa1   :  { %v353_v25 = vmul.f32 %v3787_v17, %v351_v24 }
 0xaa3   :  { %v356_v26 = vpack.c.bf16 %v353_v25, %v353_v25 }
 0xaa5   :  { %358 = vrot.lane.b32.xlu1 %v356_v26, %s3913_s19 }
 0xb17   :  { %v359_v27 = vpop.permute.xlu1 %358 }
 0xb18   :  { %3320 = vmatmul.mubr.msk.bf16.vlgmr.msra.gmra.mrb[4].mxu0 %vm63_vm1, %v359_v27 }
 0xb19   :  { %3332 = vmatpush3.bf16.msra.mxu0 %v3972_v0  ;;  %3335 = vmatprep.mubr.msk.bf16.mxu0 %vm3910_vm0, %v3909_v1 }
 0xb1a   :  { %3333 = vmatprep.subr.bf16.mxu0 %v3909_v1 }
 0xb1d   :  { %3334 = vmatpush3.bf16.msra.mxu0 %v3980_v2 }
 0xb1e   :  { %3347 = vmatprep.subr.bf16.mxu0 %v3909_v1 }
 0xbeb   :  { %v397_v29 = vpop.f32.mrb[4].mxu0 }
 0xbec   :  { %v403_v30 = vadd.f32 %v2975_v28, %v397_v29  ;;  %v3321_v31 = vpop.f32.mrb[5].mxu0 }
 0xbed   :  { %v400_v32 = vpop.f32.mrb[6].mxu0  ;;  %v2984_v31 = vld [vmem:[%s4687_s1 + $0xe] sm:$0x3] }
 0xbee   :  { %3790 = vtanh.f32 %v403_v30  ;;  %v3322_v33 = vpop.f32.mrb[7].mxu0  ;;  %v2977_v35 = vmul.f32 -1.442695, %v403_v30 }
 0xbf0   :  { %3792 = vpow2.f32 %v2977_v35 }
 0xbf8   :  { %v3791_v34 = vpop.eup %3790 }
 0xbf9   :  { %413 = vrot.lane.b32.xlu0 %v3791_v34, %s3912_s18 }
 0xbfa   :  { %v3793_v36 = vpop.eup %3792 }
 0xbfb   :  { %v407_v37 = vadd.f32 1.0, %v3793_v36 }
 0xbfd   :  { %3794 = vrcp.f32 %v407_v37 }
 0xc07   :  { %v3795_v38 = vpop.eup %3794 }
 0xc08   :  { %v411_v41 = vmul.f32 %v3795_v38, %v347_v22 }
 0xc6b   :  { %v414_v39 = vpop.permute.xlu0 %413 }
 0xc6c   :  { %v416_v40 = vmul.f32 %v3795_v38, %v414_v39 }
 0xc6e   :  { %418 = vrot.lane.b32.xlu1 %v416_v40, %s3913_s19 }
 0xce0   :  { %v419_v42 = vpop.permute.xlu1 %418 }
 0xce1   :  { %v421_v43 = vadd.f32 %v419_v42, %v411_v41 }
 0xce3   :  { %3796 = vtanh.f32 %v421_v43 }
 0xced   :  { %v3797_v44 = vpop.eup %3796 }
 0xcee   :  { %424 = vrot.lane.b32.xlu0 %v3797_v44, %s3912_s18 }
 0xd60   :  { %v425_v45 = vpop.permute.xlu0 %424 }
 0xd61   :  { %v427_v46 = vmul.f32 %v3795_v38, %v425_v45 }
 0xd63   :  { %v430_v47 = vpack.c.bf16 %v427_v46, %v427_v46 }
 0xd65   :  { %432 = vrot.lane.b32.xlu1 %v430_v47, %s3913_s19 }
 0xdd7   :  { %v433_v48 = vpop.permute.xlu1 %432 }
 0xdd8   :  { %3328 = vmatmul.mubr.msk.bf16.vlgmr.msra.gmra.mrb[12].mxu1 %vm63_vm1, %v433_v48 }
 0xdd9   :  { %3340 = vmatpush3.bf16.msra.mxu1 %v3972_v0  ;;  %3343 = vmatprep.mubr.msk.bf16.mxu1 %vm3910_vm0, %v3909_v1 }
 0xdda   :  { %3341 = vmatprep.subr.bf16.mxu1 %v3909_v1 }
 0xddd   :  { %3342 = vmatpush3.bf16.msra.mxu1 %v3980_v2 }
 0xdde   :  { %3355 = vmatprep.subr.bf16.mxu1 %v3909_v1 }
 0xeab   :  { %v471_v50 = vpop.f32.mrb[12].mxu1 }
 0xeac   :  { %v477_v51 = vadd.f32 %v2978_v49, %v471_v50  ;;  %v3329_v52 = vpop.f32.mrb[13].mxu1  ;;  %v2987_v50 = vld [vmem:[%s4687_s1 + $0x10] sm:$0x3] }
 0xead   :  { %v474_v53 = vpop.f32.mrb[14].mxu1 }
 0xeae   :  { %3798 = vtanh.f32 %v477_v51  ;;  %v3330_v54 = vpop.f32.mrb[15].mxu1  ;;  %v2980_v56 = vmul.f32 -1.442695, %v477_v51 }
 0xeb0   :  { %3800 = vpow2.f32 %v2980_v56 }
 0xeb8   :  { %v3799_v55 = vpop.eup %3798 }
 0xeb9   :  { %487 = vrot.lane.b32.xlu0 %v3799_v55, %s3912_s18 }
 0xeba   :  { %v3801_v57 = vpop.eup %3800 }
 0xebb   :  { %v481_v58 = vadd.f32 1.0, %v3801_v57 }
 0xebd   :  { %3802 = vrcp.f32 %v481_v58 }
 0xec7   :  { %v3803_v59 = vpop.eup %3802 }
 0xec8   :  { %v485_v62 = vmul.f32 %v3803_v59, %v421_v43 }
 0xf2b   :  { %v488_v60 = vpop.permute.xlu0 %487 }
 0xf2c   :  { %v490_v61 = vmul.f32 %v3803_v59, %v488_v60 }
 0xf2e   :  { %492 = vrot.lane.b32.xlu1 %v490_v61, %s3913_s19 }
 0xfa0   :  { %v493_v63 = vpop.permute.xlu1 %492 }
 0xfa1   :  { %v495_v4 = vadd.f32 %v493_v63, %v485_v62 }
 0xfa3   :  { %3804 = vtanh.f32 %v495_v4 }
 0xfad   :  { %v3805_v5 = vpop.eup %3804 }
 0xfae   :  { %498 = vrot.lane.b32.xlu0 %v3805_v5, %s3912_s18 }
0x1020   :  { %v499_v6 = vpop.permute.xlu0 %498 }
0x1021   :  { %v501_v7 = vmul.f32 %v3803_v59, %v499_v6 }
0x1023   :  { %v504_v8 = vpack.c.bf16 %v501_v7, %v501_v7 }
0x1025   :  { %506 = vrot.lane.b32.xlu1 %v504_v8, %s3913_s19 }
0x1097   :  { %v507_v9 = vpop.permute.xlu1 %506 }
0x1098   :  { %3336 = vmatmul.mubr.msk.bf16.vlgmr.msra.gmra.mrb[8].mxu0 %vm63_vm1, %v507_v9 }
0x1099   :  { %3348 = vmatpush3.bf16.msra.mxu0 %v3972_v0  ;;  %3351 = vmatprep.mubr.msk.bf16.mxu0 %vm3910_vm0, %v3909_v1 }
0x109a   :  { %3349 = vmatprep.subr.bf16.mxu0 %v3909_v1 }
0x109d   :  { %3350 = vmatpush3.bf16.msra.mxu0 %v3980_v2 }
0x109e   :  { %3363 = vmatprep.subr.bf16.mxu0 %v3909_v1 }
0x116b   :  { %v545_v11 = vpop.f32.mrb[8].mxu0 }
0x116c   :  { %v551_v12 = vadd.f32 %v2981_v10, %v545_v11  ;;  %v3337_v13 = vpop.f32.mrb[9].mxu0  ;;  %v2990_v11 = vld [vmem:[%s4687_s1 + $0x12] sm:$0x3]  ;;  %s910_s1 = ssub.f32 1.0, %s802_s0 }
0x116d   :  { %v548_v14 = vpop.f32.mrb[10].mxu0 }
0x116e   :  { %3806 = vtanh.f32 %v551_v12  ;;  %v3338_v15 = vpop.f32.mrb[11].mxu0  ;;  %v2983_v17 = vmul.f32 -1.442695, %v551_v12 }
0x1170   :  { %3808 = vpow2.f32 %v2983_v17 }
0x1178   :  { %v3807_v16 = vpop.eup %3806 }
0x1179   :  { %561 = vrot.lane.b32.xlu0 %v3807_v16, %s3912_s18 }
0x117a   :  { %v3809_v18 = vpop.eup %3808 }
0x117b   :  { %v555_v19 = vadd.f32 1.0, %v3809_v18 }
0x117d   :  { %3810 = vrcp.f32 %v555_v19 }
0x1187   :  { %v3811_v20 = vpop.eup %3810 }
0x1188   :  { %v559_v23 = vmul.f32 %v3811_v20, %v495_v4 }
0x11eb   :  { %v562_v21 = vpop.permute.xlu0 %561 }
0x11ec   :  { %v564_v22 = vmul.f32 %v3811_v20, %v562_v21 }
0x11ee   :  { %566 = vrot.lane.b32.xlu1 %v564_v22, %s3913_s19 }
0x1260   :  { %v567_v24 = vpop.permute.xlu1 %566 }
0x1261   :  { %v569_v25 = vadd.f32 %v567_v24, %v559_v23 }
0x1263   :  { %3812 = vtanh.f32 %v569_v25 }
0x126d   :  { %v3813_v26 = vpop.eup %3812 }
0x126e   :  { %572 = vrot.lane.b32.xlu0 %v3813_v26, %s3912_s18 }
0x12e0   :  { %v573_v27 = vpop.permute.xlu0 %572 }
0x12e1   :  { %v575_v28 = vmul.f32 %v3811_v20, %v573_v27  ;;  %v3688_v27 = vld [vmem:[%s4692_s6] sm:$0xff]  }
0x12e3   :  { %v578_v29 = vpack.c.bf16 %v575_v28, %v575_v28  ;;  %v3689_v28 = vld [vmem:[%s4692_s6 + $0x8] sm:$0xff]  }
0x12e5   :  { %580 = vrot.lane.b32.xlu1 %v578_v29, %s3913_s19  ;;  %v3696_v29 = vld [vmem:[%s4690_s4] sm:$0xff]  }
0x1357   :  { %v581_v30 = vpop.permute.xlu1 %580 }
0x1358   :  { %3344 = vmatmul.mubr.msk.bf16.vlgmr.msra.gmra.mrb[16].mxu1 %vm63_vm1, %v581_v30  ;;  %v3697_v30 = vld [vmem:[%s4690_s4 + $0x8] sm:$0xff]  }
0x1359   :  { %3356 = vmatpush3.bf16.msra.mxu1 %v3972_v0  ;;  %3359 = vmatprep.mubr.msk.bf16.mxu1 %vm3910_vm0, %v3909_v1 }
0x135a   :  { %3357 = vmatprep.subr.bf16.mxu1 %v3909_v1 }
0x135d   :  { %3358 = vmatpush3.bf16.msra.mxu1 %v3980_v2 }
0x135e   :  { %3383 = vmatprep.subr.bf16.mxu1 %v3909_v1 }
0x142b   :  { %v619_v32 = vpop.f32.mrb[16].mxu1 }
0x142c   :  { %v625_v33 = vadd.f32 %v2984_v31, %v619_v32  ;;  %v3345_v34 = vpop.f32.mrb[17].mxu1  ;;  %v3690_v31 = vld [vmem:[%s4692_s6 + $0x10] sm:$0xff]  }
0x142d   :  { %v622_v35 = vpop.f32.mrb[18].mxu1  ;;  %v3692_v34 = vld [vmem:[%s4692_s6 + $0x20] sm:$0xff]  }
0x142e   :  { %3814 = vtanh.f32 %v625_v33  ;;  %v3346_v36 = vpop.f32.mrb[19].mxu1  ;;  %v2986_v37 = vmul.f32 -1.442695, %v625_v33  ;;  %v3691_v33 = vld [vmem:[%s4692_s6 + $0x18] sm:$0xff]   ;;  %v3693_v35 = vld [vmem:[%s4692_s6 + $0x28] sm:$0xff]  }
0x142f   :  { %v3694_v36 = vld [vmem:[%s4692_s6 + $0x30] sm:$0xff]  }
0x1430   :  { %3816 = vpow2.f32 %v2986_v37 }
0x1438   :  { %v3815_v0 = vpop.eup %3814 }
0x1439   :  { %635 = vrot.lane.b32.xlu0 %v3815_v0, %s3912_s18  ;;  %v3695_v0 = vld [vmem:[%s4692_s6 + $0x38] sm:$0xff]  }
0x143a   :  { %v3817_v38 = vpop.eup %3816 }
0x143b   :  { %v629_v39 = vadd.f32 1.0, %v3817_v38 }
0x143d   :  { %3818 = vrcp.f32 %v629_v39 }
0x1447   :  { %v3819_v2 = vpop.eup %3818 }
0x1448   :  { %v633_v42 = vmul.f32 %v3819_v2, %v569_v25 }
0x14ab   :  { %v636_v40 = vpop.permute.xlu0 %635 }
0x14ac   :  { %v638_v41 = vmul.f32 %v3819_v2, %v636_v40 }
0x14ae   :  { %640 = vrot.lane.b32.xlu1 %v638_v41, %s3913_s19 }
0x1520   :  { %v641_v43 = vpop.permute.xlu1 %640 }
0x1521   :  { %v643_v44 = vadd.f32 %v641_v43, %v633_v42 }
0x1523   :  { %3820 = vtanh.f32 %v643_v44 }
0x152d   :  { %v3821_v45 = vpop.eup %3820 }
0x152e   :  { %646 = vrot.lane.b32.xlu0 %v3821_v45, %s3912_s18  ;;  %v911_v45 = vstv %s910_s1 }
0x15a0   :  { %v647_v46 = vpop.permute.xlu0 %646 }
0x15a1   :  { %v649_v47 = vmul.f32 %v3819_v2, %v647_v46 }
0x15a3   :  { %v652_v48 = vpack.c.bf16 %v649_v47, %v649_v47 }
0x15a5   :  { %654 = vrot.lane.b32.xlu1 %v652_v48, %s3913_s19 }
0x1617   :  { %v655_v49 = vpop.permute.xlu1 %654 }
0x1618   :  { %3352 = vmatmul.mubr.msk.bf16.vlgmr.msra.gmra.mrb[12].mxu0 %vm63_vm1, %v655_v49  ;;  %v4179_v49 = vld [vmem:[%s4691_s5] ss:$0 sm:$0xff] }
0x1619   :  { %3379 = vmatprep.mubr.msk.bf16.mxu0 %vm3910_vm0, %v3909_v1  ;;  %3364 = vmatpush3.bf16.msra.mxu0 %v3688_v27  ;;  %v3702_v27 = vld [vmem:[%s4692_s6 + $0x10] sm:$0xff]  }
0x161a   :  { %3365 = vmatprep.subr.bf16.mxu0 %v3909_v1 }
0x161d   :  { %3366 = vmatpush3.bf16.msra.mxu0 %v3689_v28  ;;  %v3703_v28 = vld [vmem:[%s4692_s6 + $0x18] sm:$0xff]  }
0x161e   :  { %3367 = vmatprep.subr.bf16.mxu0 %v3909_v1 }
0x1621   :  { %3368 = vmatpush3.bf16.msra.mxu0 %v3690_v31  ;;  %v3706_v31 = vld [vmem:[%s4692_s6 + $0x30] sm:$0xff]  }
0x1622   :  { %3369 = vmatprep.subr.bf16.mxu0 %v3909_v1 }
0x1625   :  { %3370 = vmatpush3.bf16.msra.mxu0 %v3691_v33  ;;  %v798_v33 = vlaneseq }
0x1626   :  { %3371 = vmatprep.subr.bf16.mxu0 %v3909_v1 }
0x1629   :  { %3372 = vmatpush3.bf16.msra.mxu0 %v3692_v34  ;;  %v799_v34 = vand.u32 127, %v798_v33 }
0x162a   :  { %3373 = vmatprep.subr.bf16.mxu0 %v3909_v1 }
0x162d   :  { %3374 = vmatpush3.bf16.msra.mxu0 %v3693_v35  ;;  %v4265_v35 = vcvt.s32.f32 %v799_v34  ;;  %v3041_v34 = vld [vmem:[%s4688_s2 + $0x4] sm:$0x3] }
0x162e   :  { %3375 = vmatprep.subr.bf16.mxu0 %v3909_v1 }
0x1631   :  { %3376 = vmatpush3.bf16.msra.mxu0 %v3694_v36 }
0x1632   :  { %3377 = vmatprep.subr.bf16.mxu0 %v3909_v1 }
0x1635   :  { %3378 = vmatpush3.bf16.msra.mxu0 %v3695_v0 }
0x1636   :  { %3422 = vmatprep.subr.bf16.mxu0 %v3909_v1 }
0x1638   :  { %3380 = vmatmul.mubr.bf16.vlgmr.msra.gmra.mrb[16].mxu0 %v3911_v3  ;;  %v907_v3 = vld [vmem:[%s4688_s2] sm:$0x3] }
0x1639   :  { %3426 = vmatprep.mubr.msk.bf16.mxu0 %vm3910_vm0, %v3909_v1 }
0x16eb   :  { %v693_v51 = vpop.f32.mrb[12].mxu0 }
0x16ec   :  { %v699_v52 = vadd.f32 %v2987_v50, %v693_v51  ;;  %v3353_v53 = vpop.f32.mrb[13].mxu0 }
0x16ed   :  { %v696_v54 = vpop.f32.mrb[14].mxu0 }
0x16ee   :  { %3822 = vtanh.f32 %v699_v52  ;;  %v3354_v55 = vpop.f32.mrb[15].mxu0  ;;  %v2989_v57 = vmul.f32 -1.442695, %v699_v52 }
0x16f0   :  { %3824 = vpow2.f32 %v2989_v57 }
0x16f8   :  { %v3823_v56 = vpop.eup %3822 }
0x16f9   :  { %709 = vrot.lane.b32.xlu0 %v3823_v56, %s3912_s18 }
0x16fa   :  { %v3825_v58 = vpop.eup %3824 }
0x16fb   :  { %v703_v59 = vadd.f32 1.0, %v3825_v58 }
0x16fd   :  { %3826 = vrcp.f32 %v703_v59 }
0x1707   :  { %v3827_v60 = vpop.eup %3826 }
0x1708   :  { %v707_v63 = vmul.f32 %v3827_v60, %v643_v44  ;;  %v908_v44 = vstv %s802_s0  ;;  %s1418_s0 = scvt.s32.f32 %s3029_s15 }
0x1709   :  { %v909_v46 = vmul.f32 %v908_v44, %v907_v3  ;;  %v3020_v3 = vld [vmem:[%s4688_s2 + $0x2] sm:$0x3]  ;;  %v1218_v44 = vstv %s1108_s11 }
0x170a   :  { %s1530_s1 = ssub.f32 1.0, %s1418_s0 }
0x170b   :  { %v901_v40 = vpop.f32.mrb[16].mxu0 }
0x170c   :  { %v3381_v41 = vpop.f32.mrb[17].mxu0  ;;  %v912_v47 = vmul.f32 %v911_v45, %v901_v40  ;;  %v1221_v45 = vstv %s1220_s12 }
0x170d   :  { %v904_v42 = vpop.f32.mrb[18].mxu0 }
0x170e   :  { %v3382_v43 = vpop.f32.mrb[19].mxu0  ;;  %v913_v48 = vadd.f32 %v912_v47, %v909_v46  ;;  %v1219_v46 = vmul.f32 %v3020_v3, %v1218_v44 }
0x1710   :  { %v921_v50 = vadd.f32 %v4179_v49, %v913_v48 }
0x176b   :  { %v710_v61 = vpop.permute.xlu0 %709 }
0x176c   :  { %v712_v62 = vmul.f32 %v3827_v60, %v710_v61 }
0x176e   :  { %714 = vrot.lane.b32.xlu1 %v712_v62, %s3913_s19 }
0x17e0   :  { %v715_v4 = vpop.permute.xlu1 %714 }
0x17e1   :  { %v717_v5 = vadd.f32 %v715_v4, %v707_v63 }
0x17e3   :  { %3828 = vtanh.f32 %v717_v5 }
0x17ed   :  { %v3829_v6 = vpop.eup %3828 }
0x17ee   :  { %720 = vrot.lane.b32.xlu0 %v3829_v6, %s3912_s18  ;;  %v1010_v6 = vld [vmem:[%s4693_s7] sm:$0xff] }
0x1860   :  { %v721_v7 = vpop.permute.xlu0 %720 }
0x1861   :  { %v723_v8 = vmul.f32 %v3827_v60, %v721_v7  ;;  %v1011_v7 = vld [vmem:[%s4693_s7 + $0x8] sm:$0xff] }
0x1863   :  { %v726_v9 = vpack.c.bf16 %v723_v8, %v723_v8  ;;  %v1012_v8 = vld [vmem:[%s4693_s7 + $0x10] sm:$0xff] }
0x1865   :  { %728 = vrot.lane.b32.xlu1 %v726_v9, %s3913_s19  ;;  %v3914_v9 = vmov 0.0|0.0  }
0x18d7   :  { %v729_v10 = vpop.permute.xlu1 %728 }
0x18d8   :  { %3360 = vmatmul.mubr.msk.bf16.vlgmr.msra.gmra.mrb[20].mxu1 %vm63_vm1, %v729_v10  ;;  %v4198_v10 = vpack.c.bf16 %v1011_v7, %v1010_v6 }
0x18d9   :  { %3387 = vmatprep.mubr.msk.bf16.mxu1 %vm3910_vm0, %v3909_v1  ;;  %3384 = vmatpush3.bf16.msra.mxu1 %v3696_v29  ;;  %v3704_v29 = vld [vmem:[%s4692_s6 + $0x20] sm:$0xff]  }
0x18da   :  { %3385 = vmatprep.subr.bf16.mxu1 %v3909_v1 }
0x18dd   :  { %3386 = vmatpush3.bf16.msra.mxu1 %v3697_v30  ;;  %v3705_v30 = vld [vmem:[%s4692_s6 + $0x28] sm:$0xff]  }
0x18de   :  { %3636 = vmatprep.subr.bf16.mxu1 %v3914_v9 }
0x19ab   :  { %v767_v12 = vpop.f32.mrb[20].mxu1 }
0x19ac   :  { %v773_v13 = vadd.f32 %v2990_v11, %v767_v12  ;;  %v3361_v14 = vpop.f32.mrb[21].mxu1  ;;  %v1013_v11 = vld [vmem:[%s4693_s7 + $0x18] sm:$0xff] }
0x19ad   :  { %v770_v15 = vpop.f32.mrb[22].mxu1  ;;  %v4204_v12 = vpack.c.bf16 %v1013_v11, %v1012_v8 }
0x19ae   :  { %3830 = vtanh.f32 %v773_v13  ;;  %v3362_v16 = vpop.f32.mrb[23].mxu1  ;;  %v2992_v18 = vmul.f32 -1.442695, %v773_v13 }
0x19b0   :  { %3832 = vpow2.f32 %v2992_v18  ;;  %v4221_v18 = vld [vmem:[%s4694_s8] ss:$0 sm:$0xff] }
0x19b8   :  { %v3831_v17 = vpop.eup %3830 }
0x19b9   :  { %783 = vrot.lane.b32.xlu0 %v3831_v17, %s3912_s18  ;;  %v3698_v17 = vld [vmem:[%s4690_s4] sm:$0xff]  }
0x19ba   :  { %v3833_v19 = vpop.eup %3832  ;;  %3423 = vmatpush3.bf16.msra.mxu0 %v3698_v17  ;;  %v3708_v17 = vld [vmem:[%s4692_s6] sm:$0xff]  }
0x19bb   :  { %v777_v20 = vadd.f32 1.0, %v3833_v19  ;;  %3424 = vmatprep.subr.bf16.mxu0 %v3909_v1 }
0x19bd   :  { %3834 = vrcp.f32 %v777_v20 }
0x19c7   :  { %v3835_v21 = vpop.eup %3834 }
0x19c8   :  { %v781_v24 = vmul.f32 %v3835_v21, %v717_v5 }
0x1a2b   :  { %v784_v22 = vpop.permute.xlu0 %783 }
0x1a2c   :  { %v786_v23 = vmul.f32 %v3835_v21, %v784_v22 }
0x1a2e   :  { %788 = vrot.lane.b32.xlu1 %v786_v23, %s3913_s19  ;;  %v3699_v23 = vld [vmem:[%s4690_s4 + $0x8] sm:$0xff]  }
0x1a2f   :  { %3425 = vmatpush3.bf16.msra.mxu0 %v3699_v23  ;;  %v3712_v23 = vld [vmem:[%s4692_s6 + $0x20] sm:$0xff]  }
0x1a30   :  { %3642 = vmatprep.subr.bf16.mxu0 %v3914_v9 }
0x1aa0   :  { %v789_v25 = vpop.permute.xlu1 %788 }
0x1aa1   :  { %v4123_v26 = vadd.f32 %v789_v25, %v781_v24  ;;  %v3700_v24 = vld [vmem:[%s4692_s6] sm:$0xff]  }
0x1aa3   :  { %3836 = vtanh.f32 %v4123_v26 }
0x1aad   :  { %v3837_v32 = vpop.eup %3836 }
0x1aae   :  { %794 = vrot.lane.b32.xlu0 %v3837_v32, %s3912_s18  ;;  %v3707_v32 = vld [vmem:[%s4692_s6 + $0x38] sm:$0xff]  }
0x1b20   :  { %v795_v37 = vpop.permute.xlu0 %794 }
0x1b21   :  { %v797_v38 = vmul.f32 %v3835_v21, %v795_v37 }
0x1b23   :  { %v922_v39 = vpack.c.bf16 %v797_v38, %v797_v38 }
0x1b25   :  { %928 = vrot.lane.b32.xlu1 %v922_v39, %s3913_s19 }
0x1b97   :  { %v929_v2 = vpop.permute.xlu1 %928 }
0x1b98   :  { %3388 = vmatmul.mubr.msk.bf16.vlgmr.msra.gmra.mrb[24].mxu1 %vm63_vm1, %v929_v2  ;;  %v3915_v2 = vmov 1.0|1.0  }
0x1b99   :  { %3399 = vmatprep.mubr.msk.f32.mxu1 %vm3910_vm0, %v3909_v1  ;;  %3638 = vmatpush3.bf16.msra.mxu1 %v4198_v10 }
0x1b9a   :  { %3639 = vmatprep.subr.bf16.mxu1 %v3914_v9 }
0x1b9d   :  { %3641 = vmatpush3.bf16.msra.mxu1 %v4204_v12 }
0x1b9e   :  { %3402 = vmatprep.subr.bf16.mxu1 %v3909_v1 }
0x1c6b   :  { %v979_v51 = vpop.f32.mrb[24].mxu1 }
0x1c6c   :  { %v985_v52 = vadd.f32 %v979_v51, %v921_v50  ;;  %v3389_v53 = vpop.f32.mrb[25].mxu1 }
0x1c6d   :  { %v982_v54 = vpop.f32.mrb[26].mxu1 }
0x1c6e   :  { %3838 = vtanh.f32 %v985_v52  ;;  %v3390_v55 = vpop.f32.mrb[27].mxu1  ;;  %v3005_v57 = vmul.f32 -1.442695, %v985_v52 }
0x1c70   :  { %3840 = vpow2.f32 %v3005_v57 }
0x1c78   :  { %v3839_v56 = vpop.eup %3838 }
0x1c79   :  { %995 = vrot.lane.b32.xlu0 %v3839_v56, %s3912_s18 }
0x1c7a   :  { %v3841_v58 = vpop.eup %3840 }
0x1c7b   :  { %v989_v59 = vadd.f32 1.0, %v3841_v58 }
0x1c7d   :  { %3842 = vrcp.f32 %v989_v59 }
0x1c87   :  { %v3843_v60 = vpop.eup %3842 }
0x1c88   :  { %v993_v63 = vmul.f32 %v3843_v60, %v4123_v26  ;;  %v3701_v26 = vld [vmem:[%s4692_s6 + $0x8] sm:$0xff]  }
0x1ceb   :  { %v996_v61 = vpop.permute.xlu0 %995 }
0x1cec   :  { %v998_v62 = vmul.f32 %v3843_v60, %v996_v61 }
0x1cee   :  { %1000 = vrot.lane.b32.xlu1 %v998_v62, %s3913_s19 }
0x1d60   :  { %v1001_v4 = vpop.permute.xlu1 %1000 }
0x1d61   :  { %v4185_v5 = vadd.f32 %v1001_v4, %v993_v63 }
0x1d63   :  { %3844 = vtanh.f32 %v4185_v5 }
0x1d6d   :  { %v3845_v13 = vpop.eup %3844 }
0x1d6e   :  { %1006 = vrot.lane.b32.xlu0 %v3845_v13, %s3912_s18 }
0x1de0   :  { %v1007_v14 = vpop.permute.xlu0 %1006 }
0x1de1   :  { %v1009_v15 = vmul.f32 %v3843_v60, %v1007_v14 }
0x1de3   :  { %1022 = vrot.lane.b32.xlu1 %v1009_v15, %s3913_s19  ;;  %v1232_v25 = vpack.c.bf16 %v1009_v15, %v1009_v15 }
0x1e55   :  { %v1023_v16 = vpop.permute.xlu1 %1022 }
0x1e56   :  { %3400 = vmatmul.mubr.msk.f32.vlgmr.msra.gmra.mrb[28].mxu1 %vm63_vm1, %v1023_v16 }
0x1e57   :  { %3418 = vmatprep.mubr.msk.bf16.mxu1 %vm3910_vm0, %v3909_v1  ;;  %3403 = vmatpush3.bf16.msra.mxu1 %v3700_v24  ;;  %v3713_v24 = vld [vmem:[%s4692_s6 + $0x28] sm:$0xff]  }
0x1e58   :  { %3404 = vmatprep.subr.bf16.mxu1 %v3909_v1 }
0x1e5b   :  { %3405 = vmatpush3.bf16.msra.mxu1 %v3701_v26  ;;  %v3716_v26 = vld [vmem:[%s4692_s6 + $0x38] sm:$0xff]  }
0x1e5c   :  { %3406 = vmatprep.subr.bf16.mxu1 %v3909_v1 }
0x1e5f   :  { %3407 = vmatpush3.bf16.msra.mxu1 %v3702_v27 }
0x1e60   :  { %3408 = vmatprep.subr.bf16.mxu1 %v3909_v1 }
0x1e63   :  { %3409 = vmatpush3.bf16.msra.mxu1 %v3703_v28 }
0x1e64   :  { %3410 = vmatprep.subr.bf16.mxu1 %v3909_v1 }
0x1e67   :  { %3411 = vmatpush3.bf16.msra.mxu1 %v3704_v29 }
0x1e68   :  { %3412 = vmatprep.subr.bf16.mxu1 %v3909_v1 }
0x1e6b   :  { %3413 = vmatpush3.bf16.msra.mxu1 %v3705_v30  ;;  %v3717_v30 = vld [vmem:[%s4690_s4 + $0x8] sm:$0xff]  }
0x1e6c   :  { %3414 = vmatprep.subr.bf16.mxu1 %v3909_v1 }
0x1e6f   :  { %3415 = vmatpush3.bf16.msra.mxu1 %v3706_v31 }
0x1e70   :  { %3416 = vmatprep.subr.bf16.mxu1 %v3909_v1 }
0x1e73   :  { %3417 = vmatpush3.bf16.msra.mxu1 %v3707_v32 }
0x1e74   :  { %3461 = vmatprep.subr.bf16.mxu1 %v3909_v1 }
0x1f29   :  { %v1092_v19 = vpop.f32.mrb[28].mxu1 }
0x1f2a   :  { %v1093_v20 = vadd.f32 %v4221_v18, %v1092_v19  ;;  %v3401_v21 = vpop.f32.mrb[29].mxu1  ;;  %v3709_v19 = vld [vmem:[%s4692_s6 + $0x8] sm:$0xff]  }
0x1f2b   :  { %v3710_v21 = vld [vmem:[%s4692_s6 + $0x10] sm:$0xff]  }
0x1f2c   :  { %1096 = vst [vmem:[%s4695_s9] sm:$0x3] %v1093_v20  ;;  %v1098_v22 = vsel %vm1097_vm2, %v1093_v20, -inf }
0x1f2d   :  { %1099 = vmax.xlane.f32.xlu0 %v1098_v22  ;;  %v3711_v22 = vld [vmem:[%s4692_s6 + $0x18] sm:$0xff]  }
0x1f43   :  { %1238 = vrot.lane.b32.xlu0 %v1232_v25, %s3913_s19  ;;  %v3714_v25 = vld [vmem:[%s4692_s6 + $0x30] sm:$0xff]  }
0x1fba   :  { %v1100_v36 = vpop.xlane.xlu0 %1099 }
0x1fbb   :  { %vm1101_vm3 = vcmp.eq.f32.partialorder %v1093_v20, %v1100_v36  ;;  %v3715_v20 = vld [vmem:[%s4690_s4] sm:$0xff]   ;;  %v1528_v36 = vstv %s1418_s0 }
0x1fbc   :  { %v1102_v0 = vsel %vm1101_vm3, %v4265_v35, 128.0 }
0x1fbd   :  { %v1103_v37 = vsel %vm1097_vm2, %v1102_v0, inf  ;;  %v1531_v0 = vstv %s1530_s1 }
0x1fbe   :  { %1104 = vmin.xlane.f32.xlu1 %v1103_v37  ;;  %v1239_v38 = vpop.permute.xlu0 %1238  ;;  %v1529_v37 = vmul.f32 %v3041_v34, %v1528_v36  ;;  %v1841_v34 = vstv %s1840_s21 }
0x1fbf   :  { %3427 = vmatmul.mubr.msk.bf16.vlgmr.msra.gmra.mrb[20].mxu0 %vm63_vm1, %v1239_v38 }
0x1fc0   :  { %3644 = vmatpush3.bf16.msra.mxu0 %v4198_v10  ;;  %3438 = vmatprep.mubr.msk.f32.mxu0 %vm3910_vm0, %v3909_v1 }
0x1fc1   :  { %3645 = vmatprep.subr.bf16.mxu0 %v3914_v9 }
0x1fc4   :  { %3647 = vmatpush3.bf16.msra.mxu0 %v4204_v12 }
0x1fc5   :  { %3441 = vmatprep.subr.bf16.mxu0 %v3909_v1 }
0x204b   :  { %v1105_v39 = vpop.xlane.xlu1 %1104 }
0x204c   :  { %vm1106_vm4 = vcmp.eq.f32.partialorder %v4265_v35, %v1105_v39 }
0x204d   :  { %vm3018_vm5 = vmpackc.low %vm1106_vm4, %vm1106_vm4 }
0x204e   :  { %3419 = vmatmul.mubr.msk.bf16.vlgmr.msra.gmra.mrb[32].mxu1 %vm3018_vm5, %v3915_v2 }
0x204f   :  { %3465 = vmatprep.mubr.msk.bf16.mxu1 %vm3910_vm0, %v3909_v1  ;;  %3462 = vmatpush3.bf16.msra.mxu1 %v3715_v20  ;;  %v3725_v20 = vld [vmem:[%s4692_s6 + $0x28] sm:$0xff]  }
0x2050   :  { %3463 = vmatprep.subr.bf16.mxu1 %v3909_v1 }
0x2053   :  { %3464 = vmatpush3.bf16.msra.mxu1 %v3717_v30 }
0x2054   :  { %3648 = vmatprep.subr.bf16.mxu1 %v3914_v9 }
0x2092   :  { %v1289_v40 = vpop.f32.mrb[20].mxu0 }
0x2093   :  { %v3428_v41 = vpop.f32.mrb[21].mxu0 }
0x2094   :  { %v1292_v42 = vpop.f32.mrb[22].mxu0 }
0x2095   :  { %v3429_v43 = vpop.f32.mrb[23].mxu0 }
0x2121   :  { %v1210_v47 = vpop.f32.mrb[32].mxu1 }
0x2122   :  { %v1222_v48 = vmul.f32 %v1221_v45, %v1210_v47  ;;  %v3420_v50 = vpop.f32.mrb[33].mxu1 }
0x2123   :  { %v1213_v51 = vpop.f32.mrb[34].mxu1 }
0x2124   :  { %v1223_v52 = vadd.f32 %v1222_v48, %v1219_v46  ;;  %v3421_v53 = vpop.f32.mrb[35].mxu1 }
0x2126   :  { %v1231_v54 = vadd.f32 %v4179_v49, %v1223_v52 }
0x2128   :  { %v1295_v55 = vadd.f32 %v1289_v40, %v1231_v54 }
0x212a   :  { %3846 = vtanh.f32 %v1295_v55  ;;  %v3025_v57 = vmul.f32 -1.442695, %v1295_v55 }
0x212c   :  { %3848 = vpow2.f32 %v3025_v57 }
0x2134   :  { %v3847_v56 = vpop.eup %3846 }
0x2135   :  { %1305 = vrot.lane.b32.xlu1 %v3847_v56, %s3912_s18 }
0x2136   :  { %v3849_v58 = vpop.eup %3848 }
0x2137   :  { %v1299_v59 = vadd.f32 1.0, %v3849_v58 }
0x2139   :  { %3850 = vrcp.f32 %v1299_v59 }
0x2143   :  { %v3851_v60 = vpop.eup %3850 }
0x2144   :  { %v1303_v63 = vmul.f32 %v3851_v60, %v4185_v5 }
0x21a7   :  { %v1306_v61 = vpop.permute.xlu1 %1305 }
0x21a8   :  { %v1308_v62 = vmul.f32 %v3851_v60, %v1306_v61 }
0x21aa   :  { %1310 = vrot.lane.b32.xlu0 %v1308_v62, %s3913_s19 }
0x221c   :  { %v1311_v4 = vpop.permute.xlu0 %1310 }
0x221d   :  { %v4287_v6 = vadd.f32 %v1311_v4, %v1303_v63  ;;  %v3718_v4 = vld [vmem:[%s4690_s4] sm:$0xff]  }
0x221f   :  { %3852 = vtanh.f32 %v4287_v6 }
0x2229   :  { %v3853_v7 = vpop.eup %3852 }
0x222a   :  { %1316 = vrot.lane.b32.xlu1 %v3853_v7, %s3912_s18 }
0x229c   :  { %v1317_v8 = vpop.permute.xlu1 %1316 }
0x229d   :  { %v1319_v11 = vmul.f32 %v3851_v60, %v1317_v8 }
0x229f   :  { %1332 = vrot.lane.b32.xlu0 %v1319_v11, %s3913_s19  ;;  %v1542_v31 = vpack.c.bf16 %v1319_v11, %v1319_v11 }
0x2311   :  { %v1333_v13 = vpop.permute.xlu0 %1332 }
0x2312   :  { %3439 = vmatmul.mubr.msk.f32.vlgmr.msra.gmra.mrb[24].mxu0 %vm63_vm1, %v1333_v13  ;;  %v3719_v13 = vld [vmem:[%s4690_s4 + $0x8] sm:$0xff]  }
0x2313   :  { %3457 = vmatprep.mubr.msk.bf16.mxu0 %vm3910_vm0, %v3909_v1  ;;  %3442 = vmatpush3.bf16.msra.mxu0 %v3708_v17  ;;  %v3723_v17 = vld [vmem:[%s4692_s6 + $0x18] sm:$0xff]  }
0x2314   :  { %3443 = vmatprep.subr.bf16.mxu0 %v3909_v1 }
0x2317   :  { %3444 = vmatpush3.bf16.msra.mxu0 %v3709_v19  ;;  %v3724_v19 = vld [vmem:[%s4692_s6 + $0x20] sm:$0xff]  }
0x2318   :  { %3445 = vmatprep.subr.bf16.mxu0 %v3909_v1 }
0x231b   :  { %3446 = vmatpush3.bf16.msra.mxu0 %v3710_v21  ;;  %v3726_v21 = vld [vmem:[%s4692_s6 + $0x30] sm:$0xff]  }
0x231c   :  { %3447 = vmatprep.subr.bf16.mxu0 %v3909_v1 }
0x231f   :  { %3448 = vmatpush3.bf16.msra.mxu0 %v3711_v22  ;;  %v3727_v22 = vld [vmem:[%s4692_s6 + $0x38] sm:$0xff]  }
0x2320   :  { %3449 = vmatprep.subr.bf16.mxu0 %v3909_v1 }
0x2323   :  { %3450 = vmatpush3.bf16.msra.mxu0 %v3712_v23 }
0x2324   :  { %3451 = vmatprep.subr.bf16.mxu0 %v3909_v1 }
0x2327   :  { %3452 = vmatpush3.bf16.msra.mxu0 %v3713_v24 }
0x2328   :  { %3453 = vmatprep.subr.bf16.mxu0 %v3909_v1 }
0x232b   :  { %3454 = vmatpush3.bf16.msra.mxu0 %v3714_v25 }
0x232c   :  { %3455 = vmatprep.subr.bf16.mxu0 %v3909_v1 }
0x232f   :  { %3456 = vmatpush3.bf16.msra.mxu0 %v3716_v26 }
0x2330   :  { %3500 = vmatprep.subr.bf16.mxu0 %v3909_v1 }
0x23e5   :  { %v1402_v14 = vpop.f32.mrb[24].mxu0 }
0x23e6   :  { %v1403_v5 = vadd.f32 %v4221_v18, %v1402_v14  ;;  %v3440_v15 = vpop.f32.mrb[25].mxu0  ;;  %v3720_v14 = vld [vmem:[%s4692_s6] sm:$0xff]  }
0x23e7   :  { %v3721_v15 = vld [vmem:[%s4692_s6 + $0x8] sm:$0xff]  }
0x23e8   :  { %3028 = vst [vmem:[%s4695_s9 + $0x2] sm:$0x3] %v1403_v5  ;;  %v1408_v16 = vsel %vm1097_vm2, %v1403_v5, -inf }
0x23e9   :  { %1409 = vmax.xlane.f32.xlu1 %v1408_v16  ;;  %v3722_v16 = vld [vmem:[%s4692_s6 + $0x10] sm:$0xff]  }
0x2476   :  { %v1410_v27 = vpop.xlane.xlu1 %1409 }
0x2477   :  { %vm1411_vm6 = vcmp.eq.f32.partialorder %v1403_v5, %v1410_v27 }
0x2478   :  { %v1412_v28 = vsel %vm1411_vm6, %v4265_v35, 128.0 }
0x2479   :  { %v1413_v29 = vsel %vm1097_vm2, %v1412_v28, inf }
0x247a   :  { %1414 = vmin.xlane.f32.xlu0 %v1413_v29 }
0x2490   :  { %1548 = vrot.lane.b32.xlu0 %v1542_v31, %s3913_s19 }
0x2507   :  { %v1415_v32 = vpop.xlane.xlu0 %1414 }
0x2508   :  { %vm1416_vm7 = vcmp.eq.f32.partialorder %v4265_v35, %v1415_v32  ;;  %v3062_v32 = vld [vmem:[%s4688_s2 + $0x6] sm:$0x3] }
0x2509   :  { %vm3039_vm8 = vmpackc.low %vm1416_vm7, %vm1416_vm7 }
0x250a   :  { %3458 = vmatmul.mubr.msk.bf16.vlgmr.msra.gmra.mrb[28].mxu0 %vm3039_vm8, %v3915_v2 }
0x250b   :  { %v1549_v33 = vpop.permute.xlu0 %1548  ;;  %3504 = vmatprep.mubr.msk.bf16.mxu0 %vm3910_vm0, %v3909_v1  ;;  %3501 = vmatpush3.bf16.msra.mxu0 %v3718_v4  ;;  %v3735_v4 = vld [vmem:[%s4690_s4] sm:$0xff]  }
0x250c   :  { %3466 = vmatmul.mubr.msk.bf16.vlgmr.msra.gmra.mrb[36].mxu1 %vm63_vm1, %v1549_v33  ;;  %3502 = vmatprep.subr.bf16.mxu0 %v3909_v1  ;;  %v1838_v33 = vstv %s1728_s20 }
0x250d   :  { %3650 = vmatpush3.bf16.msra.mxu1 %v4198_v10  ;;  %3477 = vmatprep.mubr.msk.f32.mxu1 %vm3910_vm0, %v3909_v1  ;;  %v1839_v36 = vmul.f32 %v3062_v32, %v1838_v33 }
0x250e   :  { %3651 = vmatprep.subr.bf16.mxu1 %v3914_v9 }
0x250f   :  { %3503 = vmatpush3.bf16.msra.mxu0 %v3719_v13  ;;  %v3734_v13 = vld [vmem:[%s4692_s6 + $0x30] sm:$0xff]  }
0x2510   :  { %3654 = vmatprep.subr.bf16.mxu0 %v3914_v9 }
0x2511   :  { %3653 = vmatpush3.bf16.msra.mxu1 %v4204_v12 }
0x2512   :  { %3480 = vmatprep.subr.bf16.mxu1 %v3909_v1 }
0x25dd   :  { %v1520_v38 = vpop.f32.mrb[28].mxu0 }
0x25de   :  { %v1532_v39 = vmul.f32 %v1531_v0, %v1520_v38  ;;  %v3459_v40 = vpop.f32.mrb[29].mxu0 }
0x25df   :  { %v1523_v41 = vpop.f32.mrb[30].mxu0  ;;  %v1599_v42 = vpop.f32.mrb[36].mxu1 }
0x25e0   :  { %v1533_v43 = vadd.f32 %v1532_v39, %v1529_v37  ;;  %v3460_v3 = vpop.f32.mrb[31].mxu0  ;;  %v3467_v44 = vpop.f32.mrb[37].mxu1 }
0x25e1   :  { %v1602_v45 = vpop.f32.mrb[38].mxu1 }
0x25e2   :  { %v1541_v46 = vadd.f32 %v4179_v49, %v1533_v43  ;;  %v3468_v47 = vpop.f32.mrb[39].mxu1 }
0x25e4   :  { %v1605_v48 = vadd.f32 %v1599_v42, %v1541_v46 }
0x25e6   :  { %3854 = vtanh.f32 %v1605_v48  ;;  %v3046_v51 = vmul.f32 -1.442695, %v1605_v48 }
0x25e8   :  { %3856 = vpow2.f32 %v3046_v51 }
0x25f0   :  { %v3855_v50 = vpop.eup %3854 }
0x25f1   :  { %1615 = vrot.lane.b32.xlu1 %v3855_v50, %s3912_s18 }
0x25f2   :  { %v3857_v52 = vpop.eup %3856 }
0x25f3   :  { %v1609_v53 = vadd.f32 1.0, %v3857_v52 }
0x25f5   :  { %3858 = vrcp.f32 %v1609_v53 }
0x25ff   :  { %v3859_v54 = vpop.eup %3858 }
0x2600   :  { %v1613_v57 = vmul.f32 %v3859_v54, %v4287_v6 }
0x2663   :  { %v1616_v55 = vpop.permute.xlu1 %1615 }
0x2664   :  { %v1618_v56 = vmul.f32 %v3859_v54, %v1616_v55 }
0x2666   :  { %1620 = vrot.lane.b32.xlu1 %v1618_v56, %s3913_s19 }
0x26d8   :  { %v1621_v58 = vpop.permute.xlu1 %1620 }
0x26d9   :  { %v4361_v59 = vadd.f32 %v1621_v58, %v1613_v57 }
0x26db   :  { %3860 = vtanh.f32 %v4361_v59 }
0x26e5   :  { %v3861_v60 = vpop.eup %3860 }
0x26e6   :  { %1626 = vrot.lane.b32.xlu0 %v3861_v60, %s3912_s18 }
0x2758   :  { %v1627_v61 = vpop.permute.xlu0 %1626 }
0x2759   :  { %v1629_v62 = vmul.f32 %v3859_v54, %v1627_v61 }
0x275b   :  { %1642 = vrot.lane.b32.xlu1 %v1629_v62, %s3913_s19  ;;  %v1852_v5 = vpack.c.bf16 %v1629_v62, %v1629_v62  ;;  %v3728_v62 = vld [vmem:[%s4692_s6] sm:$0xff]  }
0x27cd   :  { %v1643_v63 = vpop.permute.xlu1 %1642 }
0x27ce   :  { %3478 = vmatmul.mubr.msk.f32.vlgmr.msra.gmra.mrb[30].mxu1 %vm63_vm1, %v1643_v63  ;;  %v3729_v63 = vld [vmem:[%s4692_s6 + $0x8] sm:$0xff]  }
0x27cf   :  { %3496 = vmatprep.mubr.msk.bf16.mxu1 %vm3910_vm0, %v3909_v1  ;;  %3481 = vmatpush3.bf16.msra.mxu1 %v3720_v14  ;;  %v3736_v14 = vld [vmem:[%s4692_s6 + $0x38] sm:$0xff]  }
0x27d0   :  { %3482 = vmatprep.subr.bf16.mxu1 %v3909_v1 }
0x27d3   :  { %3483 = vmatpush3.bf16.msra.mxu1 %v3721_v15 }
0x27d4   :  { %3484 = vmatprep.subr.bf16.mxu1 %v3909_v1 }
0x27d7   :  { %3485 = vmatpush3.bf16.msra.mxu1 %v3722_v16 }
0x27d8   :  { %3486 = vmatprep.subr.bf16.mxu1 %v3909_v1 }
0x27db   :  { %3487 = vmatpush3.bf16.msra.mxu1 %v3723_v17  ;;  %v3737_v17 = vld [vmem:[%s4690_s4 + $0x8] sm:$0xff]  }
0x27dc   :  { %3488 = vmatprep.subr.bf16.mxu1 %v3909_v1 }
0x27df   :  { %3489 = vmatpush3.bf16.msra.mxu1 %v3724_v19 }
0x27e0   :  { %3490 = vmatprep.subr.bf16.mxu1 %v3909_v1 }
0x27e3   :  { %3491 = vmatpush3.bf16.msra.mxu1 %v3725_v20 }
0x27e4   :  { %3492 = vmatprep.subr.bf16.mxu1 %v3909_v1 }
0x27e7   :  { %3493 = vmatpush3.bf16.msra.mxu1 %v3726_v21 }
0x27e8   :  { %3494 = vmatprep.subr.bf16.mxu1 %v3909_v1 }
0x27eb   :  { %3495 = vmatpush3.bf16.msra.mxu1 %v3727_v22  ;;  %v3083_v22 = vld [vmem:[%s4688_s2 + $0x8] sm:$0x3] }
0x27ec   :  { %3539 = vmatprep.subr.bf16.mxu1 %v3909_v1 }
0x28a1   :  { %v1712_v6 = vpop.f32.mrb[30].mxu1 }
0x28a2   :  { %v1713_v7 = vadd.f32 %v4221_v18, %v1712_v6  ;;  %v3479_v8 = vpop.f32.mrb[31].mxu1  ;;  %v3730_v6 = vld [vmem:[%s4692_s6 + $0x10] sm:$0xff]  }
0x28a3   :  { %v3732_v8 = vld [vmem:[%s4692_s6 + $0x20] sm:$0xff]  }
0x28a4   :  { %3049 = vst [vmem:[%s4695_s9 + $0x4] sm:$0x3] %v1713_v7  ;;  %v1718_v11 = vsel %vm1097_vm2, %v1713_v7, -inf }
0x28a5   :  { %1719 = vmax.xlane.f32.xlu0 %v1718_v11  ;;  %v3733_v11 = vld [vmem:[%s4692_s6 + $0x28] sm:$0xff]  }
0x28bb   :  { %1858 = vrot.lane.b32.xlu0 %v1852_v5, %s3913_s19 }
0x2932   :  { %v1720_v23 = vpop.xlane.xlu0 %1719 }
0x2933   :  { %vm1721_vm9 = vcmp.eq.f32.partialorder %v1713_v7, %v1720_v23  ;;  %v3731_v7 = vld [vmem:[%s4692_s6 + $0x18] sm:$0xff]   ;;  %v2148_v23 = vstv %s2038_s25 }
0x2934   :  { %v1722_v24 = vsel %vm1721_vm9, %v4265_v35, 128.0 }
0x2935   :  { %v1723_v25 = vsel %vm1097_vm2, %v1722_v24, inf  ;;  %v2151_v24 = vstv %s2150_s26 }
0x2936   :  { %1724 = vmin.xlane.f32.xlu1 %v1723_v25  ;;  %v1859_v26 = vpop.permute.xlu0 %1858  ;;  %v2149_v25 = vmul.f32 %v3083_v22, %v2148_v23  ;;  %v4578_v23 = vld [vmem:[%s4691_s5] ss:$0 sm:$0xff] }
0x2937   :  { %3505 = vmatmul.mubr.msk.bf16.vlgmr.msra.gmra.mrb[32].mxu0 %vm63_vm1, %v1859_v26 }
0x2938   :  { %3656 = vmatpush3.bf16.msra.mxu0 %v4198_v10  ;;  %3516 = vmatprep.mubr.msk.f32.mxu0 %vm3910_vm0, %v3909_v1 }
0x2939   :  { %3657 = vmatprep.subr.bf16.mxu0 %v3914_v9 }
0x293c   :  { %3659 = vmatpush3.bf16.msra.mxu0 %v4204_v12 }
0x293d   :  { %3519 = vmatprep.subr.bf16.mxu0 %v3909_v1 }
0x29c3   :  { %v1725_v27 = vpop.xlane.xlu1 %1724 }
0x29c4   :  { %vm1726_vm10 = vcmp.eq.f32.partialorder %v4265_v35, %v1725_v27 }
0x29c5   :  { %vm3060_vm11 = vmpackc.low %vm1726_vm10, %vm1726_vm10 }
0x29c6   :  { %3497 = vmatmul.mubr.msk.bf16.vlgmr.msra.gmra.mrb[40].mxu1 %vm3060_vm11, %v3915_v2 }
0x29c7   :  { %3543 = vmatprep.mubr.msk.bf16.mxu1 %vm3910_vm0, %v3909_v1  ;;  %3540 = vmatpush3.bf16.msra.mxu1 %v3735_v4 }
0x29c8   :  { %3541 = vmatprep.subr.bf16.mxu1 %v3909_v1 }
0x29cb   :  { %3542 = vmatpush3.bf16.msra.mxu1 %v3737_v17  ;;  %v2461_v17 = vstv %s2460_s10 }
0x29cc   :  { %3660 = vmatprep.subr.bf16.mxu1 %v3914_v9 }
0x2a0a   :  { %v1909_v28 = vpop.f32.mrb[32].mxu0 }
0x2a0b   :  { %v3506_v29 = vpop.f32.mrb[33].mxu0 }
0x2a0c   :  { %v1912_v30 = vpop.f32.mrb[34].mxu0 }
0x2a0d   :  { %v3507_v31 = vpop.f32.mrb[35].mxu0 }
0x2a99   :  { %v1830_v0 = vpop.f32.mrb[40].mxu1 }
0x2a9a   :  { %v1842_v37 = vmul.f32 %v1841_v34, %v1830_v0  ;;  %v3498_v38 = vpop.f32.mrb[41].mxu1 }
0x2a9b   :  { %v1833_v39 = vpop.f32.mrb[42].mxu1 }
0x2a9c   :  { %v1843_v40 = vadd.f32 %v1842_v37, %v1839_v36  ;;  %v3499_v41 = vpop.f32.mrb[43].mxu1 }
0x2a9e   :  { %v1851_v42 = vadd.f32 %v4179_v49, %v1843_v40 }
0x2aa0   :  { %v1915_v43 = vadd.f32 %v1909_v28, %v1851_v42 }
0x2aa2   :  { %3862 = vtanh.f32 %v1915_v43  ;;  %v3067_v44 = vmul.f32 -1.442695, %v1915_v43 }
0x2aa4   :  { %3864 = vpow2.f32 %v3067_v44 }
0x2aac   :  { %v3863_v3 = vpop.eup %3862 }
0x2aad   :  { %1925 = vrot.lane.b32.xlu1 %v3863_v3, %s3912_s18 }
0x2aae   :  { %v3865_v45 = vpop.eup %3864 }
0x2aaf   :  { %v1919_v46 = vadd.f32 1.0, %v3865_v45 }
0x2ab1   :  { %3866 = vrcp.f32 %v1919_v46 }
0x2abb   :  { %v3867_v47 = vpop.eup %3866 }
0x2abc   :  { %v1923_v51 = vmul.f32 %v3867_v47, %v4361_v59 }
0x2b1f   :  { %v1926_v48 = vpop.permute.xlu1 %1925 }
0x2b20   :  { %v1928_v50 = vmul.f32 %v3867_v47, %v1926_v48  ;;  %v3738_v48 = vld [vmem:[%s4690_s4] sm:$0xff]  }
0x2b22   :  { %1930 = vrot.lane.b32.xlu0 %v1928_v50, %s3913_s19 }
0x2b94   :  { %v1931_v52 = vpop.permute.xlu0 %1930 }
0x2b95   :  { %v4435_v53 = vadd.f32 %v1931_v52, %v1923_v51 }
0x2b97   :  { %3868 = vtanh.f32 %v4435_v53 }
0x2ba1   :  { %v3869_v54 = vpop.eup %3868 }
0x2ba2   :  { %1936 = vrot.lane.b32.xlu1 %v3869_v54, %s3912_s18  ;;  %v3739_v54 = vld [vmem:[%s4690_s4 + $0x8] sm:$0xff]  }
0x2c14   :  { %v1937_v55 = vpop.permute.xlu1 %1936 }
0x2c15   :  { %v1939_v56 = vmul.f32 %v3867_v47, %v1937_v55  ;;  %v3740_v55 = vld [vmem:[%s4692_s6] sm:$0xff]  }
0x2c17   :  { %1952 = vrot.lane.b32.xlu0 %v1939_v56, %s3913_s19  ;;  %v2162_v19 = vpack.c.bf16 %v1939_v56, %v1939_v56  ;;  %v3741_v56 = vld [vmem:[%s4692_s6 + $0x8] sm:$0xff]  }
0x2c89   :  { %v1953_v57 = vpop.permute.xlu0 %1952 }
0x2c8a   :  { %3517 = vmatmul.mubr.msk.f32.vlgmr.msra.gmra.mrb[26].mxu0 %vm63_vm1, %v1953_v57  ;;  %v3742_v57 = vld [vmem:[%s4692_s6 + $0x10] sm:$0xff]  }
0x2c8b   :  { %3535 = vmatprep.mubr.msk.bf16.mxu0 %vm3910_vm0, %v3909_v1  ;;  %3520 = vmatpush3.bf16.msra.mxu0 %v3728_v62  ;;  %v3747_v62 = vld [vmem:[%s4692_s6 + $0x38] sm:$0xff]  }
0x2c8c   :  { %3521 = vmatprep.subr.bf16.mxu0 %v3909_v1 }
0x2c8f   :  { %3522 = vmatpush3.bf16.msra.mxu0 %v3729_v63 }
0x2c90   :  { %3523 = vmatprep.subr.bf16.mxu0 %v3909_v1 }
0x2c93   :  { %3524 = vmatpush3.bf16.msra.mxu0 %v3730_v6 }
0x2c94   :  { %3525 = vmatprep.subr.bf16.mxu0 %v3909_v1 }
0x2c97   :  { %3526 = vmatpush3.bf16.msra.mxu0 %v3731_v7 }
0x2c98   :  { %3527 = vmatprep.subr.bf16.mxu0 %v3909_v1 }
0x2c9b   :  { %3528 = vmatpush3.bf16.msra.mxu0 %v3732_v8 }
0x2c9c   :  { %3529 = vmatprep.subr.bf16.mxu0 %v3909_v1 }
0x2c9f   :  { %3530 = vmatpush3.bf16.msra.mxu0 %v3733_v11 }
0x2ca0   :  { %3531 = vmatprep.subr.bf16.mxu0 %v3909_v1 }
0x2ca3   :  { %3532 = vmatpush3.bf16.msra.mxu0 %v3734_v13 }
0x2ca4   :  { %3533 = vmatprep.subr.bf16.mxu0 %v3909_v1 }
0x2ca7   :  { %3534 = vmatpush3.bf16.msra.mxu0 %v3736_v14 }
0x2ca8   :  { %3578 = vmatprep.subr.bf16.mxu0 %v3909_v1 }
0x2d5d   :  { %v2022_v58 = vpop.f32.mrb[26].mxu0 }
0x2d5e   :  { %v2023_v59 = vadd.f32 %v4221_v18, %v2022_v58  ;;  %v3518_v60 = vpop.f32.mrb[27].mxu0  ;;  %v3743_v58 = vld [vmem:[%s4692_s6 + $0x18] sm:$0xff]  }
0x2d5f   :  { %v3745_v60 = vld [vmem:[%s4692_s6 + $0x28] sm:$0xff]  }
0x2d60   :  { %3070 = vst [vmem:[%s4695_s9 + $0x6] sm:$0x3] %v2023_v59  ;;  %v2028_v61 = vsel %vm1097_vm2, %v2023_v59, -inf }
0x2d61   :  { %2029 = vmax.xlane.f32.xlu1 %v2028_v61  ;;  %v3746_v61 = vld [vmem:[%s4692_s6 + $0x30] sm:$0xff]  }
0x2dee   :  { %v2030_v5 = vpop.xlane.xlu1 %2029 }
0x2def   :  { %vm2031_vm12 = vcmp.eq.f32.partialorder %v2023_v59, %v2030_v5  ;;  %v3744_v59 = vld [vmem:[%s4692_s6 + $0x20] sm:$0xff]  }
0x2df0   :  { %v2032_v15 = vsel %vm2031_vm12, %v4265_v35, 128.0 }
0x2df1   :  { %v2033_v16 = vsel %vm1097_vm2, %v2032_v15, inf  ;;  %v3104_v15 = vld [vmem:[%s4688_s2 + $0xa] sm:$0x3] }
0x2df2   :  { %2034 = vmin.xlane.f32.xlu0 %v2033_v16  ;;  %v2458_v16 = vstv %s2348_s30 }
0x2e08   :  { %2168 = vrot.lane.b32.xlu0 %v2162_v19, %s3913_s19  ;;  %v2459_v19 = vmul.f32 %v3104_v15, %v2458_v16 }
0x2e7f   :  { %v2035_v20 = vpop.xlane.xlu0 %2034 }
0x2e80   :  { %vm2036_vm13 = vcmp.eq.f32.partialorder %v4265_v35, %v2035_v20 }
0x2e81   :  { %vm3081_vm14 = vmpackc.low %vm2036_vm13, %vm2036_vm13 }
0x2e82   :  { %3536 = vmatmul.mubr.msk.bf16.vlgmr.msra.gmra.mrb[36].mxu0 %vm3081_vm14, %v3915_v2 }
0x2e83   :  { %v2169_v21 = vpop.permute.xlu0 %2168  ;;  %3582 = vmatprep.mubr.msk.bf16.mxu0 %vm3910_vm0, %v3909_v1  ;;  %3579 = vmatpush3.bf16.msra.mxu0 %v3738_v48 }
0x2e84   :  { %3544 = vmatmul.mubr.msk.bf16.vlgmr.msra.gmra.mrb[44].mxu1 %vm63_vm1, %v2169_v21  ;;  %3580 = vmatprep.subr.bf16.mxu0 %v3909_v1 }
0x2e85   :  { %3662 = vmatpush3.bf16.msra.mxu1 %v4198_v10  ;;  %3555 = vmatprep.mubr.msk.f32.mxu1 %vm3910_vm0, %v3909_v1 }
0x2e86   :  { %3663 = vmatprep.subr.bf16.mxu1 %v3914_v9 }
0x2e87   :  { %3581 = vmatpush3.bf16.msra.mxu0 %v3739_v54  ;;  %v3750_v54 = vld [vmem:[%s4692_s6 + $0x10] sm:$0xff]  }
0x2e88   :  { %3666 = vmatprep.subr.bf16.mxu0 %v3914_v9 }
0x2e89   :  { %3665 = vmatpush3.bf16.msra.mxu1 %v4204_v12 }
0x2e8a   :  { %3558 = vmatprep.subr.bf16.mxu1 %v3909_v1 }
0x2f55   :  { %v2140_v10 = vpop.f32.mrb[36].mxu0 }
0x2f56   :  { %v2152_v26 = vmul.f32 %v2151_v24, %v2140_v10  ;;  %v3537_v27 = vpop.f32.mrb[37].mxu0 }
0x2f57   :  { %v2143_v28 = vpop.f32.mrb[38].mxu0  ;;  %v2219_v29 = vpop.f32.mrb[44].mxu1 }
0x2f58   :  { %v2153_v30 = vadd.f32 %v2152_v26, %v2149_v25  ;;  %v3538_v31 = vpop.f32.mrb[39].mxu0  ;;  %v3545_v12 = vpop.f32.mrb[45].mxu1 }
0x2f59   :  { %v2222_v32 = vpop.f32.mrb[46].mxu1 }
0x2f5a   :  { %v2161_v33 = vadd.f32 %v4179_v49, %v2153_v30  ;;  %v3546_v34 = vpop.f32.mrb[47].mxu1 }
0x2f5c   :  { %v2225_v36 = vadd.f32 %v2219_v29, %v2161_v33 }
0x2f5e   :  { %3870 = vtanh.f32 %v2225_v36  ;;  %v3088_v37 = vmul.f32 -1.442695, %v2225_v36 }
0x2f60   :  { %3872 = vpow2.f32 %v3088_v37  ;;  %v2560_v37 = vld [vmem:[%s4693_s7] sm:$0xff] }
0x2f68   :  { %v3871_v0 = vpop.eup %3870 }
0x2f69   :  { %2235 = vrot.lane.b32.xlu1 %v3871_v0, %s3912_s18 }
0x2f6a   :  { %v3873_v38 = vpop.eup %3872 }
0x2f6b   :  { %v2229_v39 = vadd.f32 1.0, %v3873_v38  ;;  %v2561_v38 = vld [vmem:[%s4693_s7 + $0x8] sm:$0xff] }
0x2f6d   :  { %3874 = vrcp.f32 %v2229_v39  ;;  %v2562_v39 = vld [vmem:[%s4693_s7 + $0x10] sm:$0xff] }
0x2f77   :  { %v3875_v40 = vpop.eup %3874 }
0x2f78   :  { %v2233_v43 = vmul.f32 %v3875_v40, %v4435_v53 }
0x2fdb   :  { %v2236_v41 = vpop.permute.xlu1 %2235 }
0x2fdc   :  { %v2238_v42 = vmul.f32 %v3875_v40, %v2236_v41  ;;  %v2563_v41 = vld [vmem:[%s4693_s7 + $0x18] sm:$0xff] }
0x2fde   :  { %2240 = vrot.lane.b32.xlu1 %v2238_v42, %s3913_s19  ;;  %v4602_v42 = vpack.c.bf16 %v2563_v41, %v2562_v39 }
0x3050   :  { %v2241_v3 = vpop.permute.xlu1 %2240 }
0x3051   :  { %v4509_v49 = vadd.f32 %v2241_v3, %v2233_v43 }
0x3053   :  { %3876 = vtanh.f32 %v4509_v49 }
0x305d   :  { %v3877_v44 = vpop.eup %3876 }
0x305e   :  { %2246 = vrot.lane.b32.xlu0 %v3877_v44, %s3912_s18 }
0x30d0   :  { %v2247_v45 = vpop.permute.xlu0 %2246 }
0x30d1   :  { %v2249_v46 = vmul.f32 %v3875_v40, %v2247_v45  ;;  %v4596_v40 = vpack.c.bf16 %v2561_v38, %v2560_v37  ;;  %v4615_v45 = vld [vmem:[%s4694_s8] ss:$0 sm:$0xff] }
0x30d3   :  { %2262 = vrot.lane.b32.xlu1 %v2249_v46, %s3913_s19 }
0x3145   :  { %v2263_v47 = vpop.permute.xlu1 %2262 }
0x3146   :  { %3556 = vmatmul.mubr.msk.f32.vlgmr.msra.gmra.mrb[48].mxu1 %vm63_vm1, %v2263_v47 }
0x3147   :  { %3574 = vmatprep.mubr.msk.bf16.mxu1 %vm3910_vm0, %v3909_v1  ;;  %3559 = vmatpush3.bf16.msra.mxu1 %v3740_v55  ;;  %v3751_v55 = vld [vmem:[%s4692_s6 + $0x18] sm:$0xff]  }
0x3148   :  { %3560 = vmatprep.subr.bf16.mxu1 %v3909_v1 }
0x314b   :  { %3561 = vmatpush3.bf16.msra.mxu1 %v3741_v56  ;;  %v3753_v56 = vld [vmem:[%s4692_s6 + $0x28] sm:$0xff]  }
0x314c   :  { %3562 = vmatprep.subr.bf16.mxu1 %v3909_v1 }
0x314f   :  { %3563 = vmatpush3.bf16.msra.mxu1 %v3742_v57  ;;  %v3754_v57 = vld [vmem:[%s4692_s6 + $0x30] sm:$0xff]  }
0x3150   :  { %3564 = vmatprep.subr.bf16.mxu1 %v3909_v1 }
0x3153   :  { %3565 = vmatpush3.bf16.msra.mxu1 %v3743_v58  ;;  %v3756_v58 = vld [vmem:[%s4692_s6 + $0x38] sm:$0xff]  }
0x3154   :  { %3566 = vmatprep.subr.bf16.mxu1 %v3909_v1 }
0x3157   :  { %3567 = vmatpush3.bf16.msra.mxu1 %v3744_v59 }
0x3158   :  { %3568 = vmatprep.subr.bf16.mxu1 %v3909_v1 }
0x315b   :  { %3569 = vmatpush3.bf16.msra.mxu1 %v3745_v60 }
0x315c   :  { %3570 = vmatprep.subr.bf16.mxu1 %v3909_v1 }
0x315f   :  { %3571 = vmatpush3.bf16.msra.mxu1 %v3746_v61 }
0x3160   :  { %3572 = vmatprep.subr.bf16.mxu1 %v3909_v1 }
0x3163   :  { %3573 = vmatpush3.bf16.msra.mxu1 %v3747_v62  ;;  %v3757_v62 = vld [vmem:[%s4690_s4 + $0x8] sm:$0xff]  }
0x3164   :  { %3617 = vmatprep.subr.bf16.mxu1 %v3909_v1 }
0x3219   :  { %v2332_v50 = vpop.f32.mrb[48].mxu1 }
0x321a   :  { %v2333_v51 = vadd.f32 %v4221_v18, %v2332_v50  ;;  %v3557_v52 = vpop.f32.mrb[49].mxu1  ;;  %v2472_v18 = vpack.c.bf16 %v2249_v46, %v2249_v46 }
0x321b   :  { %v3749_v52 = vld [vmem:[%s4692_s6 + $0x8] sm:$0xff]  }
0x321c   :  { %3091 = vst [vmem:[%s4695_s9 + $0x8] sm:$0x3] %v2333_v51  ;;  %v2338_v53 = vsel %vm1097_vm2, %v2333_v51, -inf }
0x321d   :  { %2339 = vmax.xlane.f32.xlu0 %v2338_v53  ;;  %v3755_v53 = vld [vmem:[%s4690_s4] sm:$0xff]   ;;  %s3113_s4 = sld [smem:[#allocation2 + $0x6]] }
0x3233   :  { %2478 = vrot.lane.b32.xlu0 %v2472_v18, %s3913_s19  ;;  %v3752_v18 = vld [vmem:[%s4692_s6 + $0x20] sm:$0xff]  }
0x32aa   :  { %v2340_v63 = vpop.xlane.xlu0 %2339 }
0x32ab   :  { %vm2341_vm15 = vcmp.eq.f32.partialorder %v2333_v51, %v2340_v63  ;;  %v3748_v51 = vld [vmem:[%s4692_s6] sm:$0xff]   ;;  %s2658_s6 = scvt.s32.f32 %s3113_s4 }
0x32ac   :  { %v2342_v4 = vsel %vm2341_vm15, %v4265_v35, 128.0 }
0x32ad   :  { %v2343_v6 = vsel %vm1097_vm2, %v2342_v4, inf  ;;  %s2770_s20 = ssub.f32 1.0, %s2658_s6 }
0x32ae   :  { %2344 = vmin.xlane.f32.xlu1 %v2343_v6  ;;  %v2479_v7 = vpop.permute.xlu0 %2478 }
0x32af   :  { %3583 = vmatmul.mubr.msk.bf16.vlgmr.msra.gmra.mrb[40].mxu0 %vm63_vm1, %v2479_v7  ;;  %v2771_v7 = vstv %s2770_s20 }
0x32b0   :  { %3594 = vmatprep.mubr.msk.f32.mxu0 %vm3910_vm0, %v3909_v1  ;;  %3668 = vmatpush3.bf16.msra.mxu0 %v4596_v40 }
0x32b1   :  { %3669 = vmatprep.subr.bf16.mxu0 %v3914_v9 }
0x32b4   :  { %3671 = vmatpush3.bf16.msra.mxu0 %v4602_v42 }
0x32b5   :  { %3597 = vmatprep.subr.bf16.mxu0 %v3909_v1 }
0x333b   :  { %v2345_v8 = vpop.xlane.xlu1 %2344 }
0x333c   :  { %vm2346_vm3 = vcmp.eq.f32.partialorder %v4265_v35, %v2345_v8 }
0x333d   :  { %vm3102_vm4 = vmpackc.low %vm2346_vm3, %vm2346_vm3 }
0x333e   :  { %3575 = vmatmul.mubr.msk.bf16.vlgmr.msra.gmra.mrb[52].mxu1 %vm3102_vm4, %v3915_v2 }
0x333f   :  { %3621 = vmatprep.mubr.msk.bf16.mxu1 %vm3910_vm0, %v3909_v1  ;;  %3618 = vmatpush3.bf16.msra.mxu1 %v3755_v53 }
0x3340   :  { %3619 = vmatprep.subr.bf16.mxu1 %v3909_v1 }
0x3343   :  { %3620 = vmatpush3.bf16.msra.mxu1 %v3757_v62 }
0x3344   :  { %3672 = vmatprep.subr.bf16.mxu1 %v3914_v9 }
0x3382   :  { %v2529_v11 = vpop.f32.mrb[40].mxu0 }
0x3383   :  { %v3584_v13 = vpop.f32.mrb[41].mxu0 }
0x3384   :  { %v2532_v14 = vpop.f32.mrb[42].mxu0 }
0x3385   :  { %v3585_v5 = vpop.f32.mrb[43].mxu0 }
0x3411   :  { %v2450_v20 = vpop.f32.mrb[52].mxu1 }
0x3412   :  { %v2462_v21 = vmul.f32 %v2461_v17, %v2450_v20  ;;  %v3576_v22 = vpop.f32.mrb[53].mxu1 }
0x3413   :  { %v2453_v24 = vpop.f32.mrb[54].mxu1 }
0x3414   :  { %v2463_v25 = vadd.f32 %v2462_v21, %v2459_v19  ;;  %v3577_v10 = vpop.f32.mrb[55].mxu1 }
0x3416   :  { %v2471_v26 = vadd.f32 %v4578_v23, %v2463_v25 }
0x3418   :  { %v2535_v27 = vadd.f32 %v2529_v11, %v2471_v26 }
0x341a   :  { %3878 = vtanh.f32 %v2535_v27  ;;  %v3109_v29 = vmul.f32 -1.442695, %v2535_v27 }
0x341c   :  { %3880 = vpow2.f32 %v3109_v29 }
0x3424   :  { %v3879_v28 = vpop.eup %3878 }
0x3425   :  { %2545 = vrot.lane.b32.xlu1 %v3879_v28, %s3912_s18 }
0x3426   :  { %v3881_v30 = vpop.eup %3880 }
0x3427   :  { %v2539_v31 = vadd.f32 1.0, %v3881_v30 }
0x3429   :  { %3882 = vrcp.f32 %v2539_v31 }
0x3433   :  { %v3883_v12 = vpop.eup %3882 }
0x3434   :  { %v2543_v34 = vmul.f32 %v3883_v12, %v4509_v49 }
0x3497   :  { %v2546_v32 = vpop.permute.xlu1 %2545 }
0x3498   :  { %v2548_v33 = vmul.f32 %v3883_v12, %v2546_v32 }
0x349a   :  { %2550 = vrot.lane.b32.xlu0 %v2548_v33, %s3913_s19 }
0x350c   :  { %v2551_v36 = vpop.permute.xlu0 %2550 }
0x350d   :  { %v4584_v0 = vadd.f32 %v2551_v36, %v2543_v34 }
0x350f   :  { %3884 = vtanh.f32 %v4584_v0 }
0x3519   :  { %v3885_v43 = vpop.eup %3884 }
0x351a   :  { %2556 = vrot.lane.b32.xlu1 %v3885_v43, %s3912_s18 }
0x358c   :  { %v2557_v3 = vpop.permute.xlu1 %2556 }
0x358d   :  { %v2559_v49 = vmul.f32 %v3883_v12, %v2557_v3 }
0x358f   :  { %2572 = vrot.lane.b32.xlu0 %v2559_v49, %s3913_s19  ;;  %v2782_v63 = vpack.c.bf16 %v2559_v49, %v2559_v49 }
0x3601   :  { %v2573_v44 = vpop.permute.xlu0 %2572 }
0x3602   :  { %3595 = vmatmul.mubr.msk.f32.vlgmr.msra.gmra.mrb[44].mxu0 %vm63_vm1, %v2573_v44 }
0x3603   :  { %3613 = vmatprep.mubr.msk.bf16.mxu0 %vm3910_vm0, %v3909_v1  ;;  %3598 = vmatpush3.bf16.msra.mxu0 %v3748_v51 }
0x3604   :  { %3599 = vmatprep.subr.bf16.mxu0 %v3909_v1 }
0x3607   :  { %3600 = vmatpush3.bf16.msra.mxu0 %v3749_v52 }
0x3608   :  { %3601 = vmatprep.subr.bf16.mxu0 %v3909_v1 }
0x360b   :  { %3602 = vmatpush3.bf16.msra.mxu0 %v3750_v54 }
0x360c   :  { %3603 = vmatprep.subr.bf16.mxu0 %v3909_v1 }
0x360f   :  { %3604 = vmatpush3.bf16.msra.mxu0 %v3751_v55 }
0x3610   :  { %3605 = vmatprep.subr.bf16.mxu0 %v3909_v1 }
0x3613   :  { %3606 = vmatpush3.bf16.msra.mxu0 %v3752_v18 }
0x3614   :  { %3607 = vmatprep.subr.bf16.mxu0 %v3909_v1 }
0x3617   :  { %3608 = vmatpush3.bf16.msra.mxu0 %v3753_v56 }
0x3618   :  { %3609 = vmatprep.subr.bf16.mxu0 %v3909_v1 }
0x361b   :  { %3610 = vmatpush3.bf16.msra.mxu0 %v3754_v57 }
0x361c   :  { %3611 = vmatprep.subr.bf16.mxu0 %v3909_v1 }
0x361f   :  { %3612 = vmatpush3.bf16.msra.mxu0 %v3756_v58 }
0x36d5   :  { %v2642_v46 = vpop.f32.mrb[44].mxu0 }
0x36d6   :  { %v2643_v47 = vadd.f32 %v4615_v45, %v2642_v46  ;;  %v3596_v48 = vpop.f32.mrb[45].mxu0 }
0x36d8   :  { %3112 = vst [vmem:[%s4695_s9 + $0xa] sm:$0x3] %v2643_v47  ;;  %v2648_v50 = vsel %vm1097_vm2, %v2643_v47, -inf }
0x36d9   :  { %2649 = vmax.xlane.f32.xlu1 %v2648_v50 }
0x3766   :  { %v2650_v59 = vpop.xlane.xlu1 %2649 }
0x3767   :  { %vm2651_vm5 = vcmp.eq.f32.partialorder %v2643_v47, %v2650_v59 }
0x3768   :  { %v2652_v60 = vsel %vm2651_vm5, %v4265_v35, 128.0 }
0x3769   :  { %v2653_v61 = vsel %vm1097_vm2, %v2652_v60, inf }
0x376a   :  { %2654 = vmin.xlane.f32.xlu0 %v2653_v61 }
0x3780   :  { %2788 = vrot.lane.b32.xlu0 %v2782_v63, %s3913_s19 }
0x37f7   :  { %v2655_v4 = vpop.xlane.xlu0 %2654 }
0x37f8   :  { %vm2656_vm6 = vcmp.eq.f32.partialorder %v4265_v35, %v2655_v4  ;;  %v3125_v35 = vld [vmem:[%s4688_s2 + $0xc] sm:$0x3] }
0x37f9   :  { %vm3123_vm7 = vmpackc.low %vm2656_vm6, %vm2656_vm6 }
0x37fa   :  { %3614 = vmatmul.mubr.msk.bf16.vlgmr.msra.gmra.mrb[48].mxu0 %vm3123_vm7, %v3915_v2  ;;  %v2768_v2 = vstv %s2658_s6 }
0x37fb   :  { %v2789_v6 = vpop.permute.xlu0 %2788  ;;  %v2769_v8 = vmul.f32 %v3125_v35, %v2768_v2 }
0x37fc   :  { %3622 = vmatmul.mubr.msk.bf16.vlgmr.msra.gmra.mrb[56].mxu1 %vm63_vm1, %v2789_v6 }
0x37fd   :  { %3674 = vmatpush3.bf16.msra.mxu1 %v4596_v40  ;;  %3633 = vmatprep.mubr.msk.f32.mxu1 %vm3910_vm0, %v3909_v1 }
0x37fe   :  { %3675 = vmatprep.subr.bf16.mxu1 %v3914_v9 }
0x3801   :  { %3677 = vmatpush3.bf16.msra.mxu1 %v4602_v42 }
0x38cd   :  { %v2760_v11 = vpop.f32.mrb[48].mxu0 }
0x38ce   :  { %v2772_v13 = vmul.f32 %v2771_v7, %v2760_v11  ;;  %v3615_v14 = vpop.f32.mrb[49].mxu0 }
0x38cf   :  { %v2763_v5 = vpop.f32.mrb[50].mxu0  ;;  %v2839_v15 = vpop.f32.mrb[56].mxu1 }
0x38d0   :  { %v2773_v1 = vadd.f32 %v2772_v13, %v2769_v8  ;;  %v3616_v16 = vpop.f32.mrb[51].mxu0  ;;  %v3623_v9 = vpop.f32.mrb[57].mxu1 }
0x38d1   :  { %v2842_v17 = vpop.f32.mrb[58].mxu1 }
0x38d2   :  { %v2781_v19 = vadd.f32 %v4578_v23, %v2773_v1  ;;  %v3624_v20 = vpop.f32.mrb[59].mxu1 }
0x38d4   :  { %v2845_v21 = vadd.f32 %v2839_v15, %v2781_v19 }
0x38d6   :  { %3886 = vtanh.f32 %v2845_v21  ;;  %v3130_v24 = vmul.f32 -1.442695, %v2845_v21 }
0x38d8   :  { %3888 = vpow2.f32 %v3130_v24 }
0x38e0   :  { %v3887_v22 = vpop.eup %3886 }
0x38e1   :  { %2855 = vrot.lane.b32.xlu1 %v3887_v22, %s3912_s18 }
0x38e2   :  { %v3889_v25 = vpop.eup %3888 }
0x38e3   :  { %v2849_v10 = vadd.f32 1.0, %v3889_v25 }
0x38e5   :  { %3890 = vrcp.f32 %v2849_v10 }
0x38ef   :  { %v3891_v26 = vpop.eup %3890 }
0x38f0   :  { %v2853_v29 = vmul.f32 %v3891_v26, %v4584_v0 }
0x3953   :  { %v2856_v27 = vpop.permute.xlu1 %2855 }
0x3954   :  { %v2858_v28 = vmul.f32 %v3891_v26, %v2856_v27 }
0x3956   :  { %2860 = vrot.lane.b32.xlu1 %v2858_v28, %s3913_s19 }
0x39c8   :  { %v2861_v30 = vpop.permute.xlu1 %2860 }
0x39c9   :  { %v2863_v23 = vadd.f32 %v2861_v30, %v2853_v29 }
0x39cb   :  { %3892 = vtanh.f32 %v2863_v23 }
0x39d5   :  { %v3893_v31 = vpop.eup %3892 }
0x39d6   :  { %2866 = vrot.lane.b32.xlu0 %v3893_v31, %s3912_s18 }
0x3a48   :  { %v2867_v12 = vpop.permute.xlu0 %2866 }
0x3a49   :  { %v2869_v32 = vmul.f32 %v3891_v26, %v2867_v12 }
0x3a4b   :  { %2882 = vrot.lane.b32.xlu1 %v2869_v32, %s3913_s19 }
0x3abd   :  { %v2883_v33 = vpop.permute.xlu1 %2882 }
0x3abe   :  { %3634 = vmatmul.mubr.msk.f32.vlgmr.msra.gmra.mrb[50].mxu1 %vm63_vm1, %v2883_v33 }
0x3b91   :  { %v2952_v34 = vpop.f32.mrb[50].mxu1 }
0x3b92   :  { %v2953_v36 = vadd.f32 %v4615_v45, %v2952_v34  ;;  %v3635_v37 = vpop.f32.mrb[51].mxu1 }
0x3b94   :  { %3133 = vst [vmem:[%s4695_s9 + $0xc] sm:$0x3] %v2953_v36 }
0x3b95   :  { %2962 = vsyncpa [#allocation3], 1 }

</bundles_post_ra>
